<compile_context>
chip_gen: v6e
topology: v6e:2x2x1
jax: 0.10.0
libtpu: 0.0.40
codegen_flags: <defaults>
</compile_context>

<pallas_src>
import functools
import math

import jax
import jax.numpy as jnp
from jax import lax
from jax.experimental import pallas as pl
from jax.experimental.pallas import tpu as pltpu


def _mha_kernel(xq_ref, xkv_ref, wq_ref, wkv_ref, wo_ref, o_ref,
                q_sc, m_sc, l_sc, acc_sc, *,
                num_heads, qk_dim, v_dim, tq, tk, scale, autoregressive):
    qi = pl.program_id(0)
    kj = pl.program_id(1)
    nk = pl.num_programs(1)

    # ---- once per query tile: fused Q projection (scale folded in) + init ----
    @pl.when(kj == 0)
    def _init():
        q_sc[...] = jnp.dot(xq_ref[...], wq_ref[...],
                            preferred_element_type=jnp.float32) * scale
        m_sc[...] = jnp.full(m_sc.shape, -1e30, dtype=jnp.float32)
        l_sc[...] = jnp.zeros(l_sc.shape, dtype=jnp.float32)
        acc_sc[...] = jnp.zeros(acc_sc.shape, dtype=jnp.float32)

    def _compute():
        # Fused K|V projection for this kv tile, all heads in one MXU matmul.
        kv = jnp.dot(xkv_ref[...], wkv_ref[...],
                     preferred_element_type=jnp.float32)     # (tk, H*qk + H*v)
        k_all = kv[:, : num_heads * qk_dim]
        v_all = kv[:, num_heads * qk_dim:]

        if autoregressive:
            row = qi * tq + lax.broadcasted_iota(jnp.int32, (tq, tk), 0)
            col = kj * tk + lax.broadcasted_iota(jnp.int32, (tq, tk), 1)
            # Additive bias, built once per tile (large finite negative avoids
            # -inf - -inf = NaN in the online-softmax recurrence).
            mask_bias = jnp.where(col > row, -1e30, 0.0).astype(jnp.float32)

        q_all = q_sc[...]
        m_prev = m_sc[...]
        l_prev = l_sc[...]
        acc_prev = acc_sc[...]

        m_cols, l_cols, acc_cols = [], [], []
        for h in range(num_heads):
            q_h = q_all[:, h * qk_dim:(h + 1) * qk_dim]       # (tq, qk)
            k_h = k_all[:, h * qk_dim:(h + 1) * qk_dim]       # (tk, qk)
            v_h = v_all[:, h * v_dim:(h + 1) * v_dim]         # (tk, v)

            # Contract last dims of Q and K directly (no K transpose).
            s = lax.dot_general(q_h, k_h, (((1,), (1,)), ((), ())),
                                preferred_element_type=jnp.float32)  # (tq, tk)
            if autoregressive:
                s = s + mask_bias

            m_old = m_prev[:, h:h + 1]
            m_new = jnp.maximum(m_old, jnp.max(s, axis=-1, keepdims=True))
            alpha = jnp.exp(m_old - m_new)
            p = jnp.exp(s - m_new)

            m_cols.append(m_new)
            l_cols.append(alpha * l_prev[:, h:h + 1]
                          + jnp.sum(p, axis=-1, keepdims=True))
            acc_cols.append(alpha * acc_prev[:, h * v_dim:(h + 1) * v_dim]
                            + jnp.dot(p, v_h,
                                      preferred_element_type=jnp.float32))

        # One lane-dense store per stat buffer (instead of H masked stores).
        m_sc[...] = jnp.concatenate(m_cols, axis=-1)
        l_sc[...] = jnp.concatenate(l_cols, axis=-1)
        acc_sc[...] = jnp.concatenate(acc_cols, axis=-1)

    if autoregressive:
        # Skip (q-tile, kv-tile) pairs that lie entirely above the diagonal.
        pl.when(kj * tk <= qi * tq + (tq - 1))(_compute)
    else:
        _compute()

    # ---- last kv step: normalize, concat heads, fused output projection ----
    @pl.when(kj == nk - 1)
    def _finalize():
        inv_l = pl.reciprocal(l_sc[...], approx=True)         # EUP vrcp, (tq, H)
        acc = acc_sc[...]
        attn = jnp.concatenate(
            [acc[:, h * v_dim:(h + 1) * v_dim] * inv_l[:, h:h + 1]
             for h in range(num_heads)], axis=-1)             # (tq, H*v)
        o_ref[...] = jnp.dot(attn, wo_ref[...],
                             preferred_element_type=jnp.float32
                             ).astype(o_ref.dtype)


def multi_head_attention(x, w_q, w_k, w_v, w_o, autoregressive: bool = True,
                         *, tq: int = 128, tk: int = 128):
    """Fused multi-head self-attention (flash-style, single Pallas kernel).

    x   : (N, input_dim)
    w_q : (H, input_dim, qk_dim)
    w_k : (H, input_dim, qk_dim)
    w_v : (H, input_dim, v_dim)
    w_o : (H * v_dim, input_dim)
    returns (N, input_dim)
    """
    n, d_in = x.shape
    num_heads, _, qk_dim = w_q.shape
    v_dim = w_v.shape[-1]

    tq = min(tq, n)
    tk = min(tk, n)
    assert n % tq == 0 and n % tk == 0, "N must be a multiple of the tile sizes"
    assert tq % 8 == 0 and tk % 8 == 0, "tiles must respect the (8,128) rule"

    # Host-side weight fusion (head-major along the output dim, matching the
    # torch.cat(head_outputs, dim=1) order used by w_o).
    wq_f = jnp.transpose(w_q, (1, 0, 2)).reshape(d_in, num_heads * qk_dim)
    wk_f = jnp.transpose(w_k, (1, 0, 2)).reshape(d_in, num_heads * qk_dim)
    wv_f = jnp.transpose(w_v, (1, 0, 2)).reshape(d_in, num_heads * v_dim)
    wkv_f = jnp.concatenate([wk_f, wv_f], axis=1)   # (d_in, H*qk + H*v)

    kernel = functools.partial(
        _mha_kernel,
        num_heads=num_heads, qk_dim=qk_dim, v_dim=v_dim,
        tq=tq, tk=tk, scale=1.0 / math.sqrt(qk_dim),
        autoregressive=autoregressive)

    grid = (n // tq, n // tk)
    full2d = lambda a: pl.BlockSpec(a.shape, lambda i, j: (0, 0))

    return pl.pallas_call(
        kernel,
        out_shape=jax.ShapeDtypeStruct((n, d_in), x.dtype),
        grid_spec=pltpu.PrefetchScalarGridSpec(
            num_scalar_prefetch=0,
            grid=grid,
            in_specs=[
                pl.BlockSpec((tq, d_in), lambda i, j: (i, 0)),   # x, query tile
                pl.BlockSpec((tk, d_in), lambda i, j: (j, 0)),   # x, kv tile
                full2d(wq_f),                                    # fused Wq
                full2d(wkv_f),                                   # fused Wk|Wv
                full2d(w_o),                                     # output proj
            ],
            out_specs=pl.BlockSpec((tq, d_in), lambda i, j: (i, 0)),
            scratch_shapes=[
                pltpu.VMEM((tq, num_heads * qk_dim), jnp.float32),  # cached Q
                pltpu.VMEM((tq, num_heads), jnp.float32),           # m
                pltpu.VMEM((tq, num_heads), jnp.float32),           # l
                pltpu.VMEM((tq, num_heads * v_dim), jnp.float32),   # acc
            ]),
        compiler_params=pltpu.CompilerParams(
            dimension_semantics=("parallel", "arbitrary"),
            vmem_limit_bytes=32 * 1024 * 1024),
    )(x, x, wq_f, wkv_f, w_o)


def multi_head_attention_ref(x, w_q, w_k, w_v, w_o, autoregressive: bool = True):
    """Pure-JAX reference mirroring the PyTorch MultiHeadAttention forward."""
    with jax.default_matmul_precision("highest"):
        outs = []
        n = x.shape[0]
        for h in range(w_q.shape[0]):
            q = x @ w_q[h]
            k = x @ w_k[h]
            v = x @ w_v[h]
            s = (q @ k.T) / math.sqrt(w_q.shape[-1])
            if autoregressive:
                mask = jnp.triu(jnp.ones((n, n), dtype=bool), k=1)
                s = jnp.where(mask, -jnp.inf, s)
            outs.append(jax.nn.softmax(s, axis=-1) @ v)
        return jnp.concatenate(outs, axis=1) @ w_o


if __name__ == "__main__":
    # Small shapes consistent with the module.
    N = 128           # sequence length (exercises the (2, 2) tiled grid)
    INPUT_DIM = 32
    QK_DIM = 16
    VALUE_DIM = 32
    NUM_HEADS = 4
    TQ = TK = 64

    key = jax.random.PRNGKey(0)
    kx, kq, kk, kv, ko = jax.random.split(key, 5)

    x = jax.random.normal(kx, (N, INPUT_DIM), dtype=jnp.float32)
    # torch.randn-style (standard normal) deterministic weight init.
    w_q = jax.random.normal(kq, (NUM_HEADS, INPUT_DIM, QK_DIM), dtype=jnp.float32)
    w_k = jax.random.normal(kk, (NUM_HEADS, INPUT_DIM, QK_DIM), dtype=jnp.float32)
    w_v = jax.random.normal(kv, (NUM_HEADS, INPUT_DIM, VALUE_DIM), dtype=jnp.float32)
    w_o = jax.random.normal(ko, (NUM_HEADS * VALUE_DIM, INPUT_DIM), dtype=jnp.float32)

    out = multi_head_attention(x, w_q, w_k, w_v, w_o, autoregressive=True,
                               tq=TQ, tk=TK)
    out = jax.block_until_ready(out)

    ref = multi_head_attention_ref(x, w_q, w_k, w_v, w_o, autoregressive=True)

    assert out.shape == (N, INPUT_DIM)
    max_err = float(jnp.max(jnp.abs(out - ref)))
    ref_scale = float(jnp.max(jnp.abs(ref)))
    # approx reciprocal + online-softmax reassociation → small relative slack.
    assert max_err <= 2e-2 * ref_scale + 1e-3, (
        f"max abs err = {max_err}, ref scale = {ref_scale}")

    print("KERNEL_OK")
</pallas_src>

<mosaic_0001>
module attributes {stable_mosaic.version = 11 : i64} {
  func.func @_mha_kernel(%arg0: i32, %arg1: i32, %arg2: memref<64x32xf32, #tpu.memory_space<vmem>>, %arg3: memref<64x32xf32, #tpu.memory_space<vmem>>, %arg4: memref<32x64xf32, #tpu.memory_space<vmem>>, %arg5: memref<32x192xf32, #tpu.memory_space<vmem>>, %arg6: memref<128x32xf32, #tpu.memory_space<vmem>>, %arg7: memref<64x32xf32, #tpu.memory_space<vmem>>, %arg8: memref<64x64xf32, #tpu.memory_space<vmem>>, %arg9: memref<64x4xf32, #tpu.memory_space<vmem>>, %arg10: memref<64x4xf32, #tpu.memory_space<vmem>>, %arg11: memref<64x128xf32, #tpu.memory_space<vmem>>) attributes {dimension_semantics = [#tpu.dimension_semantics<parallel>, #tpu.dimension_semantics<arbitrary>], iteration_bounds = array<i64: 2, 2>, scalar_prefetch = 0 : i64, scratch_operands = 4 : i64, tpu.core_type = #tpu.core_type<tc>, window_params = [{transform_indices = @transform_0, window_bounds = array<i64: 64, 32>}, {transform_indices = @transform_1, window_bounds = array<i64: 64, 32>}, {pipeline_mode = #tpu.pipeline_mode<synchronous>, transform_indices = @transform_2, window_bounds = array<i64: 32, 64>}, {pipeline_mode = #tpu.pipeline_mode<synchronous>, transform_indices = @transform_3, window_bounds = array<i64: 32, 192>}, {pipeline_mode = #tpu.pipeline_mode<synchronous>, transform_indices = @transform_4, window_bounds = array<i64: 128, 32>}, {transform_indices = @transform_5, window_bounds = array<i64: 64, 32>}]} {
    %c0_i32 = arith.constant 0 : i32
    %0 = arith.cmpi eq, %arg1, %c0_i32 : i32
    %1 = arith.extui %0 : i1 to i32
    %c0_i32_0 = arith.constant 0 : i32
    %2 = arith.cmpi ne, %1, %c0_i32_0 : i32
    scf.if %2 {
      %c0 = arith.constant 0 : index
      %c0_4 = arith.constant 0 : index
      %12 = vector.load %arg2[%c0, %c0_4] : memref<64x32xf32, #tpu.memory_space<vmem>>, vector<64x32xf32>
      %c0_5 = arith.constant 0 : index
      %c0_6 = arith.constant 0 : index
      %13 = vector.load %arg4[%c0_5, %c0_6] : memref<32x64xf32, #tpu.memory_space<vmem>>, vector<32x64xf32>
      %cst = arith.constant dense<0.000000e+00> : vector<64x64xf32>
      %14 = tpu.matmul %12, %13, %cst {dimension_numbers = #tpu.dot_dimension_numbers<[1], [0], [0], [1], [0, 0, 1, 1], [], []>} : vector<64x32xf32>, vector<32x64xf32>, vector<64x64xf32> -> vector<64x64xf32>
      %cst_7 = arith.constant 2.500000e-01 : f32
      %15 = vector.broadcast %cst_7 : f32 to vector<64x64xf32>
      %16 = arith.mulf %14, %15 : vector<64x64xf32>
      %c0_8 = arith.constant 0 : index
      %c0_9 = arith.constant 0 : index
      %17 = vector.load %arg8[%c0_8, %c0_9] : memref<64x64xf32, #tpu.memory_space<vmem>>, vector<64x64xf32>
      tpu.vector_store %arg8[%c0_8, %c0_9], %16 {strides = array<i32>} : memref<64x64xf32, #tpu.memory_space<vmem>>, vector<64x64xf32>,
      %cst_10 = arith.constant -1.000000e+30 : f32
      %18 = vector.broadcast %cst_10 : f32 to vector<64x4xf32>
      %c0_11 = arith.constant 0 : index
      %c0_12 = arith.constant 0 : index
      %19 = vector.load %arg9[%c0_11, %c0_12] : memref<64x4xf32, #tpu.memory_space<vmem>>, vector<64x4xf32>
      tpu.vector_store %arg9[%c0_11, %c0_12], %18 {strides = array<i32>} : memref<64x4xf32, #tpu.memory_space<vmem>>, vector<64x4xf32>,
      %cst_13 = arith.constant 0.000000e+00 : f32
      %20 = vector.broadcast %cst_13 : f32 to vector<64x4xf32>
      %c0_14 = arith.constant 0 : index
      %c0_15 = arith.constant 0 : index
      %21 = vector.load %arg10[%c0_14, %c0_15] : memref<64x4xf32, #tpu.memory_space<vmem>>, vector<64x4xf32>
      tpu.vector_store %arg10[%c0_14, %c0_15], %20 {strides = array<i32>} : memref<64x4xf32, #tpu.memory_space<vmem>>, vector<64x4xf32>,
      %cst_16 = arith.constant 0.000000e+00 : f32
      %22 = vector.broadcast %cst_16 : f32 to vector<64x128xf32>
      %c0_17 = arith.constant 0 : index
      %c0_18 = arith.constant 0 : index
      %23 = vector.load %arg11[%c0_17, %c0_18] : memref<64x128xf32, #tpu.memory_space<vmem>>, vector<64x128xf32>
      tpu.vector_store %arg11[%c0_17, %c0_18], %22 {strides = array<i32>} : memref<64x128xf32, #tpu.memory_space<vmem>>, vector<64x128xf32>,
    } else {
    }
    %c64_i32 = arith.constant 64 : i32
    %3 = arith.muli %arg1, %c64_i32 : i32
    %c64_i32_1 = arith.constant 64 : i32
    %4 = arith.muli %arg0, %c64_i32_1 : i32
    %c63_i32 = arith.constant 63 : i32
    %5 = arith.addi %4, %c63_i32 : i32
    %6 = arith.cmpi sle, %3, %5 : i32
    %7 = arith.extui %6 : i1 to i32
    %c0_i32_2 = arith.constant 0 : i32
    %8 = arith.cmpi ne, %7, %c0_i32_2 : i32
    scf.if %8 {
      %c0 = arith.constant 0 : index
      %c0_4 = arith.constant 0 : index
      %12 = vector.load %arg3[%c0, %c0_4] : memref<64x32xf32, #tpu.memory_space<vmem>>, vector<64x32xf32>
      %c0_5 = arith.constant 0 : index
      %c0_6 = arith.constant 0 : index
      %13 = vector.load %arg5[%c0_5, %c0_6] : memref<32x192xf32, #tpu.memory_space<vmem>>, vector<32x192xf32>
      %cst = arith.constant dense<0.000000e+00> : vector<64x192xf32>
      %14 = tpu.matmul %12, %13, %cst {dimension_numbers = #tpu.dot_dimension_numbers<[1], [0], [0], [1], [0, 0, 1, 1], [], []>} : vector<64x32xf32>, vector<32x192xf32>, vector<64x192xf32> -> vector<64x192xf32>
      %15 = vector.extract_strided_slice %14 {offsets = [0, 0], sizes = [64, 64], strides = [1, 1]} : vector<64x192xf32> to vector<64x64xf32>
      %16 = vector.extract_strided_slice %14 {offsets = [0, 64], sizes = [64, 128], strides = [1, 1]} : vector<64x192xf32> to vector<64x128xf32>
      %c64_i32_7 = arith.constant 64 : i32
      %17 = arith.muli %arg0, %c64_i32_7 : i32
      %18 = tpu.iota {dimensions = array<i32: 0>} : vector<64x64xi32>
      %19 = vector.broadcast %17 : i32 to vector<64x64xi32>
      %20 = arith.addi %19, %18 : vector<64x64xi32>
      %c64_i32_8 = arith.constant 64 : i32
      %21 = arith.muli %arg1, %c64_i32_8 : i32
      %22 = tpu.iota {dimensions = array<i32: 1>} : vector<64x64xi32>
      %23 = vector.broadcast %21 : i32 to vector<64x64xi32>
      %24 = arith.addi %23, %22 : vector<64x64xi32>
      %25 = arith.cmpi sgt, %24, %20 : vector<64x64xi32>
      %cst_9 = arith.constant -1.000000e+30 : f32
      %cst_10 = arith.constant 0.000000e+00 : f32
      %26 = vector.broadcast %cst_9 : f32 to vector<64x64xf32>
      %27 = vector.broadcast %cst_10 : f32 to vector<64x64xf32>
      %28 = arith.select %25, %26, %27 : vector<64x64xi1>, vector<64x64xf32>
      %c0_11 = arith.constant 0 : index
      %c0_12 = arith.constant 0 : index
      %29 = vector.load %arg8[%c0_11, %c0_12] : memref<64x64xf32, #tpu.memory_space<vmem>>, vector<64x64xf32>
      %c0_13 = arith.constant 0 : index
      %c0_14 = arith.constant 0 : index
      %30 = vector.load %arg9[%c0_13, %c0_14] : memref<64x4xf32, #tpu.memory_space<vmem>>, vector<64x4xf32>
      %c0_15 = arith.constant 0 : index
      %c0_16 = arith.constant 0 : index
      %31 = vector.load %arg10[%c0_15, %c0_16] : memref<64x4xf32, #tpu.memory_space<vmem>>, vector<64x4xf32>
      %c0_17 = arith.constant 0 : index
      %c0_18 = arith.constant 0 : index
      %32 = vector.load %arg11[%c0_17, %c0_18] : memref<64x128xf32, #tpu.memory_space<vmem>>, vector<64x128xf32>
      %33 = vector.extract_strided_slice %29 {offsets = [0, 0], sizes = [64, 16], strides = [1, 1]} : vector<64x64xf32> to vector<64x16xf32>
      %34 = vector.extract_strided_slice %15 {offsets = [0, 0], sizes = [64, 16], strides = [1, 1]} : vector<64x64xf32> to vector<64x16xf32>
      %35 = vector.extract_strided_slice %16 {offsets = [0, 0], sizes = [64, 32], strides = [1, 1]} : vector<64x128xf32> to vector<64x32xf32>
      %cst_19 = arith.constant dense<0.000000e+00> : vector<64x64xf32>
      %36 = tpu.matmul %33, %34, %cst_19 {dimension_numbers = #tpu.dot_dimension_numbers<[1], [1], [0], [0], [0, 0, 1, 0], [], []>} : vector<64x16xf32>, vector<64x16xf32>, vector<64x64xf32> -> vector<64x64xf32>
      %37 = arith.addf %36, %28 : vector<64x64xf32>
      %38 = vector.extract_strided_slice %30 {offsets = [0, 0], sizes = [64, 1], strides = [1, 1]} : vector<64x4xf32> to vector<64x1xf32>
      %cst_20 = arith.constant dense<0xFF800000> : vector<64xf32>
      %39 = vector.multi_reduction <maximumf>, %37, %cst_20 [1] : vector<64x64xf32> to vector<64xf32>
      %40 = vector.shape_cast %39 : vector<64xf32> to vector<64x1xf32>
      %41 = arith.maximumf %38, %40 : vector<64x1xf32>
      %42 = arith.subf %38, %41 : vector<64x1xf32>
      %43 = math.exp %42 : vector<64x1xf32>
      %44 = vector.broadcast %41 : vector<64x1xf32> to vector<64x64xf32>
      %45 = arith.subf %37, %44 : vector<64x64xf32>
      %46 = math.exp %45 : vector<64x64xf32>
      %47 = vector.extract_strided_slice %31 {offsets = [0, 0], sizes = [64, 1], strides = [1, 1]} : vector<64x4xf32> to vector<64x1xf32>
      %48 = arith.mulf %43, %47 : vector<64x1xf32>
      %cst_21 = arith.constant dense<0.000000e+00> : vector<64xf32>
      %49 = vector.multi_reduction <add>, %46, %cst_21 [1] : vector<64x64xf32> to vector<64xf32>
      %50 = vector.shape_cast %49 : vector<64xf32> to vector<64x1xf32>
      %51 = arith.addf %48, %50 : vector<64x1xf32>
      %52 = vector.extract_strided_slice %32 {offsets = [0, 0], sizes = [64, 32], strides = [1, 1]} : vector<64x128xf32> to vector<64x32xf32>
      %53 = vector.broadcast %43 : vector<64x1xf32> to vector<64x32xf32>
      %54 = arith.mulf %53, %52 : vector<64x32xf32>
      %cst_22 = arith.constant dense<0.000000e+00> : vector<64x32xf32>
      %55 = tpu.matmul %46, %35, %cst_22 {dimension_numbers = #tpu.dot_dimension_numbers<[1], [0], [0], [1], [0, 0, 1, 1], [], []>} : vector<64x64xf32>, vector<64x32xf32>, vector<64x32xf32> -> vector<64x32xf32>
      %56 = arith.addf %54, %55 : vector<64x32xf32>
      %57 = vector.extract_strided_slice %29 {offsets = [0, 16], sizes = [64, 16], strides = [1, 1]} : vector<64x64xf32> to vector<64x16xf32>
      %58 = vector.extract_strided_slice %15 {offsets = [0, 16], sizes = [64, 16], strides = [1, 1]} : vector<64x64xf32> to vector<64x16xf32>
      %59 = vector.extract_strided_slice %16 {offsets = [0, 32], sizes = [64, 32], strides = [1, 1]} : vector<64x128xf32> to vector<64x32xf32>
      %cst_23 = arith.constant dense<0.000000e+00> : vector<64x64xf32>
      %60 = tpu.matmul %57, %58, %cst_23 {dimension_numbers = #tpu.dot_dimension_numbers<[1], [1], [0], [0], [0, 0, 1, 0], [], []>} : vector<64x16xf32>, vector<64x16xf32>, vector<64x64xf32> -> vector<64x64xf32>
      %61 = arith.addf %60, %28 : vector<64x64xf32>
      %62 = vector.extract_strided_slice %30 {offsets = [0, 1], sizes = [64, 1], strides = [1, 1]} : vector<64x4xf32> to vector<64x1xf32>
      %cst_24 = arith.constant dense<0xFF800000> : vector<64xf32>
      %63 = vector.multi_reduction <maximumf>, %61, %cst_24 [1] : vector<64x64xf32> to vector<64xf32>
      %64 = vector.shape_cast %63 : vector<64xf32> to vector<64x1xf32>
      %65 = arith.maximumf %62, %64 : vector<64x1xf32>
      %66 = arith.subf %62, %65 : vector<64x1xf32>
      %67 = math.exp %66 : vector<64x1xf32>
      %68 = vector.broadcast %65 : vector<64x1xf32> to vector<64x64xf32>
      %69 = arith.subf %61, %68 : vector<64x64xf32>
      %70 = math.exp %69 : vector<64x64xf32>
      %71 = vector.extract_strided_slice %31 {offsets = [0, 1], sizes = [64, 1], strides = [1, 1]} : vector<64x4xf32> to vector<64x1xf32>
      %72 = arith.mulf %67, %71 : vector<64x1xf32>
      %cst_25 = arith.constant dense<0.000000e+00> : vector<64xf32>
      %73 = vector.multi_reduction <add>, %70, %cst_25 [1] : vector<64x64xf32> to vector<64xf32>
      %74 = vector.shape_cast %73 : vector<64xf32> to vector<64x1xf32>
      %75 = arith.addf %72, %74 : vector<64x1xf32>
      %76 = vector.extract_strided_slice %32 {offsets = [0, 32], sizes = [64, 32], strides = [1, 1]} : vector<64x128xf32> to vector<64x32xf32>
      %77 = vector.broadcast %67 : vector<64x1xf32> to vector<64x32xf32>
      %78 = arith.mulf %77, %76 : vector<64x32xf32>
      %cst_26 = arith.constant dense<0.000000e+00> : vector<64x32xf32>
      %79 = tpu.matmul %70, %59, %cst_26 {dimension_numbers = #tpu.dot_dimension_numbers<[1], [0], [0], [1], [0, 0, 1, 1], [], []>} : vector<64x64xf32>, vector<64x32xf32>, vector<64x32xf32> -> vector<64x32xf32>
      %80 = arith.addf %78, %79 : vector<64x32xf32>
      %81 = vector.extract_strided_slice %29 {offsets = [0, 32], sizes = [64, 16], strides = [1, 1]} : vector<64x64xf32> to vector<64x16xf32>
      %82 = vector.extract_strided_slice %15 {offsets = [0, 32], sizes = [64, 16], strides = [1, 1]} : vector<64x64xf32> to vector<64x16xf32>
      %83 = vector.extract_strided_slice %16 {offsets = [0, 64], sizes = [64, 32], strides = [1, 1]} : vector<64x128xf32> to vector<64x32xf32>
      %cst_27 = arith.constant dense<0.000000e+00> : vector<64x64xf32>
      %84 = tpu.matmul %81, %82, %cst_27 {dimension_numbers = #tpu.dot_dimension_numbers<[1], [1], [0], [0], [0, 0, 1, 0], [], []>} : vector<64x16xf32>, vector<64x16xf32>, vector<64x64xf32> -> vector<64x64xf32>
      %85 = arith.addf %84, %28 : vector<64x64xf32>
      %86 = vector.extract_strided_slice %30 {offsets = [0, 2], sizes = [64, 1], strides = [1, 1]} : vector<64x4xf32> to vector<64x1xf32>
      %cst_28 = arith.constant dense<0xFF800000> : vector<64xf32>
      %87 = vector.multi_reduction <maximumf>, %85, %cst_28 [1] : vector<64x64xf32> to vector<64xf32>
      %88 = vector.shape_cast %87 : vector<64xf32> to vector<64x1xf32>
      %89 = arith.maximumf %86, %88 : vector<64x1xf32>
      %90 = arith.subf %86, %89 : vector<64x1xf32>
      %91 = math.exp %90 : vector<64x1xf32>
      %92 = vector.broadcast %89 : vector<64x1xf32> to vector<64x64xf32>
      %93 = arith.subf %85, %92 : vector<64x64xf32>
      %94 = math.exp %93 : vector<64x64xf32>
      %95 = vector.extract_strided_slice %31 {offsets = [0, 2], sizes = [64, 1], strides = [1, 1]} : vector<64x4xf32> to vector<64x1xf32>
      %96 = arith.mulf %91, %95 : vector<64x1xf32>
      %cst_29 = arith.constant dense<0.000000e+00> : vector<64xf32>
      %97 = vector.multi_reduction <add>, %94, %cst_29 [1] : vector<64x64xf32> to vector<64xf32>
      %98 = vector.shape_cast %97 : vector<64xf32> to vector<64x1xf32>
      %99 = arith.addf %96, %98 : vector<64x1xf32>
      %100 = vector.extract_strided_slice %32 {offsets = [0, 64], sizes = [64, 32], strides = [1, 1]} : vector<64x128xf32> to vector<64x32xf32>
      %101 = vector.broadcast %91 : vector<64x1xf32> to vector<64x32xf32>
      %102 = arith.mulf %101, %100 : vector<64x32xf32>
      %cst_30 = arith.constant dense<0.000000e+00> : vector<64x32xf32>
      %103 = tpu.matmul %94, %83, %cst_30 {dimension_numbers = #tpu.dot_dimension_numbers<[1], [0], [0], [1], [0, 0, 1, 1], [], []>} : vector<64x64xf32>, vector<64x32xf32>, vector<64x32xf32> -> vector<64x32xf32>
      %104 = arith.addf %102, %103 : vector<64x32xf32>
      %105 = vector.extract_strided_slice %29 {offsets = [0, 48], sizes = [64, 16], strides = [1, 1]} : vector<64x64xf32> to vector<64x16xf32>
      %106 = vector.extract_strided_slice %15 {offsets = [0, 48], sizes = [64, 16], strides = [1, 1]} : vector<64x64xf32> to vector<64x16xf32>
      %107 = vector.extract_strided_slice %16 {offsets = [0, 96], sizes = [64, 32], strides = [1, 1]} : vector<64x128xf32> to vector<64x32xf32>
      %cst_31 = arith.constant dense<0.000000e+00> : vector<64x64xf32>
      %108 = tpu.matmul %105, %106, %cst_31 {dimension_numbers = #tpu.dot_dimension_numbers<[1], [1], [0], [0], [0, 0, 1, 0], [], []>} : vector<64x16xf32>, vector<64x16xf32>, vector<64x64xf32> -> vector<64x64xf32>
      %109 = arith.addf %108, %28 : vector<64x64xf32>
      %110 = vector.extract_strided_slice %30 {offsets = [0, 3], sizes = [64, 1], strides = [1, 1]} : vector<64x4xf32> to vector<64x1xf32>
      %cst_32 = arith.constant dense<0xFF800000> : vector<64xf32>
      %111 = vector.multi_reduction <maximumf>, %109, %cst_32 [1] : vector<64x64xf32> to vector<64xf32>
      %112 = vector.shape_cast %111 : vector<64xf32> to vector<64x1xf32>
      %113 = arith.maximumf %110, %112 : vector<64x1xf32>
      %114 = arith.subf %110, %113 : vector<64x1xf32>
      %115 = math.exp %114 : vector<64x1xf32>
      %116 = vector.broadcast %113 : vector<64x1xf32> to vector<64x64xf32>
      %117 = arith.subf %109, %116 : vector<64x64xf32>
      %118 = math.exp %117 : vector<64x64xf32>
      %119 = vector.extract_strided_slice %31 {offsets = [0, 3], sizes = [64, 1], strides = [1, 1]} : vector<64x4xf32> to vector<64x1xf32>
      %120 = arith.mulf %115, %119 : vector<64x1xf32>
      %cst_33 = arith.constant dense<0.000000e+00> : vector<64xf32>
      %121 = vector.multi_reduction <add>, %118, %cst_33 [1] : vector<64x64xf32> to vector<64xf32>
      %122 = vector.shape_cast %121 : vector<64xf32> to vector<64x1xf32>
      %123 = arith.addf %120, %122 : vector<64x1xf32>
      %124 = vector.extract_strided_slice %32 {offsets = [0, 96], sizes = [64, 32], strides = [1, 1]} : vector<64x128xf32> to vector<64x32xf32>
      %125 = vector.broadcast %115 : vector<64x1xf32> to vector<64x32xf32>
      %126 = arith.mulf %125, %124 : vector<64x32xf32>
      %cst_34 = arith.constant dense<0.000000e+00> : vector<64x32xf32>
      %127 = tpu.matmul %118, %107, %cst_34 {dimension_numbers = #tpu.dot_dimension_numbers<[1], [0], [0], [1], [0, 0, 1, 1], [], []>} : vector<64x64xf32>, vector<64x32xf32>, vector<64x32xf32> -> vector<64x32xf32>
      %128 = arith.addf %126, %127 : vector<64x32xf32>
      %129 = tpu.concatenate %41, %65, %89, %113 in 1 : vector<64x1xf32>, vector<64x1xf32>, vector<64x1xf32>, vector<64x1xf32> -> vector<64x4xf32>
      %c0_35 = arith.constant 0 : index
      %c0_36 = arith.constant 0 : index
      %130 = vector.load %arg9[%c0_35, %c0_36] : memref<64x4xf32, #tpu.memory_space<vmem>>, vector<64x4xf32>
      tpu.vector_store %arg9[%c0_35, %c0_36], %129 {strides = array<i32>} : memref<64x4xf32, #tpu.memory_space<vmem>>, vector<64x4xf32>,
      %131 = tpu.concatenate %51, %75, %99, %123 in 1 : vector<64x1xf32>, vector<64x1xf32>, vector<64x1xf32>, vector<64x1xf32> -> vector<64x4xf32>
      %c0_37 = arith.constant 0 : index
      %c0_38 = arith.constant 0 : index
      %132 = vector.load %arg10[%c0_37, %c0_38] : memref<64x4xf32, #tpu.memory_space<vmem>>, vector<64x4xf32>
      tpu.vector_store %arg10[%c0_37, %c0_38], %131 {strides = array<i32>} : memref<64x4xf32, #tpu.memory_space<vmem>>, vector<64x4xf32>,
      %133 = tpu.concatenate %56, %80, %104, %128 in 1 : vector<64x32xf32>, vector<64x32xf32>, vector<64x32xf32>, vector<64x32xf32> -> vector<64x128xf32>
      %c0_39 = arith.constant 0 : index
      %c0_40 = arith.constant 0 : index
      %134 = vector.load %arg11[%c0_39, %c0_40] : memref<64x128xf32, #tpu.memory_space<vmem>>, vector<64x128xf32>
      tpu.vector_store %arg11[%c0_39, %c0_40], %133 {strides = array<i32>} : memref<64x128xf32, #tpu.memory_space<vmem>>, vector<64x128xf32>,
    } else {
    }
    %c1_i32 = arith.constant 1 : i32
    %9 = arith.cmpi eq, %arg1, %c1_i32 : i32
    %10 = arith.extui %9 : i1 to i32
    %c0_i32_3 = arith.constant 0 : i32
    %11 = arith.cmpi ne, %10, %c0_i32_3 : i32
    scf.if %11 {
      %c0 = arith.constant 0 : index
      %c0_4 = arith.constant 0 : index
      %12 = vector.load %arg10[%c0, %c0_4] : memref<64x4xf32, #tpu.memory_space<vmem>>, vector<64x4xf32>
      %13 = tpu.reciprocal %12 {approx = true} : vector<64x4xf32> -> vector<64x4xf32>
      %c0_5 = arith.constant 0 : index
      %c0_6 = arith.constant 0 : index
      %14 = vector.load %arg11[%c0_5, %c0_6] : memref<64x128xf32, #tpu.memory_space<vmem>>, vector<64x128xf32>
      %15 = vector.extract_strided_slice %14 {offsets = [0, 0], sizes = [64, 32], strides = [1, 1]} : vector<64x128xf32> to vector<64x32xf32>
      %16 = vector.extract_strided_slice %13 {offsets = [0, 0], sizes = [64, 1], strides = [1, 1]} : vector<64x4xf32> to vector<64x1xf32>
      %17 = vector.broadcast %16 : vector<64x1xf32> to vector<64x32xf32>
      %18 = arith.mulf %15, %17 : vector<64x32xf32>
      %19 = vector.extract_strided_slice %14 {offsets = [0, 32], sizes = [64, 32], strides = [1, 1]} : vector<64x128xf32> to vector<64x32xf32>
      %20 = vector.extract_strided_slice %13 {offsets = [0, 1], sizes = [64, 1], strides = [1, 1]} : vector<64x4xf32> to vector<64x1xf32>
      %21 = vector.broadcast %20 : vector<64x1xf32> to vector<64x32xf32>
      %22 = arith.mulf %19, %21 : vector<64x32xf32>
      %23 = vector.extract_strided_slice %14 {offsets = [0, 64], sizes = [64, 32], strides = [1, 1]} : vector<64x128xf32> to vector<64x32xf32>
      %24 = vector.extract_strided_slice %13 {offsets = [0, 2], sizes = [64, 1], strides = [1, 1]} : vector<64x4xf32> to vector<64x1xf32>
      %25 = vector.broadcast %24 : vector<64x1xf32> to vector<64x32xf32>
      %26 = arith.mulf %23, %25 : vector<64x32xf32>
      %27 = vector.extract_strided_slice %14 {offsets = [0, 96], sizes = [64, 32], strides = [1, 1]} : vector<64x128xf32> to vector<64x32xf32>
      %28 = vector.extract_strided_slice %13 {offsets = [0, 3], sizes = [64, 1], strides = [1, 1]} : vector<64x4xf32> to vector<64x1xf32>
      %29 = vector.broadcast %28 : vector<64x1xf32> to vector<64x32xf32>
      %30 = arith.mulf %27, %29 : vector<64x32xf32>
      %31 = tpu.concatenate %18, %22, %26, %30 in 1 : vector<64x32xf32>, vector<64x32xf32>, vector<64x32xf32>, vector<64x32xf32> -> vector<64x128xf32>
      %c0_7 = arith.constant 0 : index
      %c0_8 = arith.constant 0 : index
      %32 = vector.load %arg6[%c0_7, %c0_8] : memref<128x32xf32, #tpu.memory_space<vmem>>, vector<128x32xf32>
      %cst = arith.constant dense<0.000000e+00> : vector<64x32xf32>
      %33 = tpu.matmul %31, %32, %cst {dimension_numbers = #tpu.dot_dimension_numbers<[1], [0], [0], [1], [0, 0, 1, 1], [], []>} : vector<64x128xf32>, vector<128x32xf32>, vector<64x32xf32> -> vector<64x32xf32>
      %c0_9 = arith.constant 0 : index
      %c0_10 = arith.constant 0 : index
      %34 = vector.load %arg7[%c0_9, %c0_10] : memref<64x32xf32, #tpu.memory_space<vmem>>, vector<64x32xf32>
      tpu.vector_store %arg7[%c0_9, %c0_10], %33 {strides = array<i32>} : memref<64x32xf32, #tpu.memory_space<vmem>>, vector<64x32xf32>,
    } else {
    }
    return
  }
  func.func @transform_0(%arg0: i32, %arg1: i32) -> (i32, i32) {
    %c0_i32 = arith.constant 0 : i32
    %c0_i32_0 = arith.constant 0 : i32
    return %arg0, %c0_i32 : i32, i32
  }
  func.func @transform_1(%arg0: i32, %arg1: i32) -> (i32, i32) {
    %c0_i32 = arith.constant 0 : i32
    %c0_i32_0 = arith.constant 0 : i32
    return %arg1, %c0_i32 : i32, i32
  }
  func.func @transform_2(%arg0: i32, %arg1: i32) -> (i32, i32) {
    %c0_i32 = arith.constant 0 : i32
    %c0_i32_0 = arith.constant 0 : i32
    %c0_i32_1 = arith.constant 0 : i32
    return %c0_i32, %c0_i32_0 : i32, i32
  }
  func.func @transform_3(%arg0: i32, %arg1: i32) -> (i32, i32) {
    %c0_i32 = arith.constant 0 : i32
    %c0_i32_0 = arith.constant 0 : i32
    %c0_i32_1 = arith.constant 0 : i32
    return %c0_i32, %c0_i32_0 : i32, i32
  }
  func.func @transform_4(%arg0: i32, %arg1: i32) -> (i32, i32) {
    %c0_i32 = arith.constant 0 : i32
    %c0_i32_0 = arith.constant 0 : i32
    %c0_i32_1 = arith.constant 0 : i32
    return %c0_i32, %c0_i32_0 : i32, i32
  }
  func.func @transform_5(%arg0: i32, %arg1: i32) -> (i32, i32) {
    %c0_i32 = arith.constant 0 : i32
    %c0_i32_0 = arith.constant 0 : i32
    return %arg0, %c0_i32 : i32, i32
  }
}

</mosaic_0001>

<bundles_post_ra>
// kernel: tpu_custom_call.1
= control target key start
LH: loop header
LB: loop body
LE: loop exit
PB: predicated region body
PF: predicated region fallthrough
CT: control target
= control target key end

     0   :  { %s4387_s18 = smov 0   ;;  %s4389_s19 = smov 0   ;;  %s6267_s0 = inlined_call_operand.vmem [shape: f32[128,32], index: 0, kind: input, shape index: {}]   ;;  %s6268_s1 = inlined_call_operand.vmem [shape: f32[128,32], index: 1, kind: input, shape index: {}]   ;;  %s6269_s2 = inlined_call_operand.vmem [shape: f32[32,64], index: 2, kind: input, shape index: {}]   ;;  %s6270_s3 = inlined_call_operand.vmem [shape: f32[32,192], index: 3, kind: input, shape index: {}]   ;;  %s6271_s4 = inlined_call_operand.vmem [shape: f32[128,32], index: 4, kind: input, shape index: {}]   ;;  %s6272_s5 = inlined_call_operand.vmem [shape: f32[128,32], index: 5, kind: output, shape index: {}]  }
   0x1   :  { %s4391_s20 = smov 0   ;;  %s4393_s21 = smov 0  }
   0x2   :  { %s4395_s22 = smov 0  }
   0x3 LB: > { %s24_s23 = sadd.s32 1, %s4331_s20  ;;  %s27_s24 = sadd.s32 1, %s4335_s21  ;;  %s4339_s22 = sphi %s4395_s22, %s15_s22   ;;  %s4335_s21 = sphi %s4393_s21, %s6519_s21   ;;  %s4331_s20 = sphi %s4391_s20, %s6518_s20   ;;  %s4327_s19 = sphi %s4389_s19, %s6517_s19   ;;  %s4323_s18 = sphi %s4387_s18, %s6516_s18  }
   0x4   : > { %p25_p0 = scmp.ge.s32.totalorder %s24_s23, 2  ;;  %p3436_p1 = scmp.ge.s32.totalorder %s4339_s22, 1 }
   0x5   : > { %p211_p2 = scmp.lt.s32.totalorder %s4339_s22, 5 }
   0x6   : > { %s6521_s23 = smov (%p25_p0, %s24_s23), 0  ;;  %s6523_s24 = smov (!%p25_p0, %s27_s24), %s4335_s21 }
   0x7   : > { %p212_p3 = pnand %p3436_p1, %p211_p2  ;;  %p29_p4 = scmp.ge.s32.totalorder %s6523_s24, 2 }
   0x8   : > { %s3437_s25 = sshll.u32 (!%p212_p3), %s4327_s19, 3  ;;  %s3439_s26 = sshll.u32 (!%p212_p3), %s4323_s18, 3 }
   0x9   : > { %s6525_s24 = smov (%p29_p4, %s6523_s24), 0  ;;  %215 = sbr.rel (%p212_p3) target bundleno = 2932 (0xb74), region = 40 }
   0xa   : > { %p245_p5 = scmp.lt.s32.totalorder (!%p212_p3), %s3437_s25, 15  ;;  %p251_p6 = scmp.lt.s32.totalorder (!%p212_p3), %s3439_s26, 15 }
   0xb   : > { %p3443_p7 = scmp.ne.s32.totalorder (!%p212_p3), %s4323_s18, 0 }
   0xe   : > { %s6527_s25 = smov (!%p245_p5, %s3437_s25), 15  ;;  %s6529_s26 = smov (!%p251_p6, %s3439_s26), 15 }
   0xf   : > { %s3438_s27 = sshll.u32 %s6527_s25, 3  ;;  %s3440_s6 = sshll.u32 %s6529_s26, 3 }
  0x10   : > { %s4426_s30 = scalar_lea.vmem %s6267_s0, %s3438_s27  ;;  %s4431_s9 = scalar_lea.vmem %s6268_s1, %s3440_s6 }
  0x11   : > { %s4436_s12 = scalar_lea.vmem %s6272_s5, %s3438_s27  ;;  %265 = sbr.rel (%p3443_p7) target bundleno = 234 (0xea), region = 44 }
  0x16   : > { %v277_v0 = vld [vmem:[%s6269_s2 + $0x18] sm:$0xff]  ;;  %v276_v1 = vld [vmem:[%s6269_s2 + $0x10] sm:$0xff]  ;;  %v275_v2 = vld [vmem:[%s6269_s2 + $0x8] sm:$0xff]  ;;  %vm278_vm0 = vcmask 261120   ;;  %vm425_vm1 = vcmask 31744   ;;  %v4342_v13 = vmov 0.0  }
  0x17   : > { %3726 = vmatprep.subr.mxu0 %v277_v0  ;;  %4014 = vmatprep.subr.mxu1 %v277_v0  ;;  %v274_v3 = vld [vmem:[%s6269_s2] sm:$0xff]  ;;  %v267_v6 = vld [vmem:[%s4426_s30 + $0x8] sm:$0xff]  ;;  %v268_v8 = vld [vmem:[%s4426_s30 + $0x10] sm:$0xff]  ;;  %v4341_v12 = vmov -1e+30   ;;  %434 = vst.msk [vmem:[#allocation4] sm:$0xff] %vm425_vm1, %v4342_v13 }
  0x18   : > { %3727 = vmatpush3.msra.mxu0 %v277_v0  ;;  %4018 = vmatpush3.msra.mxu1 %v277_v0  ;;  %v266_v4 = vld [vmem:[%s4426_s30] sm:$0xff]  ;;  %v271_v7 = vld [vmem:[%s4426_s30 + $0x28] sm:$0xff]  ;;  %v272_v9 = vld [vmem:[%s4426_s30 + $0x30] sm:$0xff]  ;;  %426 = vst.msk [vmem:[#allocation3] sm:$0xff] %vm425_vm1, %v4341_v12  ;;  %vm416_vm2 = vcmask 523264  }
  0x19   : > { %3728 = vmatprep.subr.mxu0 %v276_v1  ;;  %4015 = vmatprep.subr.mxu1 %v276_v1  ;;  %v270_v5 = vld [vmem:[%s4426_s30 + $0x20] sm:$0xff]  ;;  %v269_v10 = vld [vmem:[%s4426_s30 + $0x18] sm:$0xff]  ;;  %427 = vst.msk [vmem:[#allocation3 + $0x8] sm:$0xff] %vm425_vm1, %v4341_v12  ;;  %428 = vst.msk [vmem:[#allocation3 + $0x10] sm:$0xff] %vm425_vm1, %v4341_v12 }
  0x1a   : > { %3729 = vmatpush3.msra.mxu0 %v276_v1  ;;  %4019 = vmatpush3.msra.mxu1 %v276_v1  ;;  %v273_v11 = vld [vmem:[%s4426_s30 + $0x38] sm:$0xff]  ;;  %429 = vst.msk [vmem:[#allocation3 + $0x18] sm:$0xff] %vm425_vm1, %v4341_v12  ;;  %430 = vst.msk [vmem:[#allocation3 + $0x20] sm:$0xff] %vm425_vm1, %v4341_v12 }
  0x1b   : > { %3730 = vmatprep.subr.mxu0 %v275_v2  ;;  %4016 = vmatprep.subr.mxu1 %v275_v2  ;;  %431 = vst.msk [vmem:[#allocation3 + $0x28] sm:$0xff] %vm425_vm1, %v4341_v12  ;;  %432 = vst.msk [vmem:[#allocation3 + $0x30] sm:$0xff] %vm425_vm1, %v4341_v12 }
  0x1c   : > { %3731 = vmatpush3.msra.mxu0 %v275_v2  ;;  %4020 = vmatpush3.msra.mxu1 %v275_v2  ;;  %433 = vst.msk [vmem:[#allocation3 + $0x38] sm:$0xff] %vm425_vm1, %v4341_v12  ;;  %435 = vst.msk [vmem:[#allocation4 + $0x8] sm:$0xff] %vm425_vm1, %v4342_v13 }
  0x1d   : > { %3732 = vmatprep.subr.mxu0 %v274_v3  ;;  %4017 = vmatprep.subr.mxu1 %v274_v3  ;;  %436 = vst.msk [vmem:[#allocation4 + $0x10] sm:$0xff] %vm425_vm1, %v4342_v13  ;;  %437 = vst.msk [vmem:[#allocation4 + $0x18] sm:$0xff] %vm425_vm1, %v4342_v13 }
  0x1e   : > { %3733 = vmatpush3.msra.mxu0 %v274_v3  ;;  %4021 = vmatpush3.msra.mxu1 %v274_v3  ;;  %438 = vst.msk [vmem:[#allocation4 + $0x20] sm:$0xff] %vm425_vm1, %v4342_v13  ;;  %439 = vst.msk [vmem:[#allocation4 + $0x28] sm:$0xff] %vm425_vm1, %v4342_v13 }
  0x1f   : > { %3734 = vmatprep.mubr.msk.f32.mxu0 %vm278_vm0, %v266_v4  ;;  %3740 = vmatprep.mubr.msk.f32.mxu1 %vm278_vm0, %v270_v5  ;;  %440 = vst.msk [vmem:[#allocation4 + $0x30] sm:$0xff] %vm425_vm1, %v4342_v13  ;;  %441 = vst.msk [vmem:[#allocation4 + $0x38] sm:$0xff] %vm425_vm1, %v4342_v13 }
  0x20   : > { %3735 = vmatmul.mubr.msk.f32.vlgmr.msra.gmra.mxu0 %vm278_vm0, %v267_v6  ;;  %3741 = vmatmul.mubr.msk.f32.vlgmr.msra.gmra.mxu1 %vm278_vm0, %v271_v7  ;;  %442 = vst [vmem:[#allocation5 + $0x30] sm:$0xff] %v4342_v13  ;;  %443 = vst [vmem:[#allocation5] sm:$0xff] %v4342_v13 }
  0x21   : > { %3737 = vmatprep.mubr.msk.f32.mxu0 %vm278_vm0, %v268_v8  ;;  %3743 = vmatprep.mubr.msk.f32.mxu1 %vm278_vm0, %v272_v9  ;;  %444 = vst [vmem:[#allocation5 + $0x18] sm:$0xff] %v4342_v13  ;;  %445 = vst [vmem:[#allocation5 + $0x10] sm:$0xff] %v4342_v13 }
  0x22   : > { %446 = vst [vmem:[#allocation5 + $0x8] sm:$0xff] %v4342_v13  ;;  %447 = vst [vmem:[#allocation5 + $0x20] sm:$0xff] %v4342_v13 }
  0x23   : > { %448 = vst [vmem:[#allocation5 + $0x28] sm:$0xff] %v4342_v13  ;;  %449 = vst [vmem:[#allocation5 + $0x38] sm:$0xff] %v4342_v13 }
  0x24   : > { %3738 = vmatmul.mubr.msk.f32.gmra.mxu0 %vm278_vm0, %v269_v10  ;;  %3744 = vmatmul.mubr.msk.f32.gmra.mxu1 %vm278_vm0, %v273_v11 }
  0xe0   : > { %v3736_v14 = vpop.f32.mrf.mxu0  ;;  %v3742_v15 = vpop.f32.mrf.mxu1 }
  0xe1   : > { %v409_v16 = vmul.f32 0.25, %v3736_v14  ;;  %v413_v17 = vmul.f32 0.25, %v3742_v15 }
  0xe2   : > { %v369_v18 = vpop.f32.mrf.mxu0  ;;  %v389_v19 = vpop.f32.mrf.mxu1 }
  0xe3   : > { %418 = vst.msk [vmem:[#allocation2 + $0x8] sm:$0xff] %vm416_vm2, %v409_v16  ;;  %422 = vst.msk [vmem:[#allocation2 + $0x28] sm:$0xff] %vm416_vm2, %v413_v17  ;;  %v408_v20 = vmul.f32 0.25, %v369_v18  ;;  %v412_v21 = vmul.f32 0.25, %v389_v19 }
  0xe4   : > { %v3739_v22 = vpop.f32.mrf.mxu0  ;;  %v3745_v23 = vpop.f32.mrf.mxu1 }
  0xe5   : > { %417 = vst.msk [vmem:[#allocation2] sm:$0xff] %vm416_vm2, %v408_v20  ;;  %421 = vst.msk [vmem:[#allocation2 + $0x20] sm:$0xff] %vm416_vm2, %v412_v21  ;;  %v411_v24 = vmul.f32 0.25, %v3739_v22  ;;  %v415_v25 = vmul.f32 0.25, %v3745_v23 }
  0xe6   : > { %v379_v26 = vpop.f32.mrf.mxu0  ;;  %v399_v27 = vpop.f32.mrf.mxu1 }
  0xe7   : > { %420 = vst.msk [vmem:[#allocation2 + $0x18] sm:$0xff] %vm416_vm2, %v411_v24  ;;  %424 = vst.msk [vmem:[#allocation2 + $0x38] sm:$0xff] %vm416_vm2, %v415_v25  ;;  %v410_v28 = vmul.f32 0.25, %v379_v26  ;;  %v414_v29 = vmul.f32 0.25, %v399_v27 }
  0xe9   : > { %419 = vst.msk [vmem:[#allocation2 + $0x10] sm:$0xff] %vm416_vm2, %v410_v28  ;;  %423 = vst.msk [vmem:[#allocation2 + $0x30] sm:$0xff] %vm416_vm2, %v414_v29 }
  0xea PF: > { %s3452_s28 = sshll.u32 %s4323_s18, 6  ;;  %s3453_s29 = sshll.u32 %s4327_s19, 6 }
  0xeb   : > { %s452_s30 = sadd.s32 63, %s3453_s29 }
  0xec   : > { %p3454_p8 = scmp.gt.s32.totalorder %s3452_s28, %s452_s30 }
  0xee   : > { %456 = sbr.rel (%p3454_p8) target bundleno = 2505 (0x9c9), region = 48 }
  0xf3   : > { %v472_v30 = vld [vmem:[%s6270_s3 + $0x38] sm:$0xff]  ;;  %v471_v31 = vld [vmem:[%s6270_s3 + $0x30] sm:$0xff]  ;;  %v470_v32 = vld [vmem:[%s6270_s3 + $0x28] sm:$0xff]  ;;  %v4343_v34 = vmov 0.0   ;;  %vm473_vm3 = vcmask 261120   ;;  %vm681_vm4 = vcmask 130048   ;;  %v611_v28 = vlaneseq }
  0xf4   : > { %522 = vmatprep.subr.mxu0 %v472_v30  ;;  %v469_v33 = vld [vmem:[%s6270_s3 + $0x20] sm:$0xff]  ;;  %562 = vmatprep.mubr.f32.mxu0 %v4343_v34  ;;  %v468_v35 = vld [vmem:[%s6270_s3 + $0x18] sm:$0xff]  ;;  %v467_v36 = vld [vmem:[%s6270_s3 + $0x10] sm:$0xff]  ;;  %s4345_s8 = smov 64   ;;  %vm835_vm9 = vcmask 523264   ;;  %s4347_s19 = smov 32  }
  0xf5   : > { %523 = vmatpush1.msra.mxu0 %v471_v31  ;;  %v466_v37 = vld [vmem:[%s6270_s3 + $0x8] sm:$0xff]  ;;  %v465_v38 = vld [vmem:[%s6270_s3] sm:$0xff]  ;;  %v459_v41 = vld [vmem:[%s4431_s9 + $0x10] sm:$0xff]  ;;  %v612_v29 = vshrl.u32 %v611_v28, 7  ;;  %v630_v31 = vand.u32 127, %v611_v28  ;;  %vm2899_vm14 = vcmask 7168  }
  0xf6   : > { %524 = vmatprep.subr.mxu0 %v470_v32  ;;  %v457_v39 = vld [vmem:[%s4431_s9] sm:$0xff]  ;;  %v458_v40 = vld [vmem:[%s4431_s9 + $0x8] sm:$0xff]  ;;  %v460_v42 = vld [vmem:[%s4431_s9 + $0x18] sm:$0xff]  ;;  %v620_v32 = vstv %s3453_s29  ;;  %vm2908_vm15 = vcmask 15360   ;;  %s4351_s29 = smov 80   ;;  %vm2917_vm0 = vcmask 23552  }
  0xf7   : > { %525 = vmatpush1.msra.mxu0 %v469_v33  ;;  %v461_v43 = vld [vmem:[%s4431_s9 + $0x20] sm:$0xff]  ;;  %v462_v44 = vld [vmem:[%s4431_s9 + $0x28] sm:$0xff]  ;;  %v463_v45 = vld [vmem:[%s4431_s9 + $0x30] sm:$0xff]  ;;  %v613_v30 = vadd.s32 8, %v612_v29  ;;  %v631_v33 = vstv %s3452_s28  ;;  %s4349_s28 = smov 96   ;;  %vm2926_vm1 = vcmask 31744  }
  0xf8   : > { %526 = vmatprep.subr.mxu0 %v468_v35  ;;  %v464_v46 = vld [vmem:[%s4431_s9 + $0x38] sm:$0xff]  ;;  %v4545_v47 = vld [vmem:[#allocation2] sm:$0xff]  ;;  %s4344_s9 = smov 112   ;;  %v4597_v63 = vld [vmem:[#allocation2 + $0x8] sm:$0xff]  ;;  %vm2983_vm2 = vcmask 785408  }
  0xf9   : > { %527 = vmatpush1.msra.mxu0 %v467_v36  ;;  %3762 = vmatprep.mubr.msk.f32.mxu1 %vm681_vm4, %v4545_v47  ;;  %v4607_v0 = vld [vmem:[#allocation2 + $0x18] sm:$0xff]  ;;  %v4617_v1 = vld [vmem:[#allocation2 + $0x28] sm:$0xff]  ;;  %v4629_v3 = vld [vmem:[#allocation2 + $0x10] sm:$0xff]  ;;  %v622_v35 = vadd.s32 %v620_v32, %v613_v30  ;;  %v615_v36 = vadd.s32 24, %v612_v29 }
  0xfa   : > { %528 = vmatprep.subr.mxu0 %v466_v37  ;;  %v4627_v2 = vld [vmem:[#allocation2 + $0x38] sm:$0xff]  ;;  %v4639_v4 = vld [vmem:[#allocation2 + $0x20] sm:$0xff]  ;;  %v4649_v5 = vld [vmem:[#allocation2 + $0x30] sm:$0xff]  ;;  %v632_v37 = vadd.s32 %v631_v33, %v630_v31 }
  0xfb   : > { %529 = vmatpush1.msra.mxu0 %v465_v38  ;;  %v621_v38 = vadd.s32 %v620_v32, %v612_v29 }
  0xfc   : > { %3455 = vmatmul.mubr.msk.f32.vlgmr.msra.gmra.mxu0 %vm473_vm3, %v457_v39  ;;  %v614_v39 = vadd.s32 16, %v612_v29  ;;  %vm634_vm5 = vcmp.gt.s32.totalorder %v632_v37, %v622_v35 }
  0xfd   : > { %568 = vmatprep.mubr.f32.mxu0 %v4343_v34  ;;  %vm633_vm6 = vcmp.gt.s32.totalorder %v632_v37, %v621_v38 }
 0x100   : > { %3456 = vmatmul.mubr.msk.f32.gmra.mxu0 %vm473_vm3, %v458_v40  ;;  %v624_v40 = vadd.s32 %v620_v32, %v615_v36 }
 0x101   : > { %574 = vmatprep.mubr.f32.mxu0 %v4343_v34 }
 0x102   : > { %vm636_vm7 = vcmp.gt.s32.totalorder %v632_v37, %v624_v40 }
 0x104   : > { %3457 = vmatmul.mubr.msk.f32.gmra.mxu0 %vm473_vm3, %v459_v41  ;;  %v617_v41 = vadd.s32 40, %v612_v29 }
 0x105   : > { %580 = vmatprep.mubr.f32.mxu0 %v4343_v34 }
 0x108   : > { %3458 = vmatmul.mubr.msk.f32.gmra.mxu0 %vm473_vm3, %v460_v42  ;;  %v616_v42 = vadd.s32 32, %v612_v29 }
 0x109   : > { %586 = vmatprep.mubr.f32.mxu0 %v4343_v34 }
 0x10c   : > { %3459 = vmatmul.mubr.msk.f32.gmra.mxu0 %vm473_vm3, %v461_v43  ;;  %v623_v43 = vadd.s32 %v620_v32, %v614_v39 }
 0x10d   : > { %592 = vmatprep.mubr.f32.mxu0 %v4343_v34 }
 0x10e   : > { %vm635_vm8 = vcmp.gt.s32.totalorder %v632_v37, %v623_v43 }
 0x110   : > { %3460 = vmatmul.mubr.msk.f32.gmra.mxu0 %vm473_vm3, %v462_v44  ;;  %v4728_v44 = vsel %vm634_vm5, -1e+30, %v4343_v34 }
 0x111   : > { %598 = vmatprep.mubr.f32.mxu0 %v4343_v34 }
 0x114   : > { %3461 = vmatmul.mubr.msk.f32.gmra.mxu0 %vm473_vm3, %v463_v45 }
 0x115   : > { %604 = vmatprep.mubr.f32.mxu0 %v4343_v34 }
 0x118   : > { %3462 = vmatmul.mubr.msk.f32.gmra.mxu0 %vm473_vm3, %v464_v46  ;;  %v4731_v46 = vsel %vm633_vm6, -1e+30, %v4343_v34 }
 0x1bc   : > { %v4549_v48 = vpop.f32.mrf.mxu0 }
 0x1be   : > { %v4551_v49 = vpop.f32.mrf.mxu0 }
 0x1bf   : > { %6339 = vst [vmem:[#allocation6_spill] sm:$0xff] %v4551_v49 }
 0x1c0   : > { %v4553_v50 = vpop.f32.mrf.mxu0 }
 0x1c2   : > { %v4555_v51 = vpop.f32.mrf.mxu0 }
 0x1c3   : > { %6340 = vst [vmem:[#allocation7_spill] sm:$0xff] %v4555_v51 }
 0x1c4   : > { %v4557_v52 = vpop.f32.mrf.mxu0 }
 0x1c6   : > { %v4559_v53 = vpop.f32.mrf.mxu0 }
 0x1c7   : > { %6341 = vst [vmem:[#allocation8_spill] sm:$0xff] %v4559_v53 }
 0x1c8   : > { %v4561_v54 = vpop.f32.mrf.mxu0 }
 0x1ca   : > { %v4563_v55 = vpop.f32.mrf.mxu0 }
 0x1cb   : > { %6342 = vst [vmem:[#allocation9_spill] sm:$0xff] %v4563_v55 }
 0x1cc   : > { %v4565_v56 = vpop.f32.mrf.mxu0 }
 0x1ce   : > { %v4567_v57 = vpop.f32.mrf.mxu0 }
 0x1cf   : > { %6343 = vst [vmem:[#allocation10_spill] sm:$0xff] %v4567_v57 }
 0x1d0   : > { %v4569_v58 = vpop.f32.mrf.mxu0 }
 0x1d1   : > { %1231 = vrot.lane.b32.xlu1 %v4569_v58, %s4344_s9 }
 0x1d2   : > { %v4573_v59 = vpop.f32.mrf.mxu0 }
 0x1d3   : > { %6344 = vst [vmem:[#allocation11_spill] sm:$0xff] %v4573_v59 }
 0x1d4   : > { %v4575_v60 = vpop.f32.mrf.mxu0 }
 0x1d5   : > { %1229 = vrot.lane.b32.xlu1 %v4565_v56, %s4344_s9 }
 0x1d6   : > { %v4579_v61 = vpop.f32.mrf.mxu0 }
 0x1d7   : > { %6345 = vst [vmem:[#allocation12_spill] sm:$0xff] %v4579_v61 }
 0x1d8   : > { %v4581_v62 = vpop.f32.mrf.mxu0 }
 0x1d9   : > { %6346 = vst [vmem:[#allocation13_spill] sm:$0xff] %v4581_v62  ;;  %1225 = vrot.lane.b32.xlu1 %v4557_v52, %s4344_s9  ;;  %1235 = vrot.lane.b32.xlu0 %v4581_v62, %s4344_s9 }
 0x1da   : > { %3746 = vmatprep.subr.msk.mxu1 %vm681_vm4, %v4581_v62  ;;  %v4697_v22 = vpop.f32.mrf.mxu0 }
 0x1db   : > { %3747 = vmatpush3.xpose.msk.msra.mxu1 %vm681_vm4, %v4581_v62  ;;  %6347 = vst [vmem:[#allocation14_spill] sm:$0xff] %v4697_v22 }
 0x1dc   : > { %3748 = vmatprep.subr.msk.mxu1 %vm681_vm4, %v4575_v60 }
 0x1dd   : > { %1221 = vrot.lane.b32.xlu1 %v4549_v48, %s4344_s9  ;;  %1233 = vrot.lane.b32.xlu0 %v4575_v60, %s4344_s9 }
 0x1df   : > { %3749 = vmatpush3.xpose.msk.msra.mxu1 %vm681_vm4, %v4575_v60 }
 0x1e0   : > { %3750 = vmatprep.subr.msk.mxu1 %vm681_vm4, %v4569_v58 }
 0x1e1   : > { %1207 = vrot.lane.b32.xlu1 %v4597_v63, %s4344_s9  ;;  %1227 = vrot.lane.b32.xlu0 %v4561_v54, %s4344_s9 }
 0x1e3   : > { %3751 = vmatpush3.xpose.msk.msra.mxu1 %vm681_vm4, %v4569_v58 }
 0x1e4   : > { %3752 = vmatprep.subr.msk.mxu1 %vm681_vm4, %v4565_v56 }
 0x1e5   : > { %1211 = vrot.lane.b32.xlu1 %v4607_v0, %s4344_s9  ;;  %1223 = vrot.lane.b32.xlu0 %v4553_v50, %s4344_s9 }
 0x1e7   : > { %3753 = vmatpush3.xpose.msk.msra.mxu1 %vm681_vm4, %v4565_v56 }
 0x1e8   : > { %3754 = vmatprep.subr.msk.mxu1 %vm681_vm4, %v4561_v54 }
 0x1e9   : > { %1215 = vrot.lane.b32.xlu1 %v4617_v1, %s4344_s9  ;;  %1205 = vrot.lane.b32.xlu0 %v4545_v47, %s4344_s9 }
 0x1eb   : > { %3755 = vmatpush3.xpose.msk.msra.mxu1 %vm681_vm4, %v4561_v54 }
 0x1ec   : > { %3756 = vmatprep.subr.msk.mxu1 %vm681_vm4, %v4557_v52 }
 0x1ed   : > { %1219 = vrot.lane.b32.xlu1 %v4627_v2, %s4344_s9  ;;  %1209 = vrot.lane.b32.xlu0 %v4629_v3, %s4344_s9 }
 0x1ef   : > { %3757 = vmatpush3.xpose.msk.msra.mxu1 %vm681_vm4, %v4557_v52 }
 0x1f0   : > { %3758 = vmatprep.subr.msk.mxu1 %vm681_vm4, %v4553_v50 }
 0x1f1   : > { %1056 = vrot.lane.b32.xlu1 %v4575_v60, %s4345_s8  ;;  %1213 = vrot.lane.b32.xlu0 %v4639_v4, %s4344_s9 }
 0x1f3   : > { %3759 = vmatpush3.xpose.msk.msra.mxu1 %vm681_vm4, %v4553_v50 }
 0x1f4   : > { %3760 = vmatprep.subr.msk.mxu1 %vm681_vm4, %v4549_v48 }
 0x1f5   : > { %1054 = vrot.lane.b32.xlu1 %v4569_v58, %s4345_s8  ;;  %1217 = vrot.lane.b32.xlu0 %v4649_v5, %s4344_s9 }
 0x1f7   : > { %3761 = vmatpush3.xpose.msk.msra.mxu1 %vm681_vm4, %v4549_v48 }
 0x1f9   : > { %1052 = vrot.lane.b32.xlu1 %v4565_v56, %s4345_s8  ;;  %1050 = vrot.lane.b32.xlu0 %v4561_v54, %s4345_s8 }
 0x1fa   : > { %3763 = vmatmul.mubr.msk.f32.vlgmr.msra.gmra.mxu1 %vm681_vm4, %v4597_v63 }
 0x1fb   : > { %3765 = vmatprep.mubr.msk.f32.mxu1 %vm681_vm4, %v4629_v3 }
 0x1fd   : > { %1058 = vrot.lane.b32.xlu1 %v4581_v62, %s4345_s8 }
 0x1fe   : > { %3766 = vmatmul.mubr.msk.f32.gmra.mxu1 %vm681_vm4, %v4607_v0 }
 0x1ff   : > { %3768 = vmatprep.mubr.msk.f32.mxu1 %vm681_vm4, %v4639_v4 }
 0x202   : > { %3769 = vmatmul.mubr.msk.f32.gmra.mxu1 %vm681_vm4, %v4617_v1 }
 0x203   : > { %3771 = vmatprep.mubr.msk.f32.mxu1 %vm681_vm4, %v4649_v5 }
 0x206   : > { %3772 = vmatmul.mubr.msk.f32.gmra.mxu1 %vm681_vm4, %v4627_v2 }
 0x243   : > { %v1232_v6 = vpop.permute.xlu1 %1231 }
 0x247   : > { %v1230_v7 = vpop.permute.xlu1 %1229 }
 0x24b   : > { %v1226_v8 = vpop.permute.xlu1 %1225  ;;  %v1236_v9 = vpop.permute.xlu0 %1235 }
 0x24c   : > { %3802 = vmatprep.subr.msk.mxu1 %vm681_vm4, %v1236_v9 }
 0x24d   : > { %3803 = vmatpush3.xpose.msk.msra.mxu1 %vm681_vm4, %v1236_v9  ;;  %v619_v9 = vadd.s32 56, %v612_v29 }
 0x24f   : > { %v1222_v10 = vpop.permute.xlu1 %1221  ;;  %v1234_v11 = vpop.permute.xlu0 %1233 }
 0x250   : > { %3804 = vmatprep.subr.msk.mxu1 %vm681_vm4, %v1234_v11 }
 0x251   : > { %3805 = vmatpush3.xpose.msk.msra.mxu1 %vm681_vm4, %v1234_v11 }
 0x252   : > { %3806 = vmatprep.subr.msk.mxu1 %vm681_vm4, %v1232_v6 }
 0x253   : > { %v1208_v12 = vpop.permute.xlu1 %1207  ;;  %v1228_v13 = vpop.permute.xlu0 %1227 }
 0x255   : > { %3807 = vmatpush3.xpose.msk.msra.mxu1 %vm681_vm4, %v1232_v6  ;;  %v626_v6 = vadd.s32 %v620_v32, %v617_v41 }
 0x256   : > { %3808 = vmatprep.subr.msk.mxu1 %vm681_vm4, %v1230_v7 }
 0x257   : > { %v1212_v14 = vpop.permute.xlu1 %1211  ;;  %v1224_v15 = vpop.permute.xlu0 %1223  ;;  %vm638_vm10 = vcmp.gt.s32.totalorder %v632_v37, %v626_v6 }
 0x259   : > { %3809 = vmatpush3.xpose.msk.msra.mxu1 %vm681_vm4, %v1230_v7  ;;  %v625_v7 = vadd.s32 %v620_v32, %v616_v42  ;;  %v6273_v42 = vmov 0  }
 0x25a   : > { %3810 = vmatprep.subr.msk.mxu1 %vm681_vm4, %v1228_v13  ;;  %4111 = vset.pattern.permute.xlu1 %v6273_v42 }
 0x25b   : > { %v1216_v16 = vpop.permute.xlu1 %1215  ;;  %v1206_v17 = vpop.permute.xlu0 %1205  ;;  %vm637_vm11 = vcmp.gt.s32.totalorder %v632_v37, %v625_v7  ;;  %4110 = vset.pattern.permute.xlu0 %v6273_v42 }
 0x25c   : > { %3818 = vmatprep.mubr.msk.f32.mxu1 %vm681_vm4, %v1206_v17 }
 0x25d   : > { %3811 = vmatpush3.xpose.msk.msra.mxu1 %vm681_vm4, %v1228_v13 }
 0x25e   : > { %3812 = vmatprep.subr.msk.mxu1 %vm681_vm4, %v1226_v8 }
 0x25f   : > { %v1220_v18 = vpop.permute.xlu1 %1219  ;;  %v1210_v20 = vpop.permute.xlu0 %1209 }
 0x261   : > { %3813 = vmatpush3.xpose.msk.msra.mxu1 %vm681_vm4, %v1226_v8 }
 0x262   : > { %3814 = vmatprep.subr.msk.mxu1 %vm681_vm4, %v1224_v15 }
 0x263   : > { %v1057_v19 = vpop.permute.xlu1 %1056  ;;  %v1214_v24 = vpop.permute.xlu0 %1213 }
 0x265   : > { %3815 = vmatpush3.xpose.msk.msra.mxu1 %vm681_vm4, %v1224_v15 }
 0x266   : > { %3816 = vmatprep.subr.msk.mxu1 %vm681_vm4, %v1222_v10 }
 0x267   : > { %v1055_v21 = vpop.permute.xlu1 %1054  ;;  %v1218_v26 = vpop.permute.xlu0 %1217 }
 0x269   : > { %3817 = vmatpush3.xpose.msk.msra.mxu1 %vm681_vm4, %v1222_v10  ;;  %v618_v10 = vadd.s32 48, %v612_v29 }
 0x26a   : > { %3886 = vmatprep.subr.mxu1 %v4697_v22 }
 0x26b   : > { %v1053_v23 = vpop.permute.xlu1 %1052  ;;  %v1051_v27 = vpop.permute.xlu0 %1050 }
 0x26c   : > { %3819 = vmatmul.mubr.msk.f32.vlgmr.msra.gmra.mxu1 %vm681_vm4, %v1208_v12  ;;  %v4737_v12 = vsel %vm636_vm7, -1e+30, %v4343_v34 }
 0x26d   : > { %3887 = vmatpush3.msra.mxu1 %v4697_v22  ;;  %3821 = vmatprep.mubr.msk.f32.mxu1 %vm681_vm4, %v1210_v20  ;;  %v627_v20 = vadd.s32 %v620_v32, %v618_v10 }
 0x26e   : > { %3888 = vmatprep.subr.mxu1 %v4579_v61 }
 0x26f   : > { %v1059_v25 = vpop.permute.xlu1 %1058  ;;  %3889 = vmatpush3.msra.mxu1 %v4579_v61  ;;  %vm639_vm13 = vcmp.gt.s32.totalorder %v632_v37, %v627_v20 }
 0x270   : > { %3774 = vmatprep.subr.mxu0 %v1059_v25  ;;  %3822 = vmatmul.mubr.msk.f32.gmra.mxu1 %vm681_vm4, %v1212_v14  ;;  %v4775_v35 = vsel %vm639_vm13, -1e+30, %v4343_v34 }
 0x271   : > { %3890 = vmatprep.subr.mxu1 %v4573_v59  ;;  %3775 = vmatpush3.msra.mxu0 %v1059_v25  ;;  %v4758_v25 = vsel %vm638_vm10, -1e+30, %v4343_v34 }
 0x272   : > { %3891 = vmatpush3.msra.mxu1 %v4573_v59  ;;  %3776 = vmatprep.subr.mxu0 %v1057_v19 }
 0x273   : > { %3892 = vmatprep.subr.mxu1 %v4567_v57  ;;  %3777 = vmatpush3.msra.mxu0 %v1057_v19  ;;  %v628_v19 = vadd.s32 %v620_v32, %v619_v9 }
 0x274   : > { %3824 = vmatprep.mubr.msk.f32.mxu1 %vm681_vm4, %v1214_v24  ;;  %3893 = vmatpush3.msra.mxu1 %v4567_v57 }
 0x275   : > { %3778 = vmatprep.subr.mxu0 %v1055_v21  ;;  %3825 = vmatmul.mubr.msk.f32.gmra.mxu1 %vm681_vm4, %v1216_v16  ;;  %v4745_v16 = vsel %vm635_vm8, -1e+30, %v4343_v34  ;;  %vm640_vm12 = vcmp.gt.s32.totalorder %v632_v37, %v628_v19 }
 0x276   : > { %3894 = vmatprep.subr.mxu1 %v4563_v55  ;;  %3779 = vmatpush3.msra.mxu0 %v1055_v21  ;;  %v4772_v32 = vsel %vm640_vm12, -1e+30, %v4343_v34 }
 0x277   : > { %3895 = vmatpush3.msra.mxu1 %v4563_v55  ;;  %3780 = vmatprep.subr.mxu0 %v1053_v23 }
 0x278   : > { %3896 = vmatprep.subr.mxu1 %v4559_v53  ;;  %3781 = vmatpush3.msra.mxu0 %v1053_v23 }
 0x279   : > { %3827 = vmatprep.mubr.msk.f32.mxu1 %vm681_vm4, %v1218_v26  ;;  %3897 = vmatpush3.msra.mxu1 %v4559_v53 }
 0x27a   : > { %3782 = vmatprep.subr.mxu0 %v1051_v27  ;;  %3828 = vmatmul.mubr.msk.f32.gmra.mxu1 %vm681_vm4, %v1220_v18 }
 0x27b   : > { %3898 = vmatprep.subr.mxu1 %v4555_v51  ;;  %3783 = vmatpush3.msra.mxu0 %v1051_v27  ;;  %v4761_v27 = vsel %vm637_vm11, -1e+30, %v4343_v34 }
 0x27c   : > { %3899 = vmatpush3.msra.mxu1 %v4555_v51 }
 0x27d   : > { %3900 = vmatprep.subr.mxu1 %v4551_v49 }
 0x27e   : > { %3901 = vmatpush3.msra.mxu1 %v4551_v49  ;;  %v4864_v49 = vld [vmem:[#allocation3 + $0x30] sm:$0xff] }
 0x2ba   : > { %v3764_v45 = vpop.f32.mrf.mxu1 }
 0x2bb   : > { %v4734_v8 = vadd.f32 %v3764_v45, %v4728_v44 }
 0x2bc   : > { %v796_v11 = vpop.f32.mrf.mxu1 }
 0x2bd   : > { %v4740_v13 = vadd.f32 %v796_v11, %v4731_v46  ;;  %v839_v14 = vsel %vm835_vm9, %v4734_v8, -inf }
 0x2be   : > { %v3767_v15 = vpop.f32.mrf.mxu1  ;;  %840 = vmax.xlane.f32.xlu1 %v839_v14 }
 0x2bf   : > { %v4748_v17 = vadd.f32 %v3767_v15, %v4737_v12  ;;  %v836_v18 = vsel %vm835_vm9, %v4740_v13, -inf }
 0x2c0   : > { %837 = vmax.xlane.f32.xlu0 %v836_v18  ;;  %v806_v21 = vpop.f32.mrf.mxu1 }
 0x2c1   : > { %v4753_v23 = vadd.f32 %v806_v21, %v4745_v16  ;;  %v845_v24 = vsel %vm835_vm9, %v4748_v17, -inf }
 0x2c2   : > { %v3770_v26 = vpop.f32.mrf.mxu1 }
 0x2c3   : > { %v4764_v29 = vadd.f32 %v3770_v26, %v4758_v25  ;;  %v842_v30 = vsel %vm835_vm9, %v4753_v23, -inf }
 0x2c4   : > { %846 = vmax.xlane.f32.xlu0 %v845_v24  ;;  %v816_v28 = vpop.f32.mrf.mxu1 }
 0x2c5   : > { %v4769_v31 = vadd.f32 %v816_v28, %v4761_v27  ;;  %v851_v38 = vsel %vm835_vm9, %v4764_v29, -inf }
 0x2c6   : > { %v3773_v33 = vpop.f32.mrf.mxu1 }
 0x2c7   : > { %v848_v36 = vsel %vm835_vm9, %v4769_v31, -inf  ;;  %v4782_v39 = vadd.f32 %v3773_v33, %v4772_v32 }
 0x2c8   : > { %843 = vmax.xlane.f32.xlu0 %v842_v30  ;;  %v826_v37 = vpop.f32.mrf.mxu1  ;;  %849 = vmax.xlane.f32.xlu1 %v848_v36 }
 0x2c9   : > { %v4785_v40 = vadd.f32 %v826_v37, %v4775_v35  ;;  %v857_v34 = vsel %vm835_vm9, %v4782_v39, -inf  ;;  %v4822_v37 = vld [vmem:[#allocation3] sm:$0xff] }
 0x2cb   : > { %v854_v41 = vsel %vm835_vm9, %v4785_v40, -inf }
 0x2cc   : > { %852 = vmax.xlane.f32.xlu0 %v851_v38  ;;  %855 = vmax.xlane.f32.xlu1 %v854_v41 }
 0x2d0   : > { %858 = vmax.xlane.f32.xlu0 %v857_v34  ;;  %v4829_v34 = vld [vmem:[#allocation3 + $0x18] sm:$0xff] }
 0x32c   : > { %v3820_v43 = vpop.f32.mrf.mxu1 }
 0x32d   : > { %v4794_v45 = vadd.f32 %v3820_v43, %v4728_v44 }
 0x32e   : > { %v1335_v6 = vpop.f32.mrf.mxu1 }
 0x32f   : > { %v4797_v7 = vadd.f32 %v1335_v6, %v4731_v46  ;;  %v1377_v9 = vsel %vm835_vm9, %v4794_v45, -inf }
 0x330   : > { %v3823_v10 = vpop.f32.mrf.mxu1  ;;  %1378 = vmax.xlane.f32.xlu0 %v1377_v9  ;;  %v4835_v9 = vld [vmem:[#allocation3 + $0x10] sm:$0xff] }
 0x331   : > { %v1374_v11 = vsel %vm835_vm9, %v4797_v7, -inf  ;;  %6349 = vst [vmem:[#allocation16_spill] sm:$0xff] %v4835_v9 }
 0x332   : > { %v1345_v14 = vpop.f32.mrf.mxu1  ;;  %1375 = vmax.xlane.f32.xlu1 %v1374_v11 }
 0x333   : > { %v4804_v15 = vadd.f32 %v1345_v14, %v4745_v16 }
 0x335   : > { %v3826_v18 = vpop.f32.mrf.mxu1  ;;  %v1380_v19 = vsel %vm835_vm9, %v4804_v15, -inf }
 0x336   : > { %1381 = vmax.xlane.f32.xlu1 %v1380_v19  ;;  %v4842_v19 = vadd.f32 %v3823_v10, %v4737_v12 }
 0x337   : > { %v1355_v20 = vpop.f32.mrf.mxu1 }
 0x338   : > { %v4809_v21 = vadd.f32 %v1355_v20, %v4761_v27  ;;  %v4844_v20 = vld [vmem:[#allocation3 + $0x28] sm:$0xff] }
 0x339   : > { %6351 = vst [vmem:[#allocation18_spill] sm:$0xff] %v4844_v20 }
 0x33a   : > { %v3829_v24 = vpop.f32.mrf.mxu1  ;;  %v1386_v26 = vsel %vm835_vm9, %v4809_v21, -inf }
 0x33b   : > { %1387 = vmax.xlane.f32.xlu1 %v1386_v26  ;;  %v4862_v42 = vadd.f32 %v3829_v24, %v4772_v32  ;;  %v6280_v24 = vmov 1  }
 0x33c   : > { %v1365_v28 = vpop.f32.mrf.mxu1 }
 0x33d   : > { %v4814_v30 = vadd.f32 %v1365_v28, %v4775_v35 }
 0x33f   : > { %v1392_v33 = vsel %vm835_vm9, %v4814_v30, -inf }
 0x340   : > { %1393 = vmax.xlane.f32.xlu1 %v1392_v33 }
 0x346   : > { %1048 = vrot.lane.b32.xlu0 %v4557_v52, %s4345_s8 }
 0x347   : > { %v841_v11 = vpop.xlane.xlu1 %840 }
 0x349   : > { %v838_v36 = vpop.xlane.xlu0 %837 }
 0x34a   : > { %v4827_v41 = vmax.f32 %v4822_v37, %v838_v36  ;;  %v4851_v36 = vadd.f32 %v3826_v18, %v4758_v25 }
 0x34c   : > { %v1389_v18 = vsel %vm835_vm9, %v4851_v36, -inf }
 0x34d   : > { %v847_v38 = vpop.xlane.xlu0 %846 }
 0x34e   : > { %v4833_v6 = vmax.f32 %v4829_v34, %v847_v38  ;;  %v4853_v38 = vld [vmem:[#allocation3 + $0x20] sm:$0xff] }
 0x350   : > { %6348 = vst [vmem:[#allocation15_spill] sm:$0xff] %v4833_v6 }
 0x351   : > { %1044 = vrot.lane.b32.xlu1 %v4549_v48, %s4345_s8  ;;  %v844_v43 = vpop.xlane.xlu0 %843  ;;  %v850_v28 = vpop.xlane.xlu1 %849 }
 0x352   : > { %v4839_v14 = vmax.f32 %v4835_v9, %v844_v43  ;;  %v1383_v43 = vsel %vm835_vm9, %v4842_v19, -inf  ;;  %v4859_v10 = vmax.f32 %v4853_v38, %v850_v28  ;;  %v1395_v28 = vsel %vm835_vm9, %v4862_v42, -inf }
 0x354   : > { %6350 = vst [vmem:[#allocation17_spill] sm:$0xff] %v4839_v14  ;;  %6353 = vst [vmem:[#allocation20_spill] sm:$0xff] %v4859_v10 }
 0x355   : > { %1594 = vrot.lane.b32.xlu1 %v4575_v60, %s4347_s19  ;;  %v853_v26 = vpop.xlane.xlu0 %852 }
 0x356   : > { %v4848_v33 = vmax.f32 %v4844_v20, %v853_v26  ;;  %v856_v26 = vpop.xlane.xlu1 %855 }
 0x357   : > { %v4870_v51 = vmax.f32 %v4864_v49, %v856_v26  ;;  %v4884_v26 = vld [vmem:[#allocation3 + $0x38] sm:$0xff] }
 0x358   : > { %6352 = vst [vmem:[#allocation19_spill] sm:$0xff] %v4848_v33  ;;  %6355 = vst [vmem:[#allocation22_spill] sm:$0xff] %v4884_v26 }
 0x359   : > { %894 = vperm.xlu1 %4111, %v4827_v41   ;;  %6354 = vst [vmem:[#allocation21_spill] sm:$0xff] %v4870_v51 }
 0x35d   : > { %909 = vperm.xlu1 %4111, %v4833_v6  }
 0x361   : > { %904 = vperm.xlu1 %4111, %v4839_v14  }
 0x365   : > { %919 = vperm.xlu1 %4111, %v4848_v33   ;;  %1384 = vmax.xlane.f32.xlu0 %v1383_v43  ;;  %v4876_v43 = vld [vmem:[#allocation3 + $0x8] sm:$0xff] }
 0x366   : > { %v4879_v53 = vmax.f32 %v4876_v43, %v841_v11 }
 0x369   : > { %914 = vperm.xlu1 %4111, %v4859_v10   ;;  %1390 = vmax.xlane.f32.xlu0 %v1389_v18  ;;  %v859_v18 = vpop.xlane.xlu0 %858 }
 0x36d   : > { %924 = vperm.xlu1 %4111, %v4870_v51   ;;  %1396 = vmax.xlane.f32.xlu0 %v1395_v28  ;;  %v4889_v28 = vmax.f32 %v4884_v26, %v859_v18 }
 0x36f   : > { %6356 = vst [vmem:[#allocation23_spill] sm:$0xff] %v4889_v28 }
 0x371   : > { %4112 = vset.pattern.permute.xlu1 %v6280_v24 }
 0x383   : > { %899 = vperm.xlu0 %4110, %v4879_v53  }
 0x387   : > { %1046 = vrot.lane.b32.xlu0 %v4553_v50, %s4345_s8 }
 0x38b   : > { %1596 = vrot.lane.b32.xlu0 %v4581_v62, %s4347_s19 }
 0x38f   : > { %929 = vperm.xlu0 %4110, %v4889_v28  }
 0x393   : > { %1592 = vrot.lane.b32.xlu0 %v4569_v58, %s4347_s19 }
 0x394   : > { %4113 = vset.pattern.permute.xlu0 %v6280_v24 }
 0x397   : > { %1588 = vrot.lane.b32.xlu0 %v4561_v54, %s4347_s19 }
 0x39b   : > { %1582 = vrot.lane.b32.xlu0 %v4549_v48, %s4347_s19 }
 0x39f   : > { %1805 = vrot.lane.b32.xlu0 %v4581_v62, %s4349_s28 }
 0x3b9   : > { %v1379_v11 = vpop.xlane.xlu0 %1378 }
 0x3ba   : > { %v4902_v18 = vmax.f32 %v4876_v43, %v1379_v11 }
 0x3bb   : > { %v1376_v55 = vpop.xlane.xlu1 %1375 }
 0x3bc   : > { %6357 = vst [vmem:[#allocation24_spill] sm:$0xff] %v4902_v18  ;;  %1437 = vperm.xlu1 %4112, %v4902_v18   ;;  %v4906_v24 = vmax.f32 %v4822_v37, %v1376_v55 }
 0x3bd   : > { %v1049_v57 = vpop.permute.xlu0 %1048 }
 0x3be   : > { %6358 = vst [vmem:[#allocation25_spill] sm:$0xff] %v4906_v24  ;;  %3784 = vmatprep.subr.mxu0 %v1049_v57 }
 0x3bf   : > { %v1382_v59 = vpop.xlane.xlu1 %1381  ;;  %3785 = vmatpush3.msra.mxu0 %v1049_v57 }
 0x3c0   : > { %v4909_v61 = vmax.f32 %v4835_v9, %v1382_v59  ;;  %1432 = vperm.xlu1 %4112, %v4906_v24  }
 0x3c2   : > { %6359 = vst [vmem:[#allocation26_spill] sm:$0xff] %v4909_v61  ;;  %1442 = vperm.xlu0 %4113, %v4909_v61  }
 0x3c4   : > { %v1388_v22 = vpop.xlane.xlu1 %1387  ;;  %1590 = vrot.lane.b32.xlu1 %v4565_v56, %s4347_s19 }
 0x3c8   : > { %1586 = vrot.lane.b32.xlu1 %v4557_v52, %s4347_s19 }
 0x3c9   : > { %v1394_v11 = vpop.xlane.xlu1 %1393 }
 0x3cc   : > { %1584 = vrot.lane.b32.xlu1 %v4553_v50, %s4347_s19 }
 0x3cd   : > { %v1045_v55 = vpop.permute.xlu1 %1044 }
 0x3d1   : > { %v4919_v57 = vpop.permute.xlu1 %1594 }
 0x3d5   : > { %v895_v59 = vpop.permute.xlu1 %894 }
 0x3d6   : > { %v932_v28 = vsub.f32 %v4740_v13, %v895_v59 }
 0x3d8   : > { %v940_v51 = vmul.f32 1.442695, %v932_v28  ;;  %v4935_v28 = vmax.f32 %v4853_v38, %v1388_v22 }
 0x3d9   : > { %v910_v10 = vpop.permute.xlu1 %909 }
 0x3da   : > { %4126 = vpow2.f32 %v940_v51  ;;  %6363 = vst [vmem:[#allocation30_spill] sm:$0xff] %v4935_v28 }
 0x3dd   : > { %v905_v14 = vpop.permute.xlu1 %904 }
 0x3e1   : > { %v920_v13 = vpop.permute.xlu1 %919 }
 0x3e7   : > { %v4922_v33 = vpop.eup %4126 }
 0x3e8   : > { %6360 = vst [vmem:[#allocation27_spill] sm:$0xff] %v4922_v33  ;;  %3790 = vmatprep.mubr.msk.f32.mxu0 %vm835_vm9, %v4922_v33  ;;  %v915_v33 = vpop.permute.xlu1 %914 }
 0x3ee   : > { %v1385_v6 = vpop.xlane.xlu0 %1384 }
 0x3ef   : > { %v4927_v61 = vmax.f32 %v4829_v34, %v1385_v6  ;;  %v4943_v6 = vmax.f32 %v4864_v49, %v1394_v11  ;;  %v937_v11 = vsub.f32 %v4764_v29, %v920_v13 }
 0x3f1   : > { %6361 = vst [vmem:[#allocation28_spill] sm:$0xff] %v4927_v61  ;;  %1447 = vperm.xlu1 %4112, %v4927_v61  }
 0x3f2   : > { %v1391_v62 = vpop.xlane.xlu0 %1390 }
 0x3f3   : > { %v4931_v9 = vmax.f32 %v4844_v20, %v1391_v62  ;;  %v934_v62 = vsub.f32 %v4753_v23, %v905_v14 }
 0x3f5   : > { %6362 = vst [vmem:[#allocation29_spill] sm:$0xff] %v4931_v9  ;;  %1457 = vperm.xlu1 %4112, %v4931_v9   ;;  %v935_v9 = vsub.f32 %v4748_v17, %v910_v10 }
 0x3f6   : > { %v1397_v51 = vpop.xlane.xlu0 %1396 }
 0x3f7   : > { %v4938_v59 = vmax.f32 %v4884_v26, %v1397_v51  ;;  %v944_v26 = vmul.f32 1.442695, %v934_v62  ;;  %v946_v14 = vmul.f32 1.442695, %v935_v9 }
 0x3f9   : > { %6364 = vst [vmem:[#allocation31_spill] sm:$0xff] %v4938_v59  ;;  %1452 = vperm.xlu1 %4112, %v4935_v28   ;;  %1467 = vperm.xlu0 %4113, %v4938_v59   ;;  %v936_v28 = vsub.f32 %v4769_v31, %v915_v33  ;;  %v925_v59 = vpop.permute.xlu1 %924  ;;  %v950_v33 = vmul.f32 1.442695, %v937_v11 }
 0x3fb   : > { %v948_v17 = vmul.f32 1.442695, %v936_v28 }
 0x3fd   : > { %1803 = vrot.lane.b32.xlu1 %v4575_v60, %s4349_s28  ;;  %1462 = vperm.xlu0 %4113, %v4943_v6  }
 0x3fe   : > { %v900_v22 = vpop.permute.xlu0 %899 }
 0x3ff   : > { %v933_v51 = vsub.f32 %v4734_v8, %v900_v22  ;;  %v938_v8 = vsub.f32 %v4785_v40, %v925_v59 }
 0x401   : > { %v942_v20 = vmul.f32 1.442695, %v933_v51  ;;  %1801 = vrot.lane.b32.xlu1 %v4569_v58, %s4349_s28  ;;  %1799 = vrot.lane.b32.xlu0 %v4565_v56, %s4349_s28  ;;  %v952_v29 = vmul.f32 1.442695, %v938_v8 }
 0x402   : > { %v1047_v23 = vpop.permute.xlu0 %1046 }
 0x403   : > { %4128 = vpow2.f32 %v942_v20  ;;  %3786 = vmatprep.subr.mxu0 %v1047_v23 }
 0x404   : > { %4130 = vpow2.f32 %v944_v26  ;;  %3787 = vmatpush3.msra.mxu0 %v1047_v23 }
 0x405   : > { %1797 = vrot.lane.b32.xlu1 %v4561_v54, %s4349_s28  ;;  %1795 = vrot.lane.b32.xlu0 %v4557_v52, %s4349_s28  ;;  %4132 = vpow2.f32 %v946_v14 }
 0x406   : > { %3788 = vmatprep.subr.mxu0 %v1045_v55  ;;  %v1597_v31 = vpop.permute.xlu0 %1596  ;;  %4134 = vpow2.f32 %v948_v17 }
 0x407   : > { %3789 = vmatpush3.msra.mxu0 %v1045_v55  ;;  %4136 = vpow2.f32 %v950_v33 }
 0x408   : > { %3830 = vmatprep.subr.mxu0 %v1597_v31  ;;  %4138 = vpow2.f32 %v952_v29 }
 0x409   : > { %1793 = vrot.lane.b32.xlu1 %v4553_v50, %s4349_s28  ;;  %1791 = vrot.lane.b32.xlu0 %v4549_v48, %s4349_s28 }
 0x40a   : > { %v930_v40 = vpop.permute.xlu0 %929 }
 0x40b   : > { %v939_v9 = vsub.f32 %v4782_v39, %v930_v40 }
 0x40d   : > { %v954_v20 = vmul.f32 1.442695, %v939_v9  ;;  %1775 = vrot.lane.b32.xlu1 %v4545_v47, %s4349_s28  ;;  %1777 = vrot.lane.b32.xlu0 %v4597_v63, %s4349_s28 }
 0x40e   : > { %v1593_v63 = vpop.permute.xlu0 %1592 }
 0x40f   : > { %4140 = vpow2.f32 %v954_v20 }
 0x410   : > { %v4971_v10 = vpop.eup %4128 }
 0x411   : > { %v4973_v26 = vpop.eup %4130  ;;  %3791 = vmatmul.mubr.msk.f32.vlgmr.msra.gmra.mxu0 %vm835_vm9, %v4971_v10  ;;  %1779 = vrot.lane.b32.xlu1 %v4629_v3, %s4349_s28 }
 0x412   : > { %3831 = vmatpush3.msra.mxu0 %v1597_v31  ;;  %3793 = vmatprep.mubr.msk.f32.mxu0 %vm835_vm9, %v4973_v26  ;;  %v4984_v47 = vpop.eup %4132 }
 0x413   : > { %3832 = vmatprep.subr.mxu0 %v4919_v57  ;;  %1781 = vrot.lane.b32.xlu0 %v4607_v0, %s4349_s28  ;;  %v4987_v39 = vpop.eup %4134 }
 0x414   : > { %3833 = vmatpush3.msra.mxu0 %v4919_v57  ;;  %v4997_v0 = vpop.eup %4136 }
 0x415   : > { %3834 = vmatprep.subr.mxu0 %v1593_v63  ;;  %3794 = vmatmul.mubr.msk.f32.gmra.mxu0 %vm835_vm9, %v4984_v47  ;;  %v4999_v3 = vpop.eup %4138 }
 0x416   : > { %3835 = vmatpush3.msra.mxu0 %v1593_v63  ;;  %3796 = vmatprep.mubr.msk.f32.mxu0 %vm835_vm9, %v4987_v39 }
 0x417   : > { %1783 = vrot.lane.b32.xlu1 %v4639_v4, %s4349_s28  ;;  %1785 = vrot.lane.b32.xlu0 %v4617_v1, %s4349_s28  ;;  %v1589_v1 = vpop.permute.xlu0 %1588 }
 0x419   : > { %3797 = vmatmul.mubr.msk.f32.gmra.mxu0 %vm835_vm9, %v4997_v0 }
 0x41a   : > { %3799 = vmatprep.mubr.msk.f32.mxu0 %vm835_vm9, %v4999_v3 }
 0x41b   : > { %1787 = vrot.lane.b32.xlu1 %v4649_v5, %s4349_s28  ;;  %1789 = vrot.lane.b32.xlu0 %v4627_v2, %s4349_s28  ;;  %v1583_v55 = vpop.permute.xlu0 %1582 }
 0x41c   : > { %v5009_v4 = vpop.eup %4140 }
 0x41d   : > { %3800 = vmatmul.mubr.msk.f32.gmra.mxu0 %vm835_vm9, %v5009_v4 }
 0x41f   : > { %v1806_v13 = vpop.permute.xlu0 %1805 }
 0x437   : > { %v1438_v57 = vpop.permute.xlu1 %1437 }
 0x438   : > { %v1471_v28 = vsub.f32 %v4794_v45, %v1438_v57 }
 0x43a   : > { %v1480_v22 = vmul.f32 1.442695, %v1471_v28 }
 0x43b   : > { %v1433_v59 = vpop.permute.xlu1 %1432 }
 0x43c   : > { %v1470_v62 = vsub.f32 %v4797_v7, %v1433_v59 }
 0x43d   : > { %v1443_v51 = vpop.permute.xlu0 %1442 }
 0x43e   : > { %v1478_v5 = vmul.f32 1.442695, %v1470_v62  ;;  %v1472_v23 = vsub.f32 %v4804_v15, %v1443_v51 }
 0x43f   : > { %v1591_v2 = vpop.permute.xlu1 %1590 }
 0x440   : > { %4142 = vpow2.f32 %v1478_v5  ;;  %v1482_v14 = vmul.f32 1.442695, %v1472_v23  ;;  %3836 = vmatprep.subr.mxu0 %v1591_v2 }
 0x441   : > { %4144 = vpow2.f32 %v1480_v22  ;;  %3837 = vmatpush3.msra.mxu0 %v1591_v2 }
 0x442   : > { %4146 = vpow2.f32 %v1482_v14  ;;  %3838 = vmatprep.subr.mxu0 %v1589_v1 }
 0x443   : > { %v1587_v11 = vpop.permute.xlu1 %1586  ;;  %3839 = vmatpush3.msra.mxu0 %v1589_v1 }
 0x444   : > { %3840 = vmatprep.subr.mxu0 %v1587_v11 }
 0x445   : > { %3841 = vmatpush3.msra.mxu0 %v1587_v11 }
 0x447   : > { %v1585_v45 = vpop.permute.xlu1 %1584 }
 0x448   : > { %3842 = vmatprep.subr.mxu0 %v1585_v45 }
 0x449   : > { %3843 = vmatpush3.msra.mxu0 %v1585_v45 }
 0x44a   : > { %3844 = vmatprep.subr.mxu0 %v1583_v55 }
 0x44b   : > { %3845 = vmatpush3.msra.mxu0 %v1583_v55 }
 0x44c   : > { %3858 = vmatprep.subr.msk.mxu0 %vm681_vm4, %v1806_v13 }
 0x44d   : > { %v5017_v7 = vpop.eup %4142 }
 0x44e   : > { %v5019_v15 = vpop.eup %4144  ;;  %3846 = vmatprep.mubr.msk.f32.mxu0 %vm835_vm9, %v5017_v7 }
 0x44f   : > { %v5023_v17 = vpop.eup %4146  ;;  %3847 = vmatmul.mubr.msk.f32.vlgmr.msra.gmra.mxu0 %vm835_vm9, %v5019_v15 }
 0x450   : > { %3859 = vmatpush3.xpose.msk.msra.mxu0 %vm681_vm4, %v1806_v13  ;;  %3849 = vmatprep.mubr.msk.f32.mxu0 %vm835_vm9, %v5023_v17 }
 0x46c   : > { %v1448_v8 = vpop.permute.xlu1 %1447 }
 0x46d   : > { %v1473_v31 = vsub.f32 %v4842_v19, %v1448_v8 }
 0x46f   : > { %v1484_v33 = vmul.f32 1.442695, %v1473_v31 }
 0x470   : > { %v1458_v29 = vpop.permute.xlu1 %1457 }
 0x471   : > { %4148 = vpow2.f32 %v1484_v33  ;;  %v1475_v40 = vsub.f32 %v4851_v36, %v1458_v29 }
 0x473   : > { %v1488_v1 = vmul.f32 1.442695, %v1475_v40 }
 0x474   : > { %v1453_v9 = vpop.permute.xlu1 %1452  ;;  %v1468_v20 = vpop.permute.xlu0 %1467 }
 0x475   : > { %v1474_v63 = vsub.f32 %v4809_v21, %v1453_v9  ;;  %v1477_v55 = vsub.f32 %v4862_v42, %v1468_v20 }
 0x477   : > { %v1486_v57 = vmul.f32 1.442695, %v1474_v63  ;;  %v1492_v19 = vmul.f32 1.442695, %v1477_v55 }
 0x478   : > { %v1804_v13 = vpop.permute.xlu1 %1803  ;;  %v1463_v28 = vpop.permute.xlu0 %1462 }
 0x479   : > { %4150 = vpow2.f32 %v1486_v57  ;;  %v1476_v59 = vsub.f32 %v4814_v30, %v1463_v28  ;;  %3860 = vmatprep.subr.msk.mxu0 %vm681_vm4, %v1804_v13 }
 0x47a   : > { %4152 = vpow2.f32 %v1488_v1  ;;  %3861 = vmatpush3.xpose.msk.msra.mxu0 %vm681_vm4, %v1804_v13 }
 0x47b   : > { %v1490_v36 = vmul.f32 1.442695, %v1476_v59 }
 0x47c   : > { %v1802_v62 = vpop.permute.xlu1 %1801  ;;  %v1800_v22 = vpop.permute.xlu0 %1799 }
 0x47d   : > { %4154 = vpow2.f32 %v1490_v36  ;;  %3862 = vmatprep.subr.msk.mxu0 %vm681_vm4, %v1802_v62 }
 0x47e   : > { %v5038_v21 = vpop.eup %4148  ;;  %4156 = vpow2.f32 %v1492_v19  ;;  %3863 = vmatpush3.xpose.msk.msra.mxu0 %vm681_vm4, %v1802_v62 }
 0x47f   : > { %3850 = vmatmul.mubr.msk.f32.gmra.mxu0 %vm835_vm9, %v5038_v21  ;;  %3864 = vmatprep.subr.msk.mxu0 %vm681_vm4, %v1800_v22 }
 0x480   : > { %v1798_v42 = vpop.permute.xlu1 %1797  ;;  %v1796_v30 = vpop.permute.xlu0 %1795 }
 0x482   : > { %3865 = vmatpush3.xpose.msk.msra.mxu0 %vm681_vm4, %v1800_v22 }
 0x483   : > { %3866 = vmatprep.subr.msk.mxu0 %vm681_vm4, %v1798_v42 }
 0x484   : > { %v1794_v51 = vpop.permute.xlu1 %1793  ;;  %v1792_v2 = vpop.permute.xlu0 %1791 }
 0x486   : > { %v5046_v5 = vpop.eup %4150  ;;  %3867 = vmatpush3.xpose.msk.msra.mxu0 %vm681_vm4, %v1798_v42 }
 0x487   : > { %v5049_v23 = vpop.eup %4152  ;;  %3852 = vmatprep.mubr.msk.f32.mxu0 %vm835_vm9, %v5046_v5  ;;  %3868 = vmatprep.subr.msk.mxu0 %vm681_vm4, %v1796_v30 }
 0x488   : > { %3853 = vmatmul.mubr.msk.f32.gmra.mxu0 %vm835_vm9, %v5049_v23  ;;  %v1776_v14 = vpop.permute.xlu1 %1775  ;;  %v1778_v8 = vpop.permute.xlu0 %1777 }
 0x48a   : > { %v5056_v11 = vpop.eup %4154  ;;  %3869 = vmatpush3.xpose.msk.msra.mxu0 %vm681_vm4, %v1796_v30 }
 0x48b   : > { %6365 = vst [vmem:[#allocation32_spill] sm:$0xff] %v5056_v11  ;;  %v5059_v45 = vpop.eup %4156  ;;  %3855 = vmatprep.mubr.msk.f32.mxu0 %vm835_vm9, %v5056_v11  ;;  %3870 = vmatprep.subr.msk.mxu0 %vm681_vm4, %v1794_v51 }
 0x48c   : > { %6366 = vst [vmem:[#allocation33_spill] sm:$0xff] %v5059_v45  ;;  %3856 = vmatmul.mubr.msk.f32.gmra.mxu0 %vm835_vm9, %v5059_v45  ;;  %v1780_v31 = vpop.permute.xlu1 %1779  ;;  %v1782_v33 = vpop.permute.xlu0 %1781  ;;  %v6398_v45 = vld [vmem:[#allocation20_spill] sm:$0xff] }
 0x48d   : > { %3874 = vmatprep.mubr.msk.f32.mxu0 %vm681_vm4, %v1776_v14 }
 0x48e   : > { %3871 = vmatpush3.xpose.msk.msra.mxu0 %vm681_vm4, %v1794_v51 }
 0x48f   : > { %3872 = vmatprep.subr.msk.mxu0 %vm681_vm4, %v1792_v2 }
 0x490   : > { %v1784_v29 = vpop.permute.xlu1 %1783  ;;  %v1786_v40 = vpop.permute.xlu0 %1785 }
 0x492   : > { %3873 = vmatpush3.xpose.msk.msra.mxu0 %vm681_vm4, %v1792_v2 }
 0x494   : > { %v1788_v9 = vpop.permute.xlu1 %1787  ;;  %v1790_v20 = vpop.permute.xlu0 %1789 }
 0x495   : > { %3875 = vmatmul.mubr.msk.f32.vlgmr.msra.gmra.mxu0 %vm681_vm4, %v1778_v8 }
 0x496   : > { %3877 = vmatprep.mubr.msk.f32.mxu0 %vm681_vm4, %v1780_v31 }
 0x499   : > { %3878 = vmatmul.mubr.msk.f32.gmra.mxu0 %vm681_vm4, %v1782_v33 }
 0x49a   : > { %3880 = vmatprep.mubr.msk.f32.mxu0 %vm681_vm4, %v1784_v29 }
 0x49d   : > { %3881 = vmatmul.mubr.msk.f32.gmra.mxu0 %vm681_vm4, %v1786_v40 }
 0x49e   : > { %3883 = vmatprep.mubr.msk.f32.mxu0 %vm681_vm4, %v1788_v9 }
 0x4a1   : > { %3884 = vmatmul.mubr.msk.f32.gmra.mxu0 %vm681_vm4, %v1790_v20 }
 0x4d1   : > { %v5077_v63 = vpop.f32.mrf.mxu0 }
 0x4d2   : > { %6367 = vst [vmem:[#allocation34_spill] sm:$0xff] %v5077_v63 }
 0x4d3   : > { %v5079_v1 = vpop.f32.mrf.mxu0 }
 0x4d4   : > { %6368 = vst [vmem:[#allocation35_spill] sm:$0xff] %v5079_v1 }
 0x4d5   : > { %v5081_v55 = vpop.f32.mrf.mxu0 }
 0x4d6   : > { %6369 = vst [vmem:[#allocation36_spill] sm:$0xff] %v5081_v55 }
 0x4d7   : > { %v5083_v57 = vpop.f32.mrf.mxu0 }
 0x4d8   : > { %6370 = vst [vmem:[#allocation37_spill] sm:$0xff] %v5083_v57 }
 0x4d9   : > { %v5085_v13 = vpop.f32.mrf.mxu0 }
 0x4da   : > { %6371 = vst [vmem:[#allocation38_spill] sm:$0xff] %v5085_v13 }
 0x4db   : > { %v5087_v28 = vpop.f32.mrf.mxu0 }
 0x4dc   : > { %6372 = vst [vmem:[#allocation39_spill] sm:$0xff] %v5087_v28 }
 0x4dd   : > { %v5089_v59 = vpop.f32.mrf.mxu0 }
 0x4de   : > { %6373 = vst [vmem:[#allocation40_spill] sm:$0xff] %v5089_v59 }
 0x4df   : > { %v5091_v19 = vpop.f32.mrf.mxu0 }
 0x4e0   : > { %6374 = vst [vmem:[#allocation41_spill] sm:$0xff] %v5091_v19 }
 0x50f   : > { %v5093_v36 = vpop.f32.mrf.mxu0 }
 0x510   : > { %6375 = vst [vmem:[#allocation42_spill] sm:$0xff] %v5093_v36  ;;  %v6390_v36 = vld [vmem:[#allocation26_spill] sm:$0xff] }
 0x511   : > { %v5095_v62 = vpop.f32.mrf.mxu0 }
 0x512   : > { %6376 = vst [vmem:[#allocation43_spill] sm:$0xff] %v5095_v62  ;;  %v6391_v62 = vld [vmem:[#allocation17_spill] sm:$0xff] }
 0x53f   : > { %v5097_v22 = vpop.f32.mrf.mxu0 }
 0x540   : > { %6377 = vst [vmem:[#allocation44_spill] sm:$0xff] %v5097_v22  ;;  %v6387_v22 = vld [vmem:[#allocation16_spill] sm:$0xff] }
 0x541   : > { %v5099_v42 = vpop.f32.mrf.mxu0 }
 0x542   : > { %6378 = vst [vmem:[#allocation45_spill] sm:$0xff] %v5099_v42  ;;  %v6395_v42 = vmov 0  }
 0x548   : > { %v5101_v30 = vpop.f32.mrf.mxu0 }
 0x549   : > { %6379 = vst [vmem:[#allocation46_spill] sm:$0xff] %v5101_v30 }
 0x54a   : > { %v5103_v51 = vpop.f32.mrf.mxu0 }
 0x54b   : > { %6380 = vst [vmem:[#allocation47_spill] sm:$0xff] %v5103_v51 }
 0x54c   : > { %v5105_v2 = vpop.f32.mrf.mxu0 }
 0x54d   : > { %6381 = vst [vmem:[#allocation48_spill] sm:$0xff] %v5105_v2 }
 0x54e   : > { %v5107_v14 = vpop.f32.mrf.mxu0 }
 0x54f   : > { %6382 = vst [vmem:[#allocation49_spill] sm:$0xff] %v5107_v14  ;;  %v2902_v14 = vsel %vm2899_vm14, %v6391_v62, %v6390_v36  ;;  %v6399_v36 = vld [vmem:[#allocation29_spill] sm:$0xff] }
 0x555   : > { %v3876_v8 = vpop.f32.mrf.mxu0 }
 0x556   : > { %v5110_v31 = vadd.f32 %v3876_v8, %v4728_v44 }
 0x557   : > { %v1905_v33 = vpop.f32.mrf.mxu0 }
 0x558   : > { %v5113_v29 = vadd.f32 %v1905_v33, %v4731_v46  ;;  %v1947_v40 = vsel %vm835_vm9, %v5110_v31, -inf }
 0x559   : > { %1948 = vmax.xlane.f32.xlu0 %v1947_v40  ;;  %v3879_v9 = vpop.f32.mrf.mxu0 }
 0x55a   : > { %v5118_v20 = vadd.f32 %v3879_v9, %v4737_v12  ;;  %v1944_v59 = vsel %vm835_vm9, %v5113_v29, -inf }
 0x55b   : > { %v1915_v13 = vpop.f32.mrf.mxu0  ;;  %1945 = vmax.xlane.f32.xlu1 %v1944_v59 }
 0x55c   : > { %v5123_v8 = vadd.f32 %v1915_v13, %v4745_v16  ;;  %v1953_v33 = vsel %vm835_vm9, %v5118_v20, -inf }
 0x55d   : > { %v3882_v55 = vpop.f32.mrf.mxu0 }
 0x55e   : > { %v5128_v1 = vadd.f32 %v3882_v55, %v4758_v25  ;;  %v1950_v40 = vsel %vm835_vm9, %v5123_v8, -inf }
 0x55f   : > { %v1925_v9 = vpop.f32.mrf.mxu0  ;;  %1951 = vmax.xlane.f32.xlu0 %v1950_v40  ;;  %1954 = vmax.xlane.f32.xlu1 %v1953_v33 }
 0x560   : > { %v5133_v28 = vadd.f32 %v1925_v9, %v4761_v27  ;;  %v1959_v13 = vsel %vm835_vm9, %v5128_v1, -inf  ;;  %v6313_v9 = vmov 2  }
 0x561   : > { %v3885_v59 = vpop.f32.mrf.mxu0  ;;  %4115 = vset.pattern.permute.xlu1 %v6313_v9  ;;  %4114 = vset.pattern.permute.xlu0 %v6313_v9  ;;  %v2900_v9 = vsel %vm2899_vm14, %v4827_v41, %v4906_v24  ;;  %v6400_v24 = vld [vmem:[#allocation19_spill] sm:$0xff] }
 0x562   : > { %v5138_v57 = vadd.f32 %v3885_v59, %v4772_v32  ;;  %v1956_v55 = vsel %vm835_vm9, %v5133_v28, -inf }
 0x563   : > { %v1935_v63 = vpop.f32.mrf.mxu0  ;;  %1957 = vmax.xlane.f32.xlu0 %v1956_v55  ;;  %1960 = vmax.xlane.f32.xlu1 %v1959_v13 }
 0x564   : > { %v5143_v19 = vadd.f32 %v1935_v63, %v4775_v35  ;;  %v1965_v33 = vsel %vm835_vm9, %v5138_v57, -inf  ;;  %v2901_v63 = vsel %vm2899_vm14, %v4879_v53, %v4902_v18  ;;  %v6396_v18 = vld [vmem:[#allocation18_spill] sm:$0xff] }
 0x566   : > { %v1962_v40 = vsel %vm835_vm9, %v5143_v19, -inf }
 0x567   : > { %1963 = vmax.xlane.f32.xlu0 %v1962_v40  ;;  %1966 = vmax.xlane.f32.xlu1 %v1965_v33 }
 0x5e2   : > { %v1949_v59 = vpop.xlane.xlu0 %1948 }
 0x5e3   : > { %v5152_v13 = vmax.f32 %v4876_v43, %v1949_v59 }
 0x5e4   : > { %v1946_v55 = vpop.xlane.xlu1 %1945 }
 0x5e5   : > { %6383 = vst [vmem:[#allocation50_spill] sm:$0xff] %v5152_v13  ;;  %v5159_v40 = vsel %vm2908_vm15, %v2901_v63, %v5152_v13  ;;  %v5162_v33 = vmax.f32 %v4822_v37, %v1946_v55  ;;  %2007 = vperm.xlu1 %4115, %v5152_v13   ;;  %v6389_v13 = vld [vmem:[#allocation13_spill] sm:$0xff] }
 0x5e6   : > { %6384 = vst [vmem:[#allocation51_spill] sm:$0xff] %v5159_v40 }
 0x5e7   : > { %6385 = vst [vmem:[#allocation52_spill] sm:$0xff] %v5162_v33  ;;  %v5170_v59 = vsel %vm2908_vm15, %v2900_v9, %v5162_v33  ;;  %2002 = vperm.xlu0 %4114, %v5162_v33   ;;  %v6392_v9 = vld [vmem:[#allocation15_spill] sm:$0xff] }
 0x5e8   : > { %6386 = vst [vmem:[#allocation53_spill] sm:$0xff] %v5170_v59  ;;  %v1952_v2 = vpop.xlane.xlu0 %1951  ;;  %v1955_v30 = vpop.xlane.xlu1 %1954  ;;  %v2903_v33 = vsel %vm2899_vm14, %v6392_v9, %v4927_v61 }
 0x5e9   : > { %v5174_v63 = vmax.f32 %v6387_v22, %v1952_v2  ;;  %v5177_v55 = vmax.f32 %v4829_v34, %v1955_v30  ;;  %2351 = vrot.lane.b32.xlu1 %v6389_v13, %s4351_s29 }
 0x5eb   : > { %6388 = vst [vmem:[#allocation16_spill] sm:$0xff] %v5177_v55  ;;  %v5189_v51 = vsel %vm2908_vm15, %v2902_v14, %v5174_v63  ;;  %2349 = vrot.lane.b32.xlu0 %v4575_v60, %s4351_s29  ;;  %v5195_v30 = vsel %vm2908_vm15, %v2903_v33, %v5177_v55  ;;  %v6397_v14 = vld [vmem:[#allocation30_spill] sm:$0xff]  ;;  %v2905_v33 = vsel %vm2899_vm14, %v6400_v24, %v6399_v36 }
 0x5ec   : > { %6393 = vst [vmem:[#allocation13_spill] sm:$0xff] %v5189_v51  ;;  %6394 = vst [vmem:[#allocation17_spill] sm:$0xff] %v5195_v30  ;;  %v1958_v2 = vpop.xlane.xlu0 %1957  ;;  %v1961_v13 = vpop.xlane.xlu1 %1960  ;;  %4117 = vset.pattern.permute.xlu0 %v6395_v42  ;;  %v2904_v60 = vsel %vm2899_vm14, %v6398_v45, %v6397_v14  ;;  %v6402_v14 = vld [vmem:[#allocation22_spill] sm:$0xff] }
 0x5ed   : > { %v5199_v11 = vmax.f32 %v4853_v38, %v1958_v2  ;;  %v5202_v61 = vmax.f32 %v6396_v18, %v1961_v13  ;;  %2017 = vperm.xlu1 %4115, %v5177_v55  }
 0x5ef   : > { %v5213_v51 = vsel %vm2908_vm15, %v2904_v60, %v5199_v11  ;;  %2347 = vrot.lane.b32.xlu0 %v4569_v58, %s4351_s29  ;;  %v5219_v2 = vsel %vm2908_vm15, %v2905_v33, %v5202_v61  ;;  %v6403_v60 = vld [vmem:[#allocation21_spill] sm:$0xff]  ;;  %v6405_v58 = vld [vmem:[#allocation23_spill] sm:$0xff] }
 0x5f0   : > { %6401 = vst [vmem:[#allocation15_spill] sm:$0xff] %v5213_v51  ;;  %v1964_v13 = vpop.xlane.xlu0 %1963  ;;  %v1967_v55 = vpop.xlane.xlu1 %1966  ;;  %v2906_v36 = vsel %vm2899_vm14, %v6403_v60, %v4943_v6  ;;  %v6404_v51 = vld [vmem:[#allocation31_spill] sm:$0xff] }
 0x5f1   : > { %v5222_v30 = vmax.f32 %v4864_v49, %v1964_v13  ;;  %v5225_v59 = vmax.f32 %v6402_v14, %v1967_v55  ;;  %2012 = vperm.xlu1 %4115, %v5174_v63   ;;  %v2907_v40 = vsel %vm2899_vm14, %v6405_v58, %v6404_v51  ;;  %v4254_v55 = vld [vmem:[#allocation2] sm:$0xff]  ;;  %v4259_v13 = vld [vmem:[#allocation2 + $0x18] sm:$0xff] }
 0x5f3   : > { %v5236_v33 = vsel %vm2908_vm15, %v2906_v36, %v5222_v30  ;;  %2343 = vrot.lane.b32.xlu0 %v4561_v54, %s4351_s29  ;;  %v5242_v49 = vsel %vm2908_vm15, %v2907_v40, %v5225_v59  ;;  %v4255_v36 = vld [vmem:[#allocation2 + $0x10] sm:$0xff]  ;;  %v4256_v54 = vld [vmem:[#allocation2 + $0x20] sm:$0xff]  ;;  %v4258_v40 = vld [vmem:[#allocation2 + $0x8] sm:$0xff] }
 0x5f5   : > { %2027 = vperm.xlu1 %4115, %v5202_v61  }
 0x5f7   : > { %2339 = vrot.lane.b32.xlu0 %v4553_v50, %s4351_s29  ;;  %v4257_v50 = vld [vmem:[#allocation2 + $0x30] sm:$0xff] }
 0x5f9   : > { %2022 = vperm.xlu1 %4115, %v5199_v11  }
 0x5fb   : > { %2321 = vrot.lane.b32.xlu0 %v4254_v55, %s4351_s29  ;;  %v4260_v55 = vld [vmem:[#allocation2 + $0x28] sm:$0xff] }
 0x5fd   : > { %2032 = vperm.xlu1 %4115, %v5222_v30  }
 0x5ff   : > { %2325 = vrot.lane.b32.xlu0 %v4255_v36, %s4351_s29 }
 0x601   : > { %2037 = vperm.xlu1 %4115, %v5225_v59  }
 0x603   : > { %2329 = vrot.lane.b32.xlu0 %v4256_v54, %s4351_s29  ;;  %v979_v54 = vsel %vm835_vm9, %v4997_v0, 0.0  ;;  %v868_v0 = vsub.f32 %v4822_v37, %v4827_v41  ;;  %v873_v41 = vsub.f32 %v6396_v18, %v6400_v24 }
 0x605   : > { %2345 = vrot.lane.b32.xlu1 %v4565_v56, %s4351_s29  ;;  %v4261_v56 = vld [vmem:[#allocation2 + $0x38] sm:$0xff] }
 0x606   : > { %4116 = vset.pattern.permute.xlu1 %v6395_v42  ;;  %v6406_v42 = vld [vmem:[#allocation27_spill] sm:$0xff] }
 0x607   : > { %2333 = vrot.lane.b32.xlu0 %v4257_v50, %s4351_s29  ;;  %v964_v36 = vsel %vm835_vm9, %v6406_v42, 0.0  ;;  %v985_v50 = vsel %vm835_vm9, %v5009_v4, 0.0  ;;  %v976_v4 = vsel %vm835_vm9, %v4987_v39, 0.0 }
 0x609   : > { %2341 = vrot.lane.b32.xlu1 %v4557_v52, %s4351_s29  ;;  %v970_v52 = vsel %vm835_vm9, %v4973_v26, 0.0 }
 0x60d   : > { %2337 = vrot.lane.b32.xlu1 %v4549_v48, %s4351_s29  ;;  %v973_v48 = vsel %vm835_vm9, %v4984_v47, 0.0  ;;  %v967_v47 = vsel %vm835_vm9, %v4971_v10, 0.0 }
 0x611   : > { %2323 = vrot.lane.b32.xlu1 %v4258_v40, %s4351_s29  ;;  %v869_v40 = vsub.f32 %v4876_v43, %v4879_v53  ;;  %v876_v53 = vmul.f32 1.442695, %v868_v0  ;;  %v870_v43 = vsub.f32 %v6387_v22, %v6391_v62  ;;  %v875_v62 = vsub.f32 %v6402_v14, %v6405_v58 }
 0x613   : > { %v878_v26 = vmul.f32 1.442695, %v869_v40  ;;  %v880_v10 = vmul.f32 1.442695, %v870_v43  ;;  %v890_v22 = vmul.f32 1.442695, %v875_v62 }
 0x615   : > { %2327 = vrot.lane.b32.xlu1 %v4259_v13, %s4351_s29  ;;  %v871_v13 = vsub.f32 %v4829_v34, %v6392_v9  ;;  %4158 = vpow2.f32 %v878_v26  ;;  %v982_v34 = vsel %vm835_vm9, %v4999_v3, 0.0  ;;  %v886_v3 = vmul.f32 1.442695, %v873_v41  ;;  %v6413_v41 = vld [vmem:[#allocation11_spill] sm:$0xff] }
 0x619   : > { %2331 = vrot.lane.b32.xlu1 %v4260_v55, %s4351_s29  ;;  %v882_v55 = vmul.f32 1.442695, %v871_v13 }
 0x61b   : > { %4160 = vpow2.f32 %v882_v55  ;;  %v6411_v55 = vld [vmem:[#allocation14_spill] sm:$0xff] }
 0x61c   : > { %4162 = vpow2.f32 %v876_v53  ;;  %v6412_v53 = vld [vmem:[#allocation12_spill] sm:$0xff] }
 0x61d   : > { %2335 = vrot.lane.b32.xlu1 %v4261_v56, %s4351_s29  ;;  %v872_v56 = vsub.f32 %v4853_v38, %v6398_v45  ;;  %4164 = vpow2.f32 %v880_v10 }
 0x61f   : > { %v884_v39 = vmul.f32 1.442695, %v872_v56 }
 0x621   : > { %4166 = vpow2.f32 %v884_v39 }
 0x622   : > { %v5289_v9 = vpop.eup %4158  ;;  %4168 = vpow2.f32 %v886_v3 }
 0x623   : > { %6407 = vst [vmem:[#allocation18_spill] sm:$0xff] %v5289_v9  ;;  %4170 = vpow2.f32 %v890_v22 }
 0x626   : > { %965 = vadd.xlane.f32.xlu0 %v964_v36 }
 0x628   : > { %v5294_v37 = vpop.eup %4160 }
 0x629   : > { %6408 = vst [vmem:[#allocation20_spill] sm:$0xff] %v5294_v37  ;;  %v5301_v42 = vpop.eup %4162 }
 0x62a   : > { %971 = vadd.xlane.f32.xlu0 %v970_v52  ;;  %v5304_v38 = vpop.eup %4164 }
 0x62e   : > { %974 = vadd.xlane.f32.xlu0 %v973_v48  ;;  %v5307_v18 = vpop.eup %4166 }
 0x62f   : > { %6409 = vst [vmem:[#allocation19_spill] sm:$0xff] %v5307_v18  ;;  %v5312_v48 = vpop.eup %4168 }
 0x630   : > { %6410 = vst [vmem:[#allocation22_spill] sm:$0xff] %v5312_v48  ;;  %v5316_v40 = vpop.eup %4170 }
 0x632   : > { %980 = vadd.xlane.f32.xlu0 %v979_v54 }
 0x636   : > { %986 = vadd.xlane.f32.xlu0 %v985_v50 }
 0x641   : > { %968 = vadd.xlane.f32.xlu1 %v967_v47 }
 0x645   : > { %977 = vadd.xlane.f32.xlu1 %v976_v4 }
 0x649   : > { %983 = vadd.xlane.f32.xlu1 %v982_v34 }
 0x64c   : > { %1003 = vperm.xlu0 %4117, %v5289_v9   ;;  %v6437_v9 = vld [vmem:[#allocation51_spill] sm:$0xff] }
 0x650   : > { %1013 = vperm.xlu0 %4117, %v5294_v37   ;;  %v5548_v37 = vld [vmem:[#allocation3 + $0x28] sm:$0xff] }
 0x65a   : > { %998 = vperm.xlu1 %4116, %v5301_v42  }
 0x65e   : > { %1008 = vperm.xlu1 %4116, %v5304_v38  }
 0x660   : > { %v2008_v24 = vpop.permute.xlu1 %2007 }
 0x661   : > { %v2041_v45 = vsub.f32 %v5110_v31, %v2008_v24 }
 0x662   : > { %v2003_v36 = vpop.permute.xlu0 %2002  ;;  %1018 = vperm.xlu1 %4116, %v5307_v18   ;;  %v5528_v18 = vld [vmem:[#allocation3 + $0x18] sm:$0xff] }
 0x663   : > { %v2040_v14 = vsub.f32 %v5113_v29, %v2003_v36  ;;  %v2050_v58 = vmul.f32 1.442695, %v2041_v45 }
 0x664   : > { %v2352_v52 = vpop.permute.xlu1 %2351 }
 0x665   : > { %v2048_v54 = vmul.f32 1.442695, %v2040_v14  ;;  %3914 = vmatprep.subr.msk.mxu1 %vm681_vm4, %v2352_v52  ;;  %v6415_v14 = vld [vmem:[#allocation9_spill] sm:$0xff] }
 0x666   : > { %1023 = vperm.xlu1 %4116, %v5312_v48   ;;  %v2350_v10 = vpop.permute.xlu0 %2349  ;;  %v5593_v48 = vld [vmem:[#allocation4] sm:$0xff] }
 0x667   : > { %4172 = vpow2.f32 %v2048_v54 }
 0x668   : > { %4174 = vpow2.f32 %v2050_v58  ;;  %v2018_v50 = vpop.permute.xlu1 %2017 }
 0x669   : > { %v2043_v31 = vsub.f32 %v5118_v20, %v2018_v50 }
 0x66a   : > { %1033 = vperm.xlu1 %4116, %v5316_v40   ;;  %v2348_v62 = vpop.permute.xlu0 %2347 }
 0x66b   : > { %v2054_v26 = vmul.f32 1.442695, %v2043_v31  ;;  %v6417_v31 = vld [vmem:[#allocation7_spill] sm:$0xff] }
 0x66c   : > { %v2013_v13 = vpop.permute.xlu1 %2012 }
 0x66d   : > { %v2042_v29 = vsub.f32 %v5123_v8, %v2013_v13 }
 0x66e   : > { %2720 = vrot.lane.b32.xlu1 %v6411_v55, %s4349_s28  ;;  %v2344_v54 = vpop.permute.xlu0 %2343 }
 0x66f   : > { %v2052_v47 = vmul.f32 1.442695, %v2042_v29 }
 0x670   : > { %v2028_v0 = vpop.permute.xlu1 %2027 }
 0x671   : > { %4176 = vpow2.f32 %v2052_v47  ;;  %v2045_v4 = vsub.f32 %v5128_v1, %v2028_v0  ;;  %v6418_v47 = vld [vmem:[#allocation6_spill] sm:$0xff] }
 0x672   : > { %4178 = vpow2.f32 %v2054_v26  ;;  %2718 = vrot.lane.b32.xlu1 %v6412_v53, %s4349_s28  ;;  %v2340_v55 = vpop.permute.xlu0 %2339 }
 0x673   : > { %v2058_v56 = vmul.f32 1.442695, %v2045_v4 }
 0x674   : > { %v5326_v43 = vpop.eup %4172  ;;  %v2023_v20 = vpop.permute.xlu1 %2022 }
 0x675   : > { %v5328_v34 = vpop.eup %4174  ;;  %v2044_v8 = vsub.f32 %v5133_v28, %v2023_v20  ;;  %3902 = vmatprep.mubr.msk.f32.mxu1 %vm835_vm9, %v5326_v43  ;;  %v6414_v28 = vld [vmem:[#allocation10_spill] sm:$0xff] }
 0x676   : > { %2716 = vrot.lane.b32.xlu1 %v6413_v41, %s4349_s28  ;;  %3903 = vmatmul.mubr.msk.f32.vlgmr.msra.gmra.mxu1 %vm835_vm9, %v5328_v34  ;;  %v2322_v53 = vpop.permute.xlu0 %2321 }
 0x677   : > { %v2056_v1 = vmul.f32 1.442695, %v2044_v8  ;;  %3915 = vmatpush3.xpose.msk.msra.mxu1 %vm681_vm4, %v2352_v52 }
 0x678   : > { %3916 = vmatprep.subr.msk.mxu1 %vm681_vm4, %v2350_v10  ;;  %v2033_v39 = vpop.permute.xlu1 %2032 }
 0x679   : > { %4180 = vpow2.f32 %v2056_v1  ;;  %v2046_v3 = vsub.f32 %v5143_v19, %v2033_v39 }
 0x67a   : > { %4182 = vpow2.f32 %v2058_v56  ;;  %2714 = vrot.lane.b32.xlu1 %v6414_v28, %s4349_s28  ;;  %v1511_v28 = vsel %vm835_vm9, %v5038_v21, 0.0 }
 0x67b   : > { %v2060_v22 = vmul.f32 1.442695, %v2046_v3  ;;  %3917 = vmatpush3.xpose.msk.msra.mxu1 %vm681_vm4, %v2350_v10  ;;  %v2326_v10 = vpop.permute.xlu0 %2325  ;;  %v1505_v3 = vsel %vm835_vm9, %v5019_v15, 0.0 }
 0x67c   : > { %3918 = vmatprep.subr.msk.mxu1 %vm681_vm4, %v2348_v62  ;;  %v2038_v24 = vpop.permute.xlu1 %2037 }
 0x67d   : > { %4184 = vpow2.f32 %v2060_v22  ;;  %v2047_v45 = vsub.f32 %v5138_v57, %v2038_v24  ;;  %v6416_v57 = vld [vmem:[#allocation8_spill] sm:$0xff] }
 0x67e   : > { %v5345_v36 = vpop.eup %4176  ;;  %2712 = vrot.lane.b32.xlu1 %v6415_v14, %s4349_s28 }
 0x67f   : > { %v5349_v19 = vpop.eup %4178  ;;  %v2062_v58 = vmul.f32 1.442695, %v2047_v45  ;;  %3919 = vmatpush3.xpose.msk.msra.mxu1 %vm681_vm4, %v2348_v62  ;;  %3905 = vmatprep.mubr.msk.f32.mxu1 %vm835_vm9, %v5345_v36  ;;  %v2330_v56 = vpop.permute.xlu0 %2329  ;;  %v1514_v62 = vsel %vm835_vm9, %v5046_v5, 0.0 }
 0x680   : > { %3906 = vmatmul.mubr.msk.f32.gmra.mxu1 %vm835_vm9, %v5349_v19  ;;  %v2346_v52 = vpop.permute.xlu1 %2345 }
 0x681   : > { %4186 = vpow2.f32 %v2062_v58  ;;  %3920 = vmatprep.subr.msk.mxu1 %vm681_vm4, %v2346_v52 }
 0x682   : > { %2710 = vrot.lane.b32.xlu1 %v6416_v57, %s4349_s28 }
 0x683   : > { %3921 = vmatpush3.xpose.msk.msra.mxu1 %vm681_vm4, %v2346_v52  ;;  %v2334_v1 = vpop.permute.xlu0 %2333 }
 0x684   : > { %3922 = vmatprep.subr.msk.mxu1 %vm681_vm4, %v2344_v54  ;;  %v2342_v29 = vpop.permute.xlu1 %2341 }
 0x686   : > { %v5361_v50 = vpop.eup %4180  ;;  %2708 = vrot.lane.b32.xlu1 %v6417_v31, %s4349_s28 }
 0x687   : > { %v5365_v13 = vpop.eup %4182  ;;  %3923 = vmatpush3.xpose.msk.msra.mxu1 %vm681_vm4, %v2344_v54  ;;  %3908 = vmatprep.mubr.msk.f32.mxu1 %vm835_vm9, %v5361_v50 }
 0x688   : > { %3924 = vmatprep.subr.msk.mxu1 %vm681_vm4, %v2342_v29  ;;  %3909 = vmatmul.mubr.msk.f32.gmra.mxu1 %vm835_vm9, %v5365_v13  ;;  %v2338_v0 = vpop.permute.xlu1 %2337 }
 0x68a   : > { %v5373_v26 = vpop.eup %4184  ;;  %2706 = vrot.lane.b32.xlu1 %v6418_v47, %s4349_s28 }
 0x68b   : > { %3925 = vmatpush3.xpose.msk.msra.mxu1 %vm681_vm4, %v2342_v29  ;;  %3911 = vmatprep.mubr.msk.f32.mxu1 %vm835_vm9, %v5373_v26 }
 0x68c   : > { %3926 = vmatprep.subr.msk.mxu1 %vm681_vm4, %v2340_v55  ;;  %v2324_v20 = vpop.permute.xlu1 %2323 }
 0x68e   : > { %v5381_v4 = vpop.eup %4186 }
 0x68f   : > { %3927 = vmatpush3.xpose.msk.msra.mxu1 %vm681_vm4, %v2340_v55 }
 0x690   : > { %3912 = vmatmul.mubr.msk.f32.gmra.mxu1 %vm835_vm9, %v5381_v4  ;;  %3928 = vmatprep.subr.msk.mxu1 %vm681_vm4, %v2338_v0  ;;  %v2328_v8 = vpop.permute.xlu1 %2327 }
 0x691   : > { %3930 = vmatprep.mubr.msk.f32.mxu1 %vm681_vm4, %v2322_v53 }
 0x693   : > { %3929 = vmatpush3.xpose.msk.msra.mxu1 %vm681_vm4, %v2338_v0 }
 0x694   : > { %v2332_v41 = vpop.permute.xlu1 %2331 }
 0x696   : > { %3931 = vmatmul.mubr.msk.f32.vlgmr.msra.gmra.mxu1 %vm681_vm4, %v2324_v20 }
 0x697   : > { %3933 = vmatprep.mubr.msk.f32.mxu1 %vm681_vm4, %v2326_v10 }
 0x698   : > { %v2336_v39 = vpop.permute.xlu1 %2335 }
 0x69a   : > { %3934 = vmatmul.mubr.msk.f32.gmra.mxu1 %vm681_vm4, %v2328_v8 }
 0x69b   : > { %3936 = vmatprep.mubr.msk.f32.mxu1 %vm681_vm4, %v2330_v56 }
 0x69e   : > { %3937 = vmatmul.mubr.msk.f32.gmra.mxu1 %vm681_vm4, %v2332_v41 }
 0x69f   : > { %3939 = vmatprep.mubr.msk.f32.mxu1 %vm681_vm4, %v2334_v1 }
 0x6a2   : > { %3940 = vmatmul.mubr.msk.f32.gmra.mxu1 %vm681_vm4, %v2336_v39 }
 0x6ae   : > { %1506 = vadd.xlane.f32.xlu1 %v1505_v3 }
 0x6b2   : > { %1512 = vadd.xlane.f32.xlu1 %v1511_v28 }
 0x6b6   : > { %1515 = vadd.xlane.f32.xlu1 %v1514_v62 }
 0x6ca   : > { %v5402_v22 = vpop.xlane.xlu1 %968 }
 0x6cb   : > { %6419 = vst [vmem:[#allocation21_spill] sm:$0xff] %v5402_v22 }
 0x6ce   : > { %v5404_v24 = vpop.xlane.xlu1 %977 }
 0x6cf   : > { %6420 = vst [vmem:[#allocation31_spill] sm:$0xff] %v5404_v24  ;;  %v6438_v24 = vld [vmem:[#allocation53_spill] sm:$0xff] }
 0x6d2   : > { %v5406_v45 = vpop.xlane.xlu1 %983 }
 0x6d3   : > { %6421 = vst [vmem:[#allocation23_spill] sm:$0xff] %v5406_v45  ;;  %v5517_v45 = vld [vmem:[#allocation3] sm:$0xff] }
 0x6d6   : > { %v5408_v14 = vpop.permute.xlu1 %998 }
 0x6d7   : > { %6422 = vst [vmem:[#allocation27_spill] sm:$0xff] %v5408_v14  ;;  %v5568_v14 = vld [vmem:[#allocation3 + $0x38] sm:$0xff] }
 0x6da   : > { %v5410_v58 = vpop.permute.xlu1 %1008 }
 0x6db   : > { %6423 = vst [vmem:[#allocation14_spill] sm:$0xff] %v5410_v58  ;;  %v6448_v58 = vld [vmem:[#allocation26_spill] sm:$0xff] }
 0x6de   : > { %v5412_v15 = vpop.permute.xlu1 %1018 }
 0x6df   : > { %6424 = vst [vmem:[#allocation12_spill] sm:$0xff] %v5412_v15 }
 0x6e2   : > { %v5414_v52 = vpop.permute.xlu1 %1023 }
 0x6e3   : > { %6425 = vst [vmem:[#allocation11_spill] sm:$0xff] %v5414_v52  ;;  %v5558_v52 = vld [vmem:[#allocation3 + $0x20] sm:$0xff] }
 0x6e6   : > { %v5416_v21 = vpop.permute.xlu1 %1033 }
 0x6e7   : > { %6426 = vst [vmem:[#allocation10_spill] sm:$0xff] %v5416_v21  ;;  %v5538_v21 = vld [vmem:[#allocation3 + $0x10] sm:$0xff] }
 0x6ea   : > { %v2721_v57 = vpop.permute.xlu1 %2720 }
 0x6eb   : > { %3942 = vmatprep.subr.mxu0 %v2721_v57 }
 0x6ec   : > { %3943 = vmatpush3.msra.mxu0 %v2721_v57 }
 0x6ee   : > { %v2719_v5 = vpop.permute.xlu1 %2718 }
 0x6ef   : > { %3944 = vmatprep.subr.mxu0 %v2719_v5 }
 0x6f0   : > { %3945 = vmatpush3.msra.mxu0 %v2719_v5 }
 0x6f2   : > { %v2717_v54 = vpop.permute.xlu1 %2716 }
 0x6f3   : > { %3946 = vmatprep.subr.mxu0 %v2717_v54 }
 0x6f4   : > { %3947 = vmatpush3.msra.mxu0 %v2717_v54  ;;  %v5442_v54 = vld [vmem:[#allocation3 + $0x30] sm:$0xff] }
 0x6f6   : > { %v2715_v31 = vpop.permute.xlu1 %2714 }
 0x6f7   : > { %3948 = vmatprep.subr.mxu0 %v2715_v31 }
 0x6f8   : > { %3949 = vmatpush3.msra.mxu0 %v2715_v31  ;;  %v874_v31 = vsub.f32 %v5442_v54, %v6403_v60 }
 0x6fa   : > { %v2713_v29 = vpop.permute.xlu1 %2712 }
 0x6fb   : > { %3950 = vmatprep.subr.mxu0 %v2713_v29 }
 0x6fc   : > { %3951 = vmatpush3.msra.mxu0 %v2713_v29 }
 0x6fe   : > { %v2711_v55 = vpop.permute.xlu1 %2710 }
 0x6ff   : > { %3952 = vmatprep.subr.mxu0 %v2711_v55 }
 0x700   : > { %3953 = vmatpush3.msra.mxu0 %v2711_v55 }
 0x702   : > { %v2709_v47 = vpop.permute.xlu1 %2708 }
 0x703   : > { %3954 = vmatprep.subr.mxu0 %v2709_v47 }
 0x704   : > { %3955 = vmatpush3.msra.mxu0 %v2709_v47 }
 0x706   : > { %v2707_v0 = vpop.permute.xlu1 %2706 }
 0x707   : > { %3956 = vmatprep.subr.mxu0 %v2707_v0 }
 0x708   : > { %3957 = vmatpush3.msra.mxu0 %v2707_v0  ;;  %v888_v0 = vmul.f32 1.442695, %v874_v31  ;;  %v6323_v31 = vmov 3  }
 0x709   : > { %4118 = vset.pattern.permute.xlu1 %v6323_v31 }
 0x70a   : > { %4188 = vpow2.f32 %v888_v0 }
 0x736   : > { %v5418_v53 = vpop.f32.mrf.mxu1 }
 0x738   : > { %v5420_v20 = vpop.f32.mrf.mxu1 }
 0x740   : > { %v5422_v10 = vpop.f32.mrf.mxu1 }
 0x742   : > { %v5424_v8 = vpop.f32.mrf.mxu1 }
 0x748   : > { %v5426_v56 = vpop.f32.mrf.mxu1 }
 0x749   : > { %6427 = vst [vmem:[#allocation9_spill] sm:$0xff] %v5426_v56 }
 0x74a   : > { %v5428_v41 = vpop.f32.mrf.mxu1 }
 0x750   : > { %v5430_v1 = vpop.f32.mrf.mxu1 }
 0x751   : > { %6428 = vst [vmem:[#allocation8_spill] sm:$0xff] %v5430_v1 }
 0x752   : > { %v5432_v39 = vpop.f32.mrf.mxu1 }
 0x756   : > { %v3932_v3 = vpop.f32.mrf.mxu1 }
 0x757   : > { %v5435_v28 = vadd.f32 %v3932_v3, %v4728_v44 }
 0x758   : > { %v2451_v62 = vpop.f32.mrf.mxu1 }
 0x759   : > { %v5438_v57 = vadd.f32 %v2451_v62, %v4731_v46  ;;  %v2493_v5 = vsel %vm835_vm9, %v5435_v28, -inf }
 0x75a   : > { %2494 = vmax.xlane.f32.xlu0 %v2493_v5  ;;  %v3935_v29 = vpop.f32.mrf.mxu1 }
 0x75b   : > { %v5447_v55 = vadd.f32 %v3935_v29, %v4737_v12  ;;  %v2490_v44 = vsel %vm835_vm9, %v5438_v57, -inf }
 0x75c   : > { %2491 = vmax.xlane.f32.xlu1 %v2490_v44  ;;  %v2461_v47 = vpop.f32.mrf.mxu1 }
 0x75d   : > { %v2499_v46 = vsel %vm835_vm9, %v5447_v55, -inf  ;;  %v5454_v3 = vadd.f32 %v2461_v47, %v4745_v16 }
 0x75e   : > { %v3938_v62 = vpop.f32.mrf.mxu1 }
 0x75f   : > { %v5457_v60 = vadd.f32 %v3938_v62, %v4758_v25  ;;  %v2496_v12 = vsel %vm835_vm9, %v5454_v3, -inf  ;;  %v5474_v62 = vpop.eup %4188 }
 0x760   : > { %2500 = vmax.xlane.f32.xlu1 %v2499_v46  ;;  %v2471_v5 = vpop.f32.mrf.mxu1  ;;  %6429 = vst [vmem:[#allocation7_spill] sm:$0xff] %v5474_v62 }
 0x761   : > { %v2505_v29 = vsel %vm835_vm9, %v5457_v60, -inf  ;;  %v5464_v44 = vadd.f32 %v2471_v5, %v4761_v27  ;;  %v1508_v5 = vsel %vm835_vm9, %v5023_v17, 0.0 }
 0x762   : > { %v3941_v16 = vpop.f32.mrf.mxu1 }
 0x763   : > { %v5468_v25 = vadd.f32 %v3941_v16, %v4772_v32  ;;  %v2502_v47 = vsel %vm835_vm9, %v5464_v44, -inf }
 0x764   : > { %2497 = vmax.xlane.f32.xlu1 %v2496_v12  ;;  %v2481_v46 = vpop.f32.mrf.mxu1  ;;  %v1502_v12 = vsel %vm835_vm9, %v5017_v7, 0.0  ;;  %v5499_v7 = vpop.xlane.xlu1 %1506 }
 0x765   : > { %v2511_v0 = vsel %vm835_vm9, %v5468_v25, -inf  ;;  %v5477_v27 = vadd.f32 %v2481_v46, %v4775_v35  ;;  %v1517_v35 = vsel %vm835_vm9, %v5049_v23, 0.0  ;;  %6432 = vst [vmem:[#allocation55_spill] sm:$0xff] %v5499_v7 }
 0x767   : > { %v2508_v32 = vsel %vm835_vm9, %v5477_v27, -inf }
 0x768   : > { %2506 = vmax.xlane.f32.xlu1 %v2505_v29  ;;  %v5489_v29 = vpop.xlane.xlu0 %965  ;;  %v5503_v17 = vpop.xlane.xlu1 %1512 }
 0x769   : > { %6434 = vst [vmem:[#allocation57_spill] sm:$0xff] %v5503_v17 }
 0x76c   : > { %2503 = vmax.xlane.f32.xlu1 %v2502_v47  ;;  %v5491_v16 = vpop.xlane.xlu0 %971  ;;  %v5507_v23 = vpop.xlane.xlu1 %1515 }
 0x76d   : > { %6436 = vst [vmem:[#allocation59_spill] sm:$0xff] %v5507_v23 }
 0x770   : > { %1028 = vperm.xlu0 %4117, %v5474_v62   ;;  %2512 = vmax.xlane.f32.xlu1 %v2511_v0  ;;  %v5493_v47 = vpop.xlane.xlu0 %974 }
 0x771   : > { %6430 = vst [vmem:[#allocation6_spill] sm:$0xff] %v5493_v47 }
 0x774   : > { %2509 = vmax.xlane.f32.xlu1 %v2508_v32  ;;  %4119 = vset.pattern.permute.xlu0 %v6323_v31  ;;  %v5495_v46 = vpop.xlane.xlu0 %980 }
 0x775   : > { %6431 = vst [vmem:[#allocation54_spill] sm:$0xff] %v5495_v46 }
 0x778   : > { %v5497_v0 = vpop.xlane.xlu0 %986 }
 0x77c   : > { %v5501_v32 = vpop.permute.xlu0 %1003 }
 0x77d   : > { %6433 = vst [vmem:[#allocation56_spill] sm:$0xff] %v5501_v32 }
 0x78f   : > { %1503 = vadd.xlane.f32.xlu0 %v1502_v12  ;;  %v5505_v12 = vpop.permute.xlu0 %1013 }
 0x790   : > { %6435 = vst [vmem:[#allocation58_spill] sm:$0xff] %v5505_v12 }
 0x793   : > { %1509 = vadd.xlane.f32.xlu0 %v1508_v5 }
 0x797   : > { %1518 = vadd.xlane.f32.xlu0 %v1517_v35  ;;  %v5509_v35 = vld [vmem:[#allocation3 + $0x8] sm:$0xff] }
 0x7e3   : > { %v2495_v5 = vpop.xlane.xlu0 %2494 }
 0x7e4   : > { %v5512_v31 = vmax.f32 %v5509_v35, %v2495_v5 }
 0x7e5   : > { %v2492_v22 = vpop.xlane.xlu1 %2491 }
 0x7e6   : > { %v2919_v7 = vsel %vm2917_vm0, %v6437_v9, %v5512_v31  ;;  %v5520_v62 = vmax.f32 %v5517_v45, %v2492_v22  ;;  %2553 = vperm.xlu1 %4118, %v5512_v31   ;;  %v6439_v22 = vld [vmem:[#allocation17_spill] sm:$0xff] }
 0x7e7   : > { %2928 = vst.msk [vmem:[#allocation3 + $0x8] sm:$0xff] %vm2926_vm1, %v2919_v7 }
 0x7e8   : > { %v2918_v23 = vsel %vm2917_vm0, %v6438_v24, %v5520_v62 }
 0x7e9   : > { %2927 = vst.msk [vmem:[#allocation3] sm:$0xff] %vm2926_vm1, %v2918_v23  ;;  %v2501_v5 = vpop.xlane.xlu1 %2500  ;;  %v6440_v23 = vld [vmem:[#allocation13_spill] sm:$0xff] }
 0x7ea   : > { %v5531_v9 = vmax.f32 %v5528_v18, %v2501_v5  ;;  %2548 = vperm.xlu1 %4118, %v5520_v62  }
 0x7eb   : > { %v5595_v32 = vpop.permute.xlu0 %1028 }
 0x7ec   : > { %v2921_v47 = vsel %vm2917_vm0, %v6439_v22, %v5531_v9 }
 0x7ed   : > { %2930 = vst.msk [vmem:[#allocation3 + $0x18] sm:$0xff] %vm2926_vm1, %v2921_v47  ;;  %v2498_v7 = vpop.xlane.xlu1 %2497 }
 0x7ee   : > { %v5541_v24 = vmax.f32 %v5538_v21, %v2498_v7  ;;  %2563 = vperm.xlu1 %4118, %v5531_v9  }
 0x7f0   : > { %v2920_v5 = vsel %vm2917_vm0, %v6440_v23, %v5541_v24 }
 0x7f1   : > { %2929 = vst.msk [vmem:[#allocation3 + $0x10] sm:$0xff] %vm2926_vm1, %v2920_v5  ;;  %v2507_v17 = vpop.xlane.xlu1 %2506  ;;  %v6443_v5 = vld [vmem:[#allocation15_spill] sm:$0xff] }
 0x7f2   : > { %v5551_v22 = vmax.f32 %v5548_v37, %v2507_v17  ;;  %2558 = vperm.xlu1 %4118, %v5541_v24   ;;  %6449 = vst [vmem:[#allocation15_spill] sm:$0xff] %v5593_v48 }
 0x7f4   : > { %6441 = vst [vmem:[#allocation51_spill] sm:$0xff] %v5551_v22  ;;  %v2923_v47 = vsel %vm2917_vm0, %v5219_v2, %v5551_v22 }
 0x7f5   : > { %2932 = vst.msk [vmem:[#allocation3 + $0x28] sm:$0xff] %vm2926_vm1, %v2923_v47  ;;  %v2504_v7 = vpop.xlane.xlu1 %2503 }
 0x7f6   : > { %v5561_v23 = vmax.f32 %v5558_v52, %v2504_v7  ;;  %2573 = vperm.xlu1 %4118, %v5551_v22   ;;  %v6452_v22 = vld [vmem:[#allocation24_spill] sm:$0xff] }
 0x7f8   : > { %6442 = vst [vmem:[#allocation53_spill] sm:$0xff] %v5561_v23  ;;  %v2922_v17 = vsel %vm2917_vm0, %v6443_v5, %v5561_v23  ;;  %v6446_v5 = vld [vmem:[#allocation25_spill] sm:$0xff] }
 0x7f9   : > { %2931 = vst.msk [vmem:[#allocation3 + $0x20] sm:$0xff] %vm2926_vm1, %v2922_v17  ;;  %v2513_v12 = vpop.xlane.xlu1 %2512  ;;  %v1406_v17 = vsub.f32 %v5517_v45, %v6446_v5  ;;  %6450 = vst [vmem:[#allocation25_spill] sm:$0xff] %v5595_v32  ;;  %v1407_v32 = vsub.f32 %v5509_v35, %v6452_v22  ;;  %v6456_v22 = vld [vmem:[#allocation29_spill] sm:$0xff] }
 0x7fa   : > { %v5571_v2 = vmax.f32 %v5568_v14, %v2513_v12  ;;  %2568 = vperm.xlu1 %4118, %v5561_v23  }
 0x7fc   : > { %6444 = vst [vmem:[#allocation17_spill] sm:$0xff] %v5571_v2  ;;  %v2925_v47 = vsel %vm2917_vm0, %v5242_v49, %v5571_v2  ;;  %v6447_v49 = vmov 1  }
 0x7fd   : > { %2934 = vst.msk [vmem:[#allocation3 + $0x38] sm:$0xff] %vm2926_vm1, %v2925_v47  ;;  %v2510_v7 = vpop.xlane.xlu1 %2509  ;;  %v1414_v47 = vmul.f32 1.442695, %v1406_v17  ;;  %v5600_v17 = vld [vmem:[#allocation4 + $0x10] sm:$0xff] }
 0x7fe   : > { %v5579_v15 = vmax.f32 %v5442_v54, %v2510_v7  ;;  %2583 = vperm.xlu1 %4118, %v5571_v2   ;;  %v1408_v7 = vsub.f32 %v5538_v21, %v6448_v58 }
 0x7ff   : > { %4190 = vpow2.f32 %v1414_v47 }
 0x800   : > { %6445 = vst [vmem:[#allocation13_spill] sm:$0xff] %v5579_v15  ;;  %v2924_v12 = vsel %vm2917_vm0, %v5236_v33, %v5579_v15  ;;  %2578 = vperm.xlu0 %4119, %v5579_v15   ;;  %v1418_v46 = vmul.f32 1.442695, %v1408_v7  ;;  %v956_v33 = vmul.f32 %v5301_v42, %v5593_v48 }
 0x801   : > { %2933 = vst.msk [vmem:[#allocation3 + $0x30] sm:$0xff] %vm2926_vm1, %v2924_v12 }
 0x802   : > { %4120 = vset.pattern.permute.xlu1 %v6447_v49  ;;  %4192 = vpow2.f32 %v1418_v46  ;;  %v988_v58 = vadd.f32 %v5489_v29, %v956_v33  ;;  %v958_v46 = vmul.f32 %v5304_v38, %v5600_v17  ;;  %v6453_v38 = vld [vmem:[#allocation32_spill] sm:$0xff]  ;;  %v1416_v33 = vmul.f32 1.442695, %v1407_v32 }
 0x804   : > { %4121 = vset.pattern.permute.xlu0 %v6447_v49  ;;  %v990_v42 = vadd.f32 %v5491_v16, %v958_v46  ;;  %4194 = vpow2.f32 %v1416_v33 }
 0x80c   : > { %v4191_v5 = vpop.eup %4190 }
 0x80d   : > { %v1494_v12 = vmul.f32 %v4191_v5, %v5593_v48  ;;  %v6451_v48 = vld [vmem:[#allocation33_spill] sm:$0xff] }
 0x80e   : > { %v1523_v56 = vsel %vm835_vm9, %v6451_v48, 0.0 }
 0x80f   : > { %v4193_v15 = vpop.eup %4192 }
 0x810   : > { %v1496_v7 = vmul.f32 %v4193_v15, %v5600_v17 }
 0x811   : > { %v5627_v32 = vpop.eup %4194 }
 0x818   : > { %v1504_v2 = vpop.xlane.xlu0 %1503 }
 0x819   : > { %v1526_v49 = vadd.f32 %v1504_v2, %v1494_v12  ;;  %v1520_v2 = vsel %vm835_vm9, %v6453_v38, 0.0  ;;  %v6454_v12 = vld [vmem:[#allocation28_spill] sm:$0xff] }
 0x81b   : > { %v5606_v47 = vsel %vm2899_vm14, %v988_v58, %v1526_v49  ;;  %v1409_v58 = vsub.f32 %v5528_v18, %v6454_v12 }
 0x81c   : > { %v1510_v1 = vpop.xlane.xlu0 %1509 }
 0x81d   : > { %v1528_v23 = vadd.f32 %v1510_v1, %v1496_v7  ;;  %v6455_v1 = vld [vmem:[#allocation30_spill] sm:$0xff]  ;;  %v1420_v48 = vmul.f32 1.442695, %v1409_v58 }
 0x81e   : > { %v1410_v16 = vsub.f32 %v5558_v52, %v6455_v1 }
 0x81f   : > { %v5615_v29 = vsel %vm2899_vm14, %v990_v42, %v1528_v23  ;;  %1524 = vadd.xlane.f32.xlu0 %v1523_v56  ;;  %4196 = vpow2.f32 %v1420_v48  ;;  %v1411_v23 = vsub.f32 %v5548_v37, %v6456_v22  ;;  %v1412_v56 = vsub.f32 %v5442_v54, %v4943_v6  ;;  %v6462_v48 = vld [vmem:[#allocation42_spill] sm:$0xff] }
 0x820   : > { %v1422_v49 = vmul.f32 1.442695, %v1410_v16  ;;  %v1413_v42 = vsub.f32 %v5568_v14, %v6404_v51  ;;  %v6458_v6 = vmov 2   ;;  %v6460_v51 = vld [vmem:[#allocation49_spill] sm:$0xff]  ;;  %v6461_v16 = vld [vmem:[#allocation43_spill] sm:$0xff]  ;;  %v6464_v22 = vld [vmem:[#allocation46_spill] sm:$0xff] }
 0x821   : > { %v1424_v46 = vmul.f32 1.442695, %v1411_v23  ;;  %v1426_v7 = vmul.f32 1.442695, %v1412_v56  ;;  %v6465_v23 = vld [vmem:[#allocation48_spill] sm:$0xff]  ;;  %v2072_v56 = vsel %vm835_vm9, %v5326_v43, 0.0 }
 0x822   : > { %1521 = vadd.xlane.f32.xlu1 %v1520_v2  ;;  %4198 = vpow2.f32 %v1422_v49  ;;  %v1428_v38 = vmul.f32 1.442695, %v1413_v42  ;;  %v6457_v2 = vld [vmem:[#allocation45_spill] sm:$0xff]  ;;  %v6463_v49 = vld [vmem:[#allocation44_spill] sm:$0xff]  ;;  %v2078_v42 = vsel %vm835_vm9, %v5345_v36, 0.0 }
 0x823   : > { %4200 = vpow2.f32 %v1424_v46 }
 0x824   : > { %4202 = vpow2.f32 %v1426_v7 }
 0x825   : > { %4204 = vpow2.f32 %v1428_v38 }
 0x82c   : > { %v5634_v33 = vpop.eup %4196 }
 0x82f   : > { %v5640_v12 = vpop.eup %4198 }
 0x833   : > { %1536 = vperm.xlu1 %4120, %v4191_v5   ;;  %v6459_v5 = vld [vmem:[#allocation47_spill] sm:$0xff] }
 0x835   : > { %1541 = vperm.xlu0 %4121, %v5627_v32  }
 0x837   : > { %1546 = vperm.xlu1 %4120, %v4193_v15   ;;  %v5645_v15 = vpop.eup %4200 }
 0x838   : > { %v5648_v58 = vpop.eup %4202 }
 0x839   : > { %1747 = vrot.lane.b32.xlu0 %v6457_v2, %s4347_s19  ;;  %v5651_v1 = vpop.eup %4204 }
 0x83a   : > { %4123 = vset.pattern.permute.xlu0 %v6458_v6 }
 0x83b   : > { %1551 = vperm.xlu1 %4120, %v5634_v33  }
 0x83d   : > { %1751 = vrot.lane.b32.xlu0 %v6459_v5, %s4347_s19  ;;  %v2081_v5 = vsel %vm835_vm9, %v5349_v19, 0.0 }
 0x83f   : > { %1556 = vperm.xlu1 %4120, %v5640_v12  }
 0x841   : > { %1755 = vrot.lane.b32.xlu0 %v6460_v51, %s4347_s19 }
 0x843   : > { %1561 = vperm.xlu1 %4120, %v5645_v15  }
 0x847   : > { %1566 = vperm.xlu1 %4120, %v5648_v58  }
 0x84b   : > { %1571 = vperm.xlu1 %4120, %v5651_v1  }
 0x84f   : > { %1743 = vrot.lane.b32.xlu1 %v6461_v16, %s4347_s19 }
 0x850   : > { %4122 = vset.pattern.permute.xlu1 %v6458_v6 }
 0x853   : > { %1745 = vrot.lane.b32.xlu1 %v6462_v48, %s4347_s19 }
 0x857   : > { %1749 = vrot.lane.b32.xlu1 %v6463_v49, %s4347_s19 }
 0x85b   : > { %1753 = vrot.lane.b32.xlu1 %v6464_v22, %s4347_s19  ;;  %v6466_v22 = vld [vmem:[#allocation50_spill] sm:$0xff] }
 0x85c   : > { %v1977_v19 = vsub.f32 %v5509_v35, %v6466_v22 }
 0x85f   : > { %1757 = vrot.lane.b32.xlu1 %v6465_v23, %s4347_s19 }
 0x860   : > { %2073 = vadd.xlane.f32.xlu0 %v2072_v56 }
 0x861   : > { %v2554_v46 = vpop.permute.xlu1 %2553 }
 0x862   : > { %v2587_v7 = vsub.f32 %v5435_v28, %v2554_v46  ;;  %v2087_v28 = vsel %vm835_vm9, %v5365_v13, 0.0  ;;  %v1986_v46 = vmul.f32 1.442695, %v1977_v19 }
 0x864   : > { %2079 = vadd.xlane.f32.xlu0 %v2078_v42  ;;  %v2596_v6 = vmul.f32 1.442695, %v2587_v7 }
 0x865   : > { %v2549_v38 = vpop.permute.xlu1 %2548 }
 0x866   : > { %v2586_v2 = vsub.f32 %v5438_v57, %v2549_v38  ;;  %v2093_v57 = vsel %vm835_vm9, %v5381_v4, 0.0 }
 0x868   : > { %v2594_v51 = vmul.f32 1.442695, %v2586_v2  ;;  %2082 = vadd.xlane.f32.xlu0 %v2081_v5 }
 0x869   : > { %v2564_v16 = vpop.permute.xlu1 %2563 }
 0x86a   : > { %4206 = vpow2.f32 %v2594_v51  ;;  %v2589_v43 = vsub.f32 %v5447_v55, %v2564_v16 }
 0x86b   : > { %4208 = vpow2.f32 %v2596_v6 }
 0x86c   : > { %2088 = vadd.xlane.f32.xlu0 %v2087_v28  ;;  %v2600_v49 = vmul.f32 1.442695, %v2589_v43 }
 0x86d   : > { %v2559_v36 = vpop.permute.xlu1 %2558 }
 0x86e   : > { %v2588_v48 = vsub.f32 %v5454_v3, %v2559_v36  ;;  %v5685_v3 = vpop.xlane.xlu0 %1518  ;;  %v2522_v36 = vsub.f32 %v5517_v45, %v5520_v62  ;;  %v2084_v62 = vsel %vm835_vm9, %v5361_v50, 0.0  ;;  %v2090_v50 = vsel %vm835_vm9, %v5373_v26, 0.0 }
 0x86f   : > { %v1980_v26 = vsub.f32 %v5558_v52, %v5199_v11 }
 0x870   : > { %v2598_v23 = vmul.f32 1.442695, %v2588_v48  ;;  %2094 = vadd.xlane.f32.xlu0 %v2093_v57 }
 0x871   : > { %v2574_v56 = vpop.permute.xlu1 %2573 }
 0x872   : > { %4210 = vpow2.f32 %v2598_v23  ;;  %v2591_v55 = vsub.f32 %v5457_v60, %v2574_v56  ;;  %v6468_v23 = vmov 3  }
 0x873   : > { %4212 = vpow2.f32 %v2600_v49  ;;  %v6467_v49 = vld [vmem:[#allocation52_spill] sm:$0xff] }
 0x874   : > { %v2604_v38 = vmul.f32 1.442695, %v2591_v55  ;;  %4214 = vpow2.f32 %v1986_v46  ;;  %v1976_v57 = vsub.f32 %v5517_v45, %v6467_v49  ;;  %v1978_v45 = vsub.f32 %v5538_v21, %v5174_v63 }
 0x875   : > { %v2569_v13 = vpop.permute.xlu1 %2568 }
 0x876   : > { %v2590_v7 = vsub.f32 %v5464_v44, %v2569_v13  ;;  %v1988_v46 = vmul.f32 1.442695, %v1978_v45  ;;  %v6469_v13 = vld [vmem:[#allocation16_spill] sm:$0xff] }
 0x877   : > { %v5683_v42 = vpop.eup %4206 }
 0x878   : > { %v5687_v4 = vpop.eup %4208  ;;  %v2602_v2 = vmul.f32 1.442695, %v2590_v7  ;;  %3958 = vmatprep.mubr.msk.f32.mxu0 %vm835_vm9, %v5683_v42  ;;  %v1979_v7 = vsub.f32 %v5528_v18, %v6469_v13 }
 0x879   : > { %3959 = vmatmul.mubr.msk.f32.vlgmr.msra.gmra.mxu0 %vm835_vm9, %v5687_v4  ;;  %v2584_v60 = vpop.permute.xlu1 %2583 }
 0x87a   : > { %4216 = vpow2.f32 %v2602_v2  ;;  %v2593_v6 = vsub.f32 %v5468_v25, %v2584_v60  ;;  %v2075_v25 = vsel %vm835_vm9, %v5328_v34, 0.0  ;;  %v1984_v34 = vmul.f32 1.442695, %v1976_v57 }
 0x87b   : > { %4218 = vpow2.f32 %v2604_v38  ;;  %v2579_v44 = vpop.permute.xlu0 %2578  ;;  %v1990_v63 = vmul.f32 1.442695, %v1979_v7  ;;  %v1992_v38 = vmul.f32 1.442695, %v1980_v26  ;;  %v1982_v60 = vsub.f32 %v5442_v54, %v5222_v30 }
 0x87c   : > { %v2592_v5 = vsub.f32 %v5477_v27, %v2579_v44  ;;  %v2608_v51 = vmul.f32 1.442695, %v2593_v6  ;;  %v2530_v27 = vmul.f32 1.442695, %v2522_v36  ;;  %v2618_v7 = vsel %vm835_vm9, %v5683_v42, 0.0 }
 0x87d   : > { %v1996_v11 = vmul.f32 1.442695, %v1982_v60  ;;  %v2525_v42 = vsub.f32 %v5528_v18, %v5531_v9  ;;  %v5807_v60 = vld [vmem:[#allocation5 + $0x8] sm:$0xff]  ;;  %v2524_v18 = vsub.f32 %v5538_v21, %v5541_v24  ;;  %v6474_v24 = vld [vmem:[#allocation9_spill] sm:$0xff] }
 0x87e   : > { %v2606_v16 = vmul.f32 1.442695, %v2592_v5 }
 0x87f   : > { %v5695_v43 = vpop.eup %4210 }
 0x880   : > { %v5697_v28 = vpop.eup %4212  ;;  %4220 = vpow2.f32 %v2606_v16  ;;  %3961 = vmatprep.mubr.msk.f32.mxu0 %vm835_vm9, %v5695_v43 }
 0x881   : > { %4222 = vpow2.f32 %v2608_v51  ;;  %3962 = vmatmul.mubr.msk.f32.gmra.mxu0 %vm835_vm9, %v5697_v28  ;;  %v5707_v48 = vpop.eup %4214  ;;  %v5762_v51 = vld [vmem:[#allocation4 + $0x38] sm:$0xff] }
 0x882   : > { %4224 = vpow2.f32 %v2530_v27  ;;  %v963_v16 = vmul.f32 %v5316_v40, %v5762_v51 }
 0x883   : > { %2076 = vadd.xlane.f32.xlu1 %v2075_v25  ;;  %4226 = vpow2.f32 %v1984_v34 }
 0x884   : > { %4228 = vpow2.f32 %v1988_v46  ;;  %v995_v25 = vadd.f32 %v5497_v0, %v963_v16  ;;  %v5788_v0 = vld [vmem:[#allocation5 + $0x18] sm:$0xff]  ;;  %v2534_v16 = vmul.f32 1.442695, %v2524_v18  ;;  %v6479_v18 = vld [vmem:[#allocation56_spill] sm:$0xff] }
 0x885   : > { %4230 = vpow2.f32 %v1990_v63  ;;  %6470 = vst [vmem:[#allocation26_spill] sm:$0xff] %v5788_v0  ;;  %v2523_v63 = vsub.f32 %v5509_v35, %v5512_v31 }
 0x886   : > { %2111 = vperm.xlu0 %4123, %v5707_v48   ;;  %4232 = vpow2.f32 %v1992_v38 }
 0x887   : > { %v5714_v22 = vpop.eup %4216  ;;  %2085 = vadd.xlane.f32.xlu1 %v2084_v62 }
 0x888   : > { %v5716_v19 = vpop.eup %4218  ;;  %3964 = vmatprep.mubr.msk.f32.mxu0 %vm835_vm9, %v5714_v22 }
 0x889   : > { %3965 = vmatmul.mubr.msk.f32.gmra.mxu0 %vm835_vm9, %v5716_v19 }
 0x88a   : > { %2293 = vrot.lane.b32.xlu0 %v5424_v8, %s4345_s8 }
 0x88b   : > { %2091 = vadd.xlane.f32.xlu1 %v2090_v50  ;;  %4125 = vset.pattern.permute.xlu0 %v6468_v23 }
 0x88d   : > { %v5729_v56 = vpop.eup %4220 }
 0x88e   : > { %v5731_v55 = vpop.eup %4222  ;;  %2297 = vrot.lane.b32.xlu0 %v5428_v41, %s4345_s8  ;;  %3967 = vmatprep.mubr.msk.f32.mxu0 %vm835_vm9, %v5729_v56  ;;  %v1981_v41 = vsub.f32 %v5548_v37, %v5202_v61 }
 0x88f   : > { %3968 = vmatmul.mubr.msk.f32.gmra.mxu0 %vm835_vm9, %v5731_v55  ;;  %v5745_v8 = vpop.eup %4224 }
 0x890   : > { %v1994_v2 = vmul.f32 1.442695, %v1981_v41  ;;  %v5752_v6 = vpop.eup %4226  ;;  %v2627_v41 = vsel %vm835_vm9, %v5697_v28, 0.0  ;;  %v2536_v28 = vmul.f32 1.442695, %v2525_v42  ;;  %v5841_v42 = vld [vmem:[#allocation5] sm:$0xff] }
 0x891   : > { %v5757_v44 = vpop.eup %4228 }
 0x892   : > { %2301 = vrot.lane.b32.xlu0 %v5432_v39, %s4345_s8  ;;  %4234 = vpow2.f32 %v1994_v2  ;;  %v1983_v39 = vsub.f32 %v5568_v14, %v5225_v59  ;;  %v5760_v5 = vpop.eup %4230  ;;  %v1501_v59 = vmul.f32 %v5651_v1, %v5762_v51  ;;  %v2532_v2 = vmul.f32 1.442695, %v2523_v63 }
 0x893   : > { %4236 = vpow2.f32 %v1996_v11  ;;  %v5765_v30 = vpop.eup %4232 }
 0x894   : > { %v1998_v61 = vmul.f32 1.442695, %v1983_v39 }
 0x896   : > { %2652 = vperm.xlu0 %4125, %v5745_v8   ;;  %4238 = vpow2.f32 %v1998_v61 }
 0x897   : > { %4240 = vpow2.f32 %v2532_v2  ;;  %v6477_v2 = vld [vmem:[#allocation8_spill] sm:$0xff] }
 0x898   : > { %4242 = vpow2.f32 %v2536_v28 }
 0x899   : > { %4244 = vpow2.f32 %v2534_v16  ;;  %v6480_v16 = vld [vmem:[#allocation13_spill] sm:$0xff] }
 0x89c   : > { %2106 = vperm.xlu1 %4122, %v5752_v6  }
 0x89f   : > { %v5773_v49 = vpop.eup %4234 }
 0x8a0   : > { %2116 = vperm.xlu1 %4122, %v5757_v44   ;;  %v5781_v34 = vpop.eup %4236 }
 0x8a3   : > { %v5786_v45 = vpop.eup %4238 }
 0x8a4   : > { %2121 = vperm.xlu1 %4122, %v5760_v5  }
 0x8a8   : > { %2126 = vperm.xlu1 %4122, %v5765_v30   ;;  %v1525_v36 = vpop.xlane.xlu0 %1524 }
 0x8a9   : > { %v1533_v27 = vadd.f32 %v1525_v36, %v1501_v59  ;;  %v6473_v59 = vld [vmem:[#allocation51_spill] sm:$0xff] }
 0x8aa   : > { %v2527_v36 = vsub.f32 %v5548_v37, %v6473_v59  ;;  %v2528_v59 = vsub.f32 %v5442_v54, %v6480_v16 }
 0x8ab   : > { %v5776_v57 = vsel %vm2899_vm14, %v995_v25, %v1533_v27  ;;  %v5778_v62 = vpop.xlane.xlu1 %1521  ;;  %v6475_v27 = vld [vmem:[#allocation41_spill] sm:$0xff] }
 0x8ac   : > { %2131 = vperm.xlu1 %4122, %v5773_v49  }
 0x8af   : > { %v1537_v40 = vpop.permute.xlu1 %1536 }
 0x8b0   : > { %2136 = vperm.xlu1 %4122, %v5781_v34   ;;  %v5784_v1 = vpop.permute.xlu0 %1541 }
 0x8b3   : > { %v1547_v50 = vpop.permute.xlu1 %1546 }
 0x8b4   : > { %v1576_v46 = vmul.f32 %v1547_v50, %v5788_v0  ;;  %2141 = vperm.xlu1 %4122, %v5786_v45   ;;  %v1748_v13 = vpop.permute.xlu0 %1747 }
 0x8b5   : > { %2619 = vadd.xlane.f32.xlu0 %v2618_v7 }
 0x8b6   : > { %v5796_v26 = vadd.f32 %v1748_v13, %v1576_v46  ;;  %v2540_v46 = vmul.f32 1.442695, %v2527_v36  ;;  %v6476_v13 = vld [vmem:[#allocation53_spill] sm:$0xff] }
 0x8b7   : > { %v5798_v38 = vpop.permute.xlu1 %1551  ;;  %v2526_v7 = vsub.f32 %v5558_v52, %v6476_v13  ;;  %v5848_v52 = vpop.eup %4240  ;;  %v5875_v13 = vld [vmem:[#allocation5 + $0x20] sm:$0xff] }
 0x8b8   : > { %2289 = vrot.lane.b32.xlu1 %v5420_v20, %s4345_s8  ;;  %v2624_v20 = vsel %vm835_vm9, %v5695_v43, 0.0  ;;  %v1752_v11 = vpop.permute.xlu0 %1751  ;;  %v6472_v43 = vld [vmem:[#allocation25_spill] sm:$0xff]  ;;  %4246 = vpow2.f32 %v2540_v46  ;;  %v5859_v36 = vpop.eup %4242 }
 0x8b9   : > { %2628 = vadd.xlane.f32.xlu0 %v2627_v41  ;;  %4124 = vset.pattern.permute.xlu1 %v6468_v23  ;;  %v5814_v23 = vld [vmem:[#allocation5 + $0x28] sm:$0xff] }
 0x8ba   : > { %6471 = vst [vmem:[#allocation33_spill] sm:$0xff] %v5814_v23  ;;  %v1042_v61 = vmul.f32 %v6472_v43, %v5814_v23 }
 0x8bb   : > { %v1557_v31 = vpop.permute.xlu1 %1556 }
 0x8bc   : > { %v1578_v35 = vmul.f32 %v1557_v31, %v5807_v60  ;;  %2291 = vrot.lane.b32.xlu1 %v5418_v53, %s4345_s8  ;;  %v2630_v53 = vsel %vm835_vm9, %v5714_v22, 0.0  ;;  %v1203_v22 = vadd.f32 %v6475_v27, %v1042_v61  ;;  %v1756_v50 = vpop.permute.xlu0 %1755  ;;  %v2538_v31 = vmul.f32 1.442695, %v2526_v7 }
 0x8bd   : > { %2625 = vadd.xlane.f32.xlu0 %v2624_v20  ;;  %v2542_v27 = vmul.f32 1.442695, %v2528_v59 }
 0x8be   : > { %v5818_v9 = vadd.f32 %v1752_v11, %v1578_v35  ;;  %v6478_v35 = vld [vmem:[#allocation17_spill] sm:$0xff]  ;;  %4248 = vpow2.f32 %v2538_v31 }
 0x8bf   : > { %v1562_v39 = vpop.permute.xlu1 %1561  ;;  %v2529_v20 = vsub.f32 %v5568_v14, %v6478_v35  ;;  %v1575_v14 = vmul.f32 %v5784_v1, %v5841_v42 }
 0x8c0   : > { %2295 = vrot.lane.b32.xlu1 %v5422_v10, %s4345_s8  ;;  %v2636_v10 = vsel %vm835_vm9, %v5729_v56, 0.0  ;;  %v5843_v56 = vld [vmem:[#allocation5 + $0x30] sm:$0xff]  ;;  %v1579_v7 = vmul.f32 %v1562_v39, %v5875_v13 }
 0x8c1   : > { %2631 = vadd.xlane.f32.xlu0 %v2630_v53  ;;  %v1574_v11 = vmul.f32 %v1537_v40, %v5843_v56  ;;  %v1037_v53 = vmul.f32 %v6479_v18, %v5841_v42  ;;  %v2544_v61 = vmul.f32 1.442695, %v2529_v20 }
 0x8c3   : > { %v1567_v25 = vpop.permute.xlu1 %1566  ;;  %4250 = vpow2.f32 %v2544_v61 }
 0x8c4   : > { %v1580_v21 = vmul.f32 %v1567_v25, %v5814_v23  ;;  %2299 = vrot.lane.b32.xlu1 %v6474_v24, %s4345_s8  ;;  %v6481_v25 = vld [vmem:[#allocation34_spill] sm:$0xff]  ;;  %4252 = vpow2.f32 %v2542_v27 }
 0x8c5   : > { %2637 = vadd.xlane.f32.xlu0 %v2636_v10  ;;  %v5863_v10 = vld [vmem:[#allocation5 + $0x10] sm:$0xff] }
 0x8c6   : > { %v1773_v63 = vadd.f32 %v1756_v50, %v1580_v21  ;;  %v1198_v21 = vadd.f32 %v6481_v25, %v1037_v53  ;;  %v5870_v50 = vpop.eup %4244 }
 0x8c7   : > { %v1572_v37 = vpop.permute.xlu1 %1571 }
 0x8c8   : > { %v5837_v41 = vsel %vm473_vm3, %v1203_v22, %v1773_v63  ;;  %2303 = vrot.lane.b32.xlu1 %v6477_v2, %s4345_s8  ;;  %v1577_v22 = vmul.f32 %v5798_v38, %v5863_v10  ;;  %v5878_v63 = vpop.eup %4246  ;;  %v5883_v38 = vld [vmem:[#allocation5 + $0x38] sm:$0xff] }
 0x8c9   : > { %v1581_v35 = vmul.f32 %v1572_v37, %v5883_v38  ;;  %v5901_v37 = vld [vmem:[#allocation4 + $0x28] sm:$0xff] }
 0x8ca   : > { %v1499_v16 = vmul.f32 %v5645_v15, %v5901_v37  ;;  %v2071_v15 = vmul.f32 %v5786_v45, %v5762_v51 }
 0x8cb   : > { %v1744_v28 = vpop.permute.xlu1 %1743  ;;  %v5886_v20 = vpop.eup %4248 }
 0x8cc   : > { %v5852_v43 = vadd.f32 %v1744_v28, %v1574_v11  ;;  %2657 = vperm.xlu1 %4124, %v5848_v52   ;;  %v1531_v25 = vadd.f32 %v5685_v3, %v1499_v16  ;;  %v2633_v16 = vsel %vm835_vm9, %v5716_v19, 0.0  ;;  %v6487_v19 = vld [vmem:[#allocation37_spill] sm:$0xff] }
 0x8cf   : > { %v1746_v40 = vpop.permute.xlu1 %1745 }
 0x8d0   : > { %v1768_v24 = vadd.f32 %v1746_v40, %v1575_v14  ;;  %2667 = vperm.xlu1 %4124, %v5859_v36   ;;  %v5891_v18 = vpop.eup %4250  ;;  %v6483_v14 = vld [vmem:[#allocation22_spill] sm:$0xff] }
 0x8d1   : > { %6482 = vst [vmem:[#allocation24_spill] sm:$0xff] %v5891_v18  ;;  %v5894_v39 = vpop.eup %4252  ;;  %v961_v40 = vmul.f32 %v6483_v14, %v5901_v37 }
 0x8d2   : > { %v5868_v54 = vsel %vm473_vm3, %v1198_v21, %v1768_v24  ;;  %v2069_v21 = vmul.f32 %v5773_v49, %v5901_v37  ;;  %v6484_v24 = vld [vmem:[#allocation54_spill] sm:$0xff]  ;;  %v2621_v49 = vsel %vm835_vm9, %v5687_v4, 0.0 }
 0x8d3   : > { %v1750_v1 = vpop.permute.xlu1 %1749  ;;  %v993_v27 = vadd.f32 %v6484_v24, %v961_v40  ;;  %v2639_v40 = vsel %vm835_vm9, %v5731_v55, 0.0  ;;  %v6486_v24 = vld [vmem:[#allocation14_spill] sm:$0xff] }
 0x8d4   : > { %v5872_v46 = vadd.f32 %v1750_v1, %v1577_v22  ;;  %2662 = vperm.xlu1 %4124, %v5870_v50   ;;  %v1038_v4 = vmul.f32 %v6486_v24, %v5788_v0 }
 0x8d7   : > { %v1754_v2 = vpop.permute.xlu1 %1753 }
 0x8d8   : > { %v5880_v31 = vadd.f32 %v1754_v2, %v1579_v7  ;;  %2677 = vperm.xlu1 %4124, %v5878_v63   ;;  %v2940_v7 = vsel %vm2899_vm14, %v993_v27, %v1531_v25 }
 0x8db   : > { %v1758_v11 = vpop.permute.xlu1 %1757 }
 0x8dc   : > { %v5888_v28 = vadd.f32 %v1758_v11, %v1581_v35  ;;  %2672 = vperm.xlu1 %4124, %v5886_v20  }
 0x8e0   : > { %2687 = vperm.xlu1 %4124, %v5891_v18  }
 0x8e4   : > { %2682 = vperm.xlu1 %4124, %v5894_v39  }
 0x8e9   : > { %v5897_v53 = vpop.xlane.xlu0 %2073 }
 0x8ed   : > { %v5899_v61 = vpop.xlane.xlu0 %2079 }
 0x8f1   : > { %v5905_v59 = vpop.xlane.xlu0 %2082 }
 0x8f5   : > { %v2089_v22 = vpop.xlane.xlu0 %2088 }
 0x8f6   : > { %v2101_v1 = vadd.f32 %v2089_v22, %v2069_v21 }
 0x8f8   : > { %v5915_v2 = vsel %vm2908_vm15, %v2940_v7, %v2101_v1  ;;  %v1199_v1 = vadd.f32 %v6487_v19, %v1038_v4 }
 0x8f9   : > { %v2095_v35 = vpop.xlane.xlu0 %2094 }
 0x8fa   : > { %v2103_v11 = vadd.f32 %v2095_v35, %v2071_v15  ;;  %v2969_v55 = vsel %vm473_vm3, %v1199_v1, %v5796_v26 }
 0x8fc   : > { %v5921_v3 = vsel %vm2908_vm15, %v5776_v57, %v2103_v11 }
 0x8fd   : > { %6485 = vst [vmem:[#allocation32_spill] sm:$0xff] %v5921_v3  ;;  %v6489_v3 = vld [vmem:[#allocation39_spill] sm:$0xff] }
 0x901   : > { %v2112_v57 = vpop.permute.xlu0 %2111 }
 0x905   : > { %v2294_v7 = vpop.permute.xlu0 %2293 }
 0x908   : > { %2622 = vadd.xlane.f32.xlu1 %v2621_v49  ;;  %v6488_v49 = vld [vmem:[#allocation12_spill] sm:$0xff] }
 0x90c   : > { %2634 = vadd.xlane.f32.xlu1 %v2633_v16  ;;  %v5927_v14 = vpop.xlane.xlu1 %2076  ;;  %v1040_v16 = vmul.f32 %v6488_v49, %v5807_v60 }
 0x90e   : > { %v1201_v18 = vadd.f32 %v6489_v3, %v1040_v16 }
 0x910   : > { %2640 = vadd.xlane.f32.xlu1 %v2639_v40  ;;  %v5931_v45 = vpop.xlane.xlu1 %2085  ;;  %v2971_v4 = vsel %vm473_vm3, %v1201_v18, %v5818_v9  ;;  %v6492_v9 = vld [vmem:[#allocation35_spill] sm:$0xff] }
 0x914   : > { %v5933_v25 = vpop.xlane.xlu1 %2091 }
 0x918   : > { %v2107_v21 = vpop.permute.xlu1 %2106 }
 0x919   : > { %v2144_v16 = vmul.f32 %v2107_v21, %v5843_v56 }
 0x91c   : > { %v2117_v27 = vpop.permute.xlu1 %2116 }
 0x91d   : > { %v2146_v22 = vmul.f32 %v2117_v27, %v5788_v0  ;;  %v2298_v27 = vpop.permute.xlu0 %2297 }
 0x91f   : > { %v2315_v15 = vadd.f32 %v2294_v7, %v2146_v22 }
 0x920   : > { %v2122_v35 = vpop.permute.xlu1 %2121 }
 0x921   : > { %v5942_v11 = vsel %vm835_vm9, %v2969_v55, %v2315_v15  ;;  %v2302_v7 = vpop.permute.xlu0 %2301  ;;  %v6490_v55 = vld [vmem:[#allocation27_spill] sm:$0xff] }
 0x922   : > { %v1036_v49 = vmul.f32 %v6490_v55, %v5843_v56 }
 0x924   : > { %v2127_v40 = vpop.permute.xlu1 %2126  ;;  %v1197_v18 = vadd.f32 %v6492_v9, %v1036_v49 }
 0x925   : > { %v2148_v24 = vmul.f32 %v2127_v40, %v5807_v60  ;;  %v5972_v49 = vpop.permute.xlu0 %2652 }
 0x927   : > { %v2317_v0 = vadd.f32 %v2298_v27, %v2148_v24  ;;  %v2967_v27 = vsel %vm473_vm3, %v1197_v18, %v5852_v43  ;;  %v2147_v43 = vmul.f32 %v2122_v35, %v5863_v10  ;;  %v6495_v18 = vld [vmem:[#allocation36_spill] sm:$0xff] }
 0x928   : > { %v2132_v22 = vpop.permute.xlu1 %2131 }
 0x929   : > { %v5951_v26 = vsel %vm835_vm9, %v2971_v4, %v2317_v0  ;;  %v2145_v4 = vmul.f32 %v2112_v57, %v5841_v42 }
 0x92c   : > { %v2137_v19 = vpop.permute.xlu1 %2136 }
 0x92d   : > { %v2150_v1 = vmul.f32 %v2137_v19, %v5814_v23 }
 0x92f   : > { %v2319_v15 = vadd.f32 %v2302_v7, %v2150_v1  ;;  %v6493_v1 = vld [vmem:[#allocation58_spill] sm:$0xff] }
 0x930   : > { %v2142_v40 = vpop.permute.xlu1 %2141  ;;  %v1039_v7 = vmul.f32 %v6493_v1, %v5863_v10 }
 0x931   : > { %v5958_v3 = vsel %vm835_vm9, %v5837_v41, %v2319_v15 }
 0x932   : > { %6491 = vst [vmem:[#allocation28_spill] sm:$0xff] %v5958_v3  ;;  %v6494_v3 = vld [vmem:[#allocation15_spill] sm:$0xff] }
 0x933   : > { %v2064_v21 = vmul.f32 %v5752_v6, %v6494_v3  ;;  %v2610_v35 = vmul.f32 %v5745_v8, %v6494_v3  ;;  %v6500_v8 = vld [vmem:[#allocation10_spill] sm:$0xff] }
 0x934   : > { %v2290_v24 = vpop.permute.xlu1 %2289  ;;  %v1043_v3 = vmul.f32 %v6500_v8, %v5883_v38 }
 0x935   : > { %v2313_v0 = vadd.f32 %v2290_v24, %v2144_v16  ;;  %v668_v16 = vld [vmem:[#allocation4 + $0x18] sm:$0xff]  ;;  %v1200_v24 = vadd.f32 %v6495_v18, %v1039_v7 }
 0x936   : > { %v1497_v1 = vmul.f32 %v5634_v33, %v668_v16  ;;  %v2067_v7 = vmul.f32 %v5760_v5, %v668_v16 }
 0x937   : > { %v5966_v19 = vsel %vm835_vm9, %v2967_v27, %v2313_v0  ;;  %v6496_v0 = vld [vmem:[#allocation11_spill] sm:$0xff] }
 0x938   : > { %v2292_v55 = vpop.permute.xlu1 %2291  ;;  %v1041_v27 = vmul.f32 %v6496_v0, %v5875_v13  ;;  %v6498_v0 = vld [vmem:[#allocation57_spill] sm:$0xff] }
 0x939   : > { %v2314_v41 = vadd.f32 %v2292_v55, %v2145_v4  ;;  %v3960_v15 = vpop.f32.mrf.mxu0  ;;  %v2096_v4 = vadd.f32 %v5897_v53, %v2064_v21  ;;  %v1529_v23 = vadd.f32 %v6498_v0, %v1497_v1  ;;  %v2149_v53 = vmul.f32 %v2132_v22, %v5875_v13 }
 0x93a   : > { %2869 = vrot.lane.b32.xlu0 %v3960_v15, %s4349_s28  ;;  %v6497_v15 = vld [vmem:[#allocation20_spill] sm:$0xff] }
 0x93b   : > { %v5978_v57 = vsel %vm835_vm9, %v5868_v54, %v2314_v41  ;;  %v2820_v9 = vpop.f32.mrf.mxu0  ;;  %v959_v54 = vmul.f32 %v6497_v15, %v668_v16  ;;  %v2970_v41 = vsel %vm473_vm3, %v1200_v24, %v5872_v46  ;;  %v2099_v46 = vadd.f32 %v5905_v59, %v2067_v7  ;;  %v6501_v24 = vld [vmem:[#allocation6_spill] sm:$0xff]  ;;  %v6502_v7 = vld [vmem:[#allocation40_spill] sm:$0xff] }
 0x93c   : > { %2867 = vrot.lane.b32.xlu1 %v2820_v9, %s4349_s28  ;;  %v2296_v6 = vpop.permute.xlu1 %2295 }
 0x93d   : > { %v2316_v55 = vadd.f32 %v2296_v6, %v2147_v43  ;;  %v6499_v43 = vld [vmem:[#allocation38_spill] sm:$0xff]  ;;  %v2943_v6 = vsel %vm2908_vm15, %v5606_v47, %v2096_v4  ;;  %v991_v15 = vadd.f32 %v6501_v24, %v959_v54  ;;  %v2151_v4 = vmul.f32 %v2142_v40, %v5883_v38 }
 0x93e   : > { %v2620_v18 = vpop.xlane.xlu0 %2619  ;;  %v1202_v9 = vadd.f32 %v6499_v43, %v1041_v27  ;;  %v2612_v43 = vmul.f32 %v5870_v50, %v5600_v17 }
 0x93f   : > { %v5995_v21 = vsel %vm835_vm9, %v2970_v41, %v2316_v55  ;;  %v2642_v33 = vadd.f32 %v2620_v18, %v2610_v35  ;;  %v2613_v55 = vmul.f32 %v5859_v36, %v668_v16  ;;  %v2066_v35 = vmul.f32 %v5757_v44, %v5600_v17  ;;  %v669_v16 = vld [vmem:[#allocation4 + $0x20] sm:$0xff] }
 0x940   : > { %v2300_v5 = vpop.permute.xlu1 %2299  ;;  %v2972_v27 = vsel %vm473_vm3, %v1202_v9, %v5880_v31  ;;  %v2938_v59 = vsel %vm2899_vm14, %v991_v15, %v1529_v23  ;;  %v1204_v31 = vadd.f32 %v6502_v7, %v1043_v3  ;;  %v2068_v8 = vmul.f32 %v5765_v30, %v669_v16  ;;  %v6503_v3 = vld [vmem:[#allocation19_spill] sm:$0xff]  ;;  %v671_v15 = vld [vmem:[#allocation4 + $0x30] sm:$0xff] }
 0x941   : > { %v2951_v1 = vsel %vm2917_vm0, %v2943_v6, %v2642_v33  ;;  %v2318_v22 = vadd.f32 %v2300_v5, %v2149_v53  ;;  %v3963_v0 = vpop.f32.mrf.mxu0  ;;  %v2098_v18 = vadd.f32 %v5899_v61, %v2066_v35  ;;  %v2946_v44 = vsel %vm2908_vm15, %v2938_v59, %v2099_v46  ;;  %v6504_v46 = vld [vmem:[#allocation59_spill] sm:$0xff] }
 0x942   : > { %2959 = vst.msk [vmem:[#allocation4] sm:$0xff] %vm2926_vm1, %v2951_v1  ;;  %v2629_v47 = vpop.xlane.xlu0 %2628  ;;  %2873 = vrot.lane.b32.xlu0 %v3963_v0, %s4349_s28  ;;  %v1498_v33 = vmul.f32 %v5640_v12, %v669_v16  ;;  %v2974_v9 = vsel %vm473_vm3, %v1204_v31, %v5888_v28  ;;  %v960_v6 = vmul.f32 %v6503_v3, %v669_v16  ;;  %v6505_v28 = vld [vmem:[#allocation31_spill] sm:$0xff] }
 0x943   : > { %v6015_v54 = vsel %vm835_vm9, %v2972_v27, %v2318_v22  ;;  %v2645_v41 = vadd.f32 %v2629_v47, %v2613_v55  ;;  %v2830_v36 = vpop.f32.mrf.mxu0  ;;  %v2945_v17 = vsel %vm2908_vm15, %v5615_v29, %v2098_v18  ;;  %v2100_v50 = vadd.f32 %v5931_v45, %v2068_v8  ;;  %v6506_v47 = vld [vmem:[#allocation7_spill] sm:$0xff] }
 0x944   : > { %2871 = vrot.lane.b32.xlu1 %v2830_v36, %s4349_s28  ;;  %v2304_v53 = vpop.permute.xlu1 %2303  ;;  %v1530_v5 = vadd.f32 %v6504_v46, %v1498_v33  ;;  %v992_v1 = vadd.f32 %v6505_v28, %v960_v6  ;;  %v1500_v30 = vmul.f32 %v5648_v58, %v671_v15  ;;  %v2614_v55 = vmul.f32 %v5886_v20, %v669_v16  ;;  %v6510_v28 = vld [vmem:[#allocation21_spill] sm:$0xff] }
 0x945   : > { %v2954_v23 = vsel %vm2917_vm0, %v2946_v44, %v2645_v41  ;;  %v2320_v40 = vadd.f32 %v2304_v53, %v2151_v4  ;;  %v2070_v27 = vmul.f32 %v5781_v34, %v671_v15  ;;  %v962_v29 = vmul.f32 %v6506_v47, %v671_v15  ;;  %v6507_v34 = vld [vmem:[#allocation23_spill] sm:$0xff] }
 0x946   : > { %2962 = vst.msk [vmem:[#allocation4 + $0x18] sm:$0xff] %vm2926_vm1, %v2954_v23  ;;  %v2626_v61 = vpop.xlane.xlu0 %2625  ;;  %v2939_v45 = vsel %vm2899_vm14, %v992_v1, %v1530_v5  ;;  %v1532_v59 = vadd.f32 %v5778_v62, %v1500_v30  ;;  %v2616_v7 = vmul.f32 %v5894_v39, %v671_v15  ;;  %v6508_v5 = vld [vmem:[#allocation18_spill] sm:$0xff]  ;;  %v6509_v15 = vld [vmem:[#allocation55_spill] sm:$0xff] }
 0x947   : > { %v6032_v12 = vsel %vm835_vm9, %v2974_v9, %v2320_v40  ;;  %v2644_v24 = vadd.f32 %v2626_v61, %v2612_v43  ;;  %v2947_v41 = vsel %vm2908_vm15, %v2939_v45, %v2100_v50  ;;  %v2102_v36 = vadd.f32 %v5933_v25, %v2070_v27  ;;  %v666_v61 = vld [vmem:[#allocation4 + $0x8] sm:$0xff] }
 0x948   : > { %v994_v20 = vadd.f32 %v6507_v34, %v962_v29  ;;  %v2658_v23 = vpop.permute.xlu1 %2657  ;;  %v1495_v3 = vmul.f32 %v5627_v32, %v666_v61  ;;  %v2065_v6 = vmul.f32 %v5707_v48, %v666_v61  ;;  %v2611_v30 = vmul.f32 %v5848_v52, %v666_v61  ;;  %v6511_v52 = vld [vmem:[#allocation24_spill] sm:$0xff] }
 0x949   : > { %v2953_v22 = vsel %vm2917_vm0, %v2945_v17, %v2644_v24  ;;  %v3966_v0 = vpop.f32.mrf.mxu0  ;;  %v957_v24 = vmul.f32 %v6508_v5, %v666_v61  ;;  %v2615_v48 = vmul.f32 %v5878_v63, %v5901_v37  ;;  %v2617_v29 = vmul.f32 %v6511_v52, %v5762_v51 }
 0x94a   : > { %2961 = vst.msk [vmem:[#allocation4 + $0x10] sm:$0xff] %vm2926_vm1, %v2953_v22  ;;  %2877 = vrot.lane.b32.xlu0 %v3966_v0, %s4349_s28  ;;  %v2632_v35 = vpop.xlane.xlu0 %2631  ;;  %v2941_v18 = vsel %vm2899_vm14, %v994_v20, %v1532_v59  ;;  %v1527_v17 = vadd.f32 %v6509_v15, %v1495_v3  ;;  %v2097_v50 = vadd.f32 %v5927_v14, %v2065_v6  ;;  %v6515_v3 = vld [vmem:[#allocation28_spill] sm:$0xff] }
 0x94b   : > { %v2646_v4 = vadd.f32 %v2632_v35, %v2614_v55  ;;  %v2840_v58 = vpop.f32.mrf.mxu0  ;;  %v2949_v53 = vsel %vm2908_vm15, %v2941_v18, %v2102_v36  ;;  %v989_v1 = vadd.f32 %v6510_v28, %v957_v24  ;;  %v2691_v63 = vmul.f32 %v2658_v23, %v5841_v42  ;;  %v6513_v42 = vld [vmem:[#allocation26_spill] sm:$0xff] }
 0x94c   : > { %2875 = vrot.lane.b32.xlu1 %v2840_v58, %s4349_s28  ;;  %v2668_v39 = vpop.permute.xlu1 %2667 }
 0x94d   : > { %v2955_v16 = vsel %vm2917_vm0, %v2947_v41, %v2646_v4  ;;  %v2936_v0 = vsel %vm2899_vm14, %v989_v1, %v1527_v17  ;;  %v6512_v4 = vld [vmem:[#allocation32_spill] sm:$0xff]  ;;  %v2690_v41 = vmul.f32 %v5972_v49, %v5843_v56 }
 0x94e   : > { %2963 = vst.msk [vmem:[#allocation4 + $0x20] sm:$0xff] %vm2926_vm1, %v2955_v16  ;;  %v2638_v31 = vpop.xlane.xlu0 %2637  ;;  %v2944_v27 = vsel %vm2908_vm15, %v2936_v0, %v2097_v50  ;;  %v2693_v16 = vmul.f32 %v2668_v39, %v5863_v10 }
 0x94f   : > { %v2648_v62 = vadd.f32 %v2638_v31, %v2616_v7  ;;  %v3969_v44 = vpop.f32.mrf.mxu0 }
 0x950   : > { %2881 = vrot.lane.b32.xlu0 %v3969_v44, %s4349_s28  ;;  %v2663_v40 = vpop.permute.xlu1 %2662 }
 0x951   : > { %v2957_v25 = vsel %vm2917_vm0, %v2949_v53, %v2648_v62  ;;  %v2850_v33 = vpop.f32.mrf.mxu0  ;;  %v2692_v31 = vmul.f32 %v2663_v40, %v6513_v42  ;;  %v6514_v40 = vld [vmem:[#allocation33_spill] sm:$0xff] }
 0x952   : > { %2965 = vst.msk [vmem:[#allocation4 + $0x30] sm:$0xff] %vm2926_vm1, %v2957_v25  ;;  %2879 = vrot.lane.b32.xlu1 %v2850_v33, %s4349_s28 }
 0x954   : > { %v2678_v43 = vpop.permute.xlu1 %2677 }
 0x955   : > { %v2695_v44 = vmul.f32 %v2678_v43, %v5875_v13 }
 0x958   : > { %v2673_v9 = vpop.permute.xlu1 %2672 }
 0x959   : > { %v2694_v53 = vmul.f32 %v2673_v9, %v5807_v60 }
 0x95c   : > { %v2688_v8 = vpop.permute.xlu1 %2687 }
 0x960   : > { %v2683_v46 = vpop.permute.xlu1 %2682 }
 0x961   : > { %v2696_v61 = vmul.f32 %v2683_v46, %v6514_v40 }
 0x991   : > { %v2623_v22 = vpop.xlane.xlu1 %2622 }
 0x992   : > { %v2643_v55 = vadd.f32 %v2623_v22, %v2611_v30 }
 0x994   : > { %v2952_v32 = vsel %vm2917_vm0, %v2944_v27, %v2643_v55 }
 0x995   : > { %2960 = vst.msk [vmem:[#allocation4 + $0x8] sm:$0xff] %vm2926_vm1, %v2952_v32  ;;  %v2635_v35 = vpop.xlane.xlu1 %2634 }
 0x996   : > { %v2647_v47 = vadd.f32 %v2635_v35, %v2615_v48 }
 0x998   : > { %v2956_v14 = vsel %vm2917_vm0, %v5915_v2, %v2647_v47 }
 0x999   : > { %2964 = vst.msk [vmem:[#allocation4 + $0x28] sm:$0xff] %vm2926_vm1, %v2956_v14  ;;  %v2641_v45 = vpop.xlane.xlu1 %2640 }
 0x99a   : > { %v2649_v59 = vadd.f32 %v2641_v45, %v2617_v29 }
 0x99c   : > { %v2958_v58 = vsel %vm2917_vm0, %v6512_v4, %v2649_v59 }
 0x99d   : > { %2966 = vst.msk [vmem:[#allocation4 + $0x38] sm:$0xff] %vm2926_vm1, %v2958_v58 }
 0x9ac   : > { %v2870_v37 = vpop.permute.xlu0 %2869 }
 0x9ad   : > { %v2892_v2 = vadd.f32 %v2870_v37, %v2691_v63 }
 0x9ae   : > { %v2868_v36 = vpop.permute.xlu1 %2867 }
 0x9af   : > { %v2985_v51 = vsel %vm2983_vm2, %v5978_v57, %v2892_v2  ;;  %v2891_v34 = vadd.f32 %v2868_v36, %v2690_v41 }
 0x9b0   : > { %2993 = vst [vmem:[#allocation5] sm:$0xff] %v2985_v51 }
 0x9b1   : > { %v2984_v20 = vsel %vm2983_vm2, %v5966_v19, %v2891_v34 }
 0x9b2   : > { %2992 = vst [vmem:[#allocation5 + $0x30] sm:$0xff] %v2984_v20 }
 0x9b4   : > { %v2874_v7 = vpop.permute.xlu0 %2873 }
 0x9b5   : > { %v2894_v18 = vadd.f32 %v2874_v7, %v2693_v16 }
 0x9b6   : > { %v2872_v62 = vpop.permute.xlu1 %2871 }
 0x9b7   : > { %v2987_v56 = vsel %vm2983_vm2, %v5995_v21, %v2894_v18  ;;  %v2893_v49 = vadd.f32 %v2872_v62, %v2692_v31  ;;  %v2697_v21 = vmul.f32 %v2688_v8, %v5883_v38 }
 0x9b8   : > { %2995 = vst [vmem:[#allocation5 + $0x10] sm:$0xff] %v2987_v56 }
 0x9b9   : > { %v2986_v57 = vsel %vm2983_vm2, %v5942_v11, %v2893_v49 }
 0x9ba   : > { %2994 = vst [vmem:[#allocation5 + $0x18] sm:$0xff] %v2986_v57 }
 0x9bc   : > { %v2878_v19 = vpop.permute.xlu0 %2877 }
 0x9bd   : > { %v2896_v10 = vadd.f32 %v2878_v19, %v2695_v44 }
 0x9be   : > { %v2876_v25 = vpop.permute.xlu1 %2875 }
 0x9bf   : > { %v2989_v33 = vsel %vm2983_vm2, %v6015_v54, %v2896_v10  ;;  %v2895_v23 = vadd.f32 %v2876_v25, %v2694_v53 }
 0x9c0   : > { %2997 = vst [vmem:[#allocation5 + $0x20] sm:$0xff] %v2989_v33 }
 0x9c1   : > { %v2988_v39 = vsel %vm2983_vm2, %v5951_v26, %v2895_v23 }
 0x9c2   : > { %2996 = vst [vmem:[#allocation5 + $0x8] sm:$0xff] %v2988_v39  ;;  %v2882_v11 = vpop.permute.xlu0 %2881 }
 0x9c3   : > { %v2898_v13 = vadd.f32 %v2882_v11, %v2697_v21 }
 0x9c4   : > { %v2880_v43 = vpop.permute.xlu1 %2879 }
 0x9c5   : > { %v2991_v60 = vsel %vm2983_vm2, %v6032_v12, %v2898_v13  ;;  %v2897_v9 = vadd.f32 %v2880_v43, %v2696_v61 }
 0x9c6   : > { %2999 = vst [vmem:[#allocation5 + $0x38] sm:$0xff] %v2991_v60 }
 0x9c7   : > { %v2990_v54 = vsel %vm2983_vm2, %v6515_v3, %v2897_v9 }
 0x9c8   : > { %2998 = vst [vmem:[#allocation5 + $0x28] sm:$0xff] %v2990_v54 }
 0x9c9 PF: > { %p3559_p9 = scmp.ne.s32.totalorder %s4323_s18, 1 }
 0x9cb   : > { %3003 = sbr.rel (%p3559_p9) target bundleno = 2932 (0xb74), region = 52 }
 0x9d0   : > { %v3004_v38 = vld [vmem:[#allocation4] sm:$0xff]  ;;  %v4353_v8 = vmov 1   ;;  %v4354_v6 = vmov 0   ;;  %v3005_v12 = vld [vmem:[#allocation4 + $0x8] sm:$0xff]  ;;  %v3010_v5 = vld [vmem:[#allocation4 + $0x30] sm:$0xff]  ;;  %v4355_v35 = vmov 2  }
 0x9d1   : > { %v3008_v26 = vld [vmem:[#allocation4 + $0x20] sm:$0xff]  ;;  %4271 = vset.pattern.permute.xlu1 %v4353_v8  ;;  %4270 = vset.pattern.permute.xlu0 %v4354_v6  ;;  %4285 = vrcp.f32 %v3004_v38  ;;  %v3009_v46 = vld [vmem:[#allocation4 + $0x28] sm:$0xff]  ;;  %v3007_v24 = vld [vmem:[#allocation4 + $0x18] sm:$0xff]  ;;  %v4356_v59 = vmov 3   ;;  %vm3196_vm3 = vcmask 261120   ;;  %vm3205_vm4 = vcmask 523264  }
 0x9d2   : > { %4287 = vrcp.f32 %v3008_v26  ;;  %v3238_v28 = vld [vmem:[%s6271_s4 + $0x78] sm:$0xff]  ;;  %v3237_v30 = vld [vmem:[%s6271_s4 + $0x70] sm:$0xff]  ;;  %v3236_v0 = vld [vmem:[%s6271_s4 + $0x68] sm:$0xff]  ;;  %vm3214_vm5 = vcmask 785408  }
 0x9d3   : > { %4289 = vrcp.f32 %v3005_v12  ;;  %3970 = vmatprep.subr.mxu0 %v3238_v28  ;;  %4022 = vmatprep.subr.mxu1 %v3238_v28  ;;  %v3235_v55 = vld [vmem:[%s6271_s4 + $0x60] sm:$0xff]  ;;  %v3234_v32 = vld [vmem:[%s6271_s4 + $0x58] sm:$0xff]  ;;  %v3233_v48 = vld [vmem:[%s6271_s4 + $0x50] sm:$0xff] }
 0x9d4   : > { %4291 = vrcp.f32 %v3009_v46  ;;  %3971 = vmatpush3.msra.mxu0 %v3238_v28  ;;  %4038 = vmatpush3.msra.mxu1 %v3238_v28  ;;  %v3232_v47 = vld [vmem:[%s6271_s4 + $0x48] sm:$0xff]  ;;  %v3006_v14 = vld [vmem:[#allocation4 + $0x10] sm:$0xff]  ;;  %v3231_v52 = vld [vmem:[%s6271_s4 + $0x40] sm:$0xff] }
 0x9d5   : > { %4293 = vrcp.f32 %v3010_v5  ;;  %3972 = vmatprep.subr.mxu0 %v3237_v30  ;;  %4023 = vmatprep.subr.mxu1 %v3237_v30  ;;  %v3230_v29 = vld [vmem:[%s6271_s4 + $0x38] sm:$0xff]  ;;  %v3229_v45 = vld [vmem:[%s6271_s4 + $0x30] sm:$0xff]  ;;  %v3228_v4 = vld [vmem:[%s6271_s4 + $0x28] sm:$0xff] }
 0x9d6   : > { %4295 = vrcp.f32 %v3007_v24  ;;  %3973 = vmatpush3.msra.mxu0 %v3237_v30  ;;  %4039 = vmatpush3.msra.mxu1 %v3237_v30  ;;  %v3011_v58 = vld [vmem:[#allocation4 + $0x38] sm:$0xff]  ;;  %v3227_v63 = vld [vmem:[%s6271_s4 + $0x20] sm:$0xff]  ;;  %v3225_v2 = vld [vmem:[%s6271_s4 + $0x10] sm:$0xff] }
 0x9d7   : > { %3974 = vmatprep.subr.mxu0 %v3236_v0  ;;  %4024 = vmatprep.subr.mxu1 %v3236_v0  ;;  %4297 = vrcp.f32 %v3006_v14  ;;  %v3226_v37 = vld [vmem:[%s6271_s4 + $0x18] sm:$0xff]  ;;  %v3224_v36 = vld [vmem:[%s6271_s4 + $0x8] sm:$0xff]  ;;  %v3223_v51 = vld [vmem:[%s6271_s4] sm:$0xff] }
 0x9d8   : > { %3975 = vmatpush3.msra.mxu0 %v3236_v0  ;;  %4040 = vmatpush3.msra.mxu1 %v3236_v0  ;;  %4299 = vrcp.f32 %v3011_v58  ;;  %v3024_v53 = vld [vmem:[#allocation5 + $0x8] sm:$0xff]  ;;  %v3021_v11 = vld [vmem:[#allocation5] sm:$0xff]  ;;  %v3020_v13 = vld [vmem:[#allocation5 + $0x30] sm:$0xff] }
 0x9d9   : > { %3976 = vmatprep.subr.mxu0 %v3235_v55  ;;  %4025 = vmatprep.subr.mxu1 %v3235_v55  ;;  %v3025_v5 = vld [vmem:[#allocation5 + $0x20] sm:$0xff] }
 0x9da   : > { %3977 = vmatpush3.msra.mxu0 %v3235_v55  ;;  %4041 = vmatpush3.msra.mxu1 %v3235_v55 }
 0x9db   : > { %3978 = vmatprep.subr.mxu0 %v3234_v32  ;;  %4026 = vmatprep.subr.mxu1 %v3234_v32 }
 0x9dc   : > { %3979 = vmatpush3.msra.mxu0 %v3234_v32  ;;  %4042 = vmatpush3.msra.mxu1 %v3234_v32 }
 0x9dd   : > { %3980 = vmatprep.subr.mxu0 %v3233_v48  ;;  %4027 = vmatprep.subr.mxu1 %v3233_v48 }
 0x9de   : > { %v6109_v15 = vpop.eup %4285  ;;  %3981 = vmatpush3.msra.mxu0 %v3233_v48  ;;  %4043 = vmatpush3.msra.mxu1 %v3233_v48 }
 0x9df   : > { %3077 = vperm.xlu1 %4271, %v6109_v15   ;;  %3030 = vperm.xlu0 %4270, %v6109_v15   ;;  %v6113_v17 = vpop.eup %4287 }
 0x9e0   : > { %v6117_v50 = vpop.eup %4289  ;;  %3982 = vmatprep.subr.mxu0 %v3232_v47  ;;  %4028 = vmatprep.subr.mxu1 %v3232_v47 }
 0x9e1   : > { %v6122_v1 = vpop.eup %4291  ;;  %3983 = vmatpush3.msra.mxu0 %v3232_v47  ;;  %4044 = vmatpush3.msra.mxu1 %v3232_v47 }
 0x9e2   : > { %v6129_v22 = vpop.eup %4293  ;;  %3984 = vmatprep.subr.mxu0 %v3231_v52  ;;  %4029 = vmatprep.subr.mxu1 %v3231_v52 }
 0x9e3   : > { %3093 = vperm.xlu1 %4271, %v6113_v17   ;;  %3050 = vperm.xlu0 %4270, %v6113_v17   ;;  %v6139_v27 = vpop.eup %4295 }
 0x9e4   : > { %3985 = vmatpush3.msra.mxu0 %v3231_v52  ;;  %4045 = vmatpush3.msra.mxu1 %v3231_v52  ;;  %v4298_v41 = vpop.eup %4297 }
 0x9e5   : > { %3986 = vmatprep.subr.mxu0 %v3230_v29  ;;  %4030 = vmatprep.subr.mxu1 %v3230_v29  ;;  %v4300_v34 = vpop.eup %4299 }
 0x9e6   : > { %3987 = vmatpush3.msra.mxu0 %v3230_v29  ;;  %4046 = vmatpush3.msra.mxu1 %v3230_v29 }
 0x9e7   : > { %4272 = vset.pattern.permute.xlu1 %v4354_v6  ;;  %3035 = vperm.xlu0 %4270, %v6117_v50  }
 0x9e8   : > { %3055 = vperm.xlu1 %4272, %v6122_v1   ;;  %3988 = vmatprep.subr.mxu0 %v3229_v45 }
 0x9e9   : > { %3989 = vmatpush3.msra.mxu0 %v3229_v45  ;;  %4031 = vmatprep.subr.mxu1 %v3229_v45 }
 0x9ea   : > { %3990 = vmatprep.subr.mxu0 %v3228_v4  ;;  %4047 = vmatpush3.msra.mxu1 %v3229_v45 }
 0x9eb   : > { %3060 = vperm.xlu0 %4270, %v6129_v22   ;;  %3991 = vmatpush3.msra.mxu0 %v3228_v4 }
 0x9ec   : > { %4273 = vset.pattern.permute.xlu1 %v4353_v8  ;;  %3992 = vmatprep.subr.mxu0 %v3227_v63 }
 0x9ed   : > { %3097 = vperm.xlu1 %4273, %v6122_v1   ;;  %4032 = vmatprep.subr.mxu1 %v3228_v4 }
 0x9ee   : > { %3993 = vmatpush3.msra.mxu0 %v3227_v63  ;;  %4048 = vmatpush3.msra.mxu1 %v3228_v4 }
 0x9ef   : > { %3045 = vperm.xlu0 %4270, %v6139_v27   ;;  %3994 = vmatprep.subr.mxu0 %v3226_v37 }
 0x9f0   : > { %4033 = vmatprep.subr.mxu1 %v3227_v63  ;;  %3995 = vmatpush3.msra.mxu0 %v3226_v37 }
 0x9f1   : > { %4274 = vset.pattern.permute.xlu1 %v4355_v35  ;;  %4049 = vmatpush3.msra.mxu1 %v3227_v63  ;;  %v3022_v63 = vld [vmem:[#allocation5 + $0x18] sm:$0xff] }
 0x9f2   : > { %3117 = vperm.xlu1 %4274, %v6109_v15   ;;  %3996 = vmatprep.subr.mxu0 %v3225_v2 }
 0x9f3   : > { %4278 = vset.pattern.permute.xlu0 %v4353_v8  ;;  %4034 = vmatprep.subr.mxu1 %v3226_v37 }
 0x9f4   : > { %3081 = vperm.xlu0 %4278, %v6117_v50   ;;  %3997 = vmatpush3.msra.mxu0 %v3225_v2 }
 0x9f5   : > { %4050 = vmatpush3.msra.mxu1 %v3226_v37  ;;  %3998 = vmatprep.subr.mxu0 %v3224_v36 }
 0x9f6   : > { %3121 = vperm.xlu1 %4274, %v6117_v50   ;;  %4035 = vmatprep.subr.mxu1 %v3225_v2 }
 0x9f7   : > { %3999 = vmatpush3.msra.mxu0 %v3224_v36  ;;  %4051 = vmatpush3.msra.mxu1 %v3225_v2 }
 0x9f8   : > { %3089 = vperm.xlu0 %4278, %v6139_v27   ;;  %4000 = vmatprep.subr.mxu0 %v3223_v51 }
 0x9f9   : > { %4036 = vmatprep.subr.mxu1 %v3224_v36  ;;  %4001 = vmatpush3.msra.mxu0 %v3223_v51 }
 0x9fa   : > { %3137 = vperm.xlu1 %4274, %v6122_v1   ;;  %4052 = vmatpush3.msra.mxu1 %v3224_v36 }
 0x9fb   : > { %4037 = vmatprep.subr.mxu1 %v3223_v51 }
 0x9fc   : > { %4280 = vset.pattern.permute.xlu0 %v4355_v35  ;;  %4053 = vmatpush3.msra.mxu1 %v3223_v51 }
 0x9fd   : > { %3133 = vperm.xlu0 %4280, %v6113_v17  }
 0x9fe   : > { %4275 = vset.pattern.permute.xlu1 %v4356_v59 }
 0x9ff   : > { %3173 = vperm.xlu1 %4275, %v6113_v17  }
 0xa01   : > { %3141 = vperm.xlu0 %4280, %v6129_v22  }
 0xa03   : > { %3161 = vperm.xlu1 %4275, %v6117_v50  }
 0xa05   : > { %4283 = vset.pattern.permute.xlu0 %v4356_v59 }
 0xa06   : > { %3157 = vperm.xlu0 %4283, %v6109_v15  }
 0xa07   : > { %4276 = vset.pattern.permute.xlu1 %v4354_v6 }
 0xa08   : > { %3040 = vperm.xlu1 %4276, %v4298_v41  }
 0xa0a   : > { %3177 = vperm.xlu0 %4283, %v6122_v1  }
 0xa0c   : > { %4277 = vset.pattern.permute.xlu1 %v4353_v8 }
 0xa0d   : > { %3085 = vperm.xlu1 %4277, %v4298_v41  }
 0xa0e   : > { %3165 = vperm.xlu0 %4283, %v4298_v41  }
 0xa11   : > { %3101 = vperm.xlu1 %4277, %v6129_v22  }
 0xa12   : > { %3185 = vperm.xlu0 %4283, %v4300_v34  }
 0xa15   : > { %4279 = vset.pattern.permute.xlu1 %v4354_v6 }
 0xa16   : > { %3065 = vperm.xlu1 %4279, %v4300_v34  }
 0xa1a   : > { %4281 = vset.pattern.permute.xlu1 %v4353_v8 }
 0xa1b   : > { %3105 = vperm.xlu1 %4281, %v4300_v34  }
 0xa1f   : > { %4282 = vset.pattern.permute.xlu1 %v4355_v35 }
 0xa20   : > { %3125 = vperm.xlu1 %4282, %v4298_v41  }
 0xa24   : > { %3129 = vperm.xlu1 %4282, %v6139_v27  }
 0xa28   : > { %3145 = vperm.xlu1 %4282, %v4300_v34  }
 0xa2c   : > { %4284 = vset.pattern.permute.xlu1 %v4356_v59 }
 0xa2d   : > { %3181 = vperm.xlu1 %4284, %v6129_v22  }
 0xa31   : > { %3169 = vperm.xlu1 %4284, %v6139_v27  }
 0xa5a   : > { %v3078_v20 = vpop.permute.xlu1 %3077  ;;  %v3031_v16 = vpop.permute.xlu0 %3030 }
 0xa5b   : > { %v3108_v26 = vmul.f32 %v3078_v20, %v3020_v13  ;;  %v3068_v8 = vmul.f32 %v3031_v16, %v3020_v13 }
 0xa5d   : > { %v3197_v1 = vsel %vm3196_vm3, %v3068_v8, %v3108_v26 }
 0xa5e   : > { %v3094_v7 = vpop.permute.xlu1 %3093  ;;  %v3051_v42 = vpop.permute.xlu0 %3050 }
 0xa5f   : > { %v3112_v33 = vmul.f32 %v3094_v7, %v3024_v53  ;;  %v3072_v23 = vmul.f32 %v3051_v42, %v3024_v53 }
 0xa61   : > { %v3201_v61 = vsel %vm3196_vm3, %v3072_v23, %v3112_v33 }
 0xa62   : > { %v3036_v31 = vpop.permute.xlu0 %3035 }
 0xa63   : > { %v3056_v18 = vpop.permute.xlu1 %3055  ;;  %v3069_v3 = vmul.f32 %v3036_v31, %v3021_v11  ;;  %v3026_v31 = vld [vmem:[#allocation5 + $0x28] sm:$0xff] }
 0xa64   : > { %v3073_v55 = vmul.f32 %v3056_v18, %v3025_v5 }
 0xa66   : > { %v6203_v62 = vpop.permute.xlu0 %3060 }
 0xa68   : > { %v3098_v56 = vpop.permute.xlu1 %3097 }
 0xa69   : > { %v3113_v50 = vmul.f32 %v3098_v56, %v3025_v5  ;;  %v3027_v56 = vld [vmem:[#allocation5 + $0x38] sm:$0xff] }
 0xa6a   : > { %v6205_v49 = vpop.permute.xlu0 %3045 }
 0xa6b   : > { %v3202_v47 = vsel %vm3196_vm3, %v3073_v55, %v3113_v50 }
 0xa6d   : > { %v3118_v57 = vpop.permute.xlu1 %3117 }
 0xa6e   : > { %v3148_v12 = vmul.f32 %v3118_v57, %v3020_v13 }
 0xa6f   : > { %v3082_v44 = vpop.permute.xlu0 %3081 }
 0xa70   : > { %v3109_v54 = vmul.f32 %v3082_v44, %v3021_v11  ;;  %v3206_v0 = vsel %vm3205_vm4, %v3197_v1, %v3148_v12 }
 0xa71   : > { %v3122_v19 = vpop.permute.xlu1 %3121 }
 0xa72   : > { %v3149_v46 = vmul.f32 %v3122_v19, %v3021_v11  ;;  %v3198_v24 = vsel %vm3196_vm3, %v3069_v3, %v3109_v54  ;;  %v3074_v19 = vmul.f32 %v6203_v62, %v3026_v31 }
 0xa73   : > { %v6207_v10 = vpop.permute.xlu0 %3089 }
 0xa74   : > { %v3207_v32 = vsel %vm3205_vm4, %v3198_v24, %v3149_v46 }
 0xa75   : > { %v3138_v25 = vpop.permute.xlu1 %3137 }
 0xa76   : > { %v3153_v30 = vmul.f32 %v3138_v25, %v3025_v5  ;;  %v3023_v25 = vld [vmem:[#allocation5 + $0x10] sm:$0xff] }
 0xa78   : > { %v3134_v21 = vpop.permute.xlu0 %3133  ;;  %v3211_v52 = vsel %vm3205_vm4, %v3202_v47, %v3153_v30 }
 0xa79   : > { %v3152_v39 = vmul.f32 %v3134_v21, %v3024_v53 }
 0xa7a   : > { %v3174_v40 = vpop.permute.xlu1 %3173 }
 0xa7b   : > { %v3192_v43 = vmul.f32 %v3174_v40, %v3024_v53  ;;  %v3210_v60 = vsel %vm3205_vm4, %v3201_v61, %v3152_v39  ;;  %v3071_v61 = vmul.f32 %v6205_v49, %v3023_v25 }
 0xa7c   : > { %v3142_v9 = vpop.permute.xlu0 %3141 }
 0xa7d   : > { %v3219_v38 = vsel %vm3214_vm5, %v3210_v60, %v3192_v43  ;;  %v3154_v33 = vmul.f32 %v3142_v9, %v3026_v31 }
 0xa7e   : > { %v3162_v6 = vpop.permute.xlu1 %3161  ;;  %4008 = vmatprep.mubr.f32.mxu1 %v3219_v38 }
 0xa7f   : > { %v3189_v15 = vmul.f32 %v3162_v6, %v3021_v11 }
 0xa81   : > { %v3158_v17 = vpop.permute.xlu0 %3157  ;;  %v3216_v35 = vsel %vm3214_vm5, %v3207_v32, %v3189_v15 }
 0xa82   : > { %v3188_v28 = vmul.f32 %v3158_v17, %v3020_v13  ;;  %v3111_v13 = vmul.f32 %v6207_v10, %v3023_v25 }
 0xa83   : > { %v3041_v22 = vpop.permute.xlu1 %3040 }
 0xa84   : > { %v3215_v27 = vsel %vm3214_vm5, %v3206_v0, %v3188_v28  ;;  %v3070_v2 = vmul.f32 %v3041_v22, %v3022_v63  ;;  %v3200_v49 = vsel %vm3196_vm3, %v3071_v61, %v3111_v13 }
 0xa85   : > { %4002 = vmatprep.mubr.f32.mxu0 %v3215_v27  ;;  %v3178_v48 = vpop.permute.xlu0 %3177 }
 0xa86   : > { %v3193_v14 = vmul.f32 %v3178_v48, %v3025_v5  ;;  %4003 = vmatmul.mubr.f32.vlgmr.msra.gmra.mxu0 %v3216_v35 }
 0xa88   : > { %v3086_v29 = vpop.permute.xlu1 %3085  ;;  %v3220_v45 = vsel %vm3214_vm5, %v3211_v52, %v3193_v14 }
 0xa89   : > { %4009 = vmatmul.mubr.f32.vlgmr.msra.gmra.mxu1 %v3220_v45  ;;  %v3166_v37 = vpop.permute.xlu0 %3165  ;;  %v3110_v41 = vmul.f32 %v3086_v29, %v3022_v63 }
 0xa8a   : > { %v3190_v51 = vmul.f32 %v3166_v37, %v3022_v63 }
 0xa8b   : > { %v3199_v20 = vsel %vm3196_vm3, %v3070_v2, %v3110_v41 }
 0xa8c   : > { %v3102_v59 = vpop.permute.xlu1 %3101 }
 0xa8d   : > { %v3114_v18 = vmul.f32 %v3102_v59, %v3026_v31  ;;  %v3186_v39 = vpop.permute.xlu0 %3185 }
 0xa8e   : > { %v3195_v62 = vmul.f32 %v3186_v39, %v3027_v56 }
 0xa8f   : > { %v3203_v21 = vsel %vm3196_vm3, %v3074_v19, %v3114_v18 }
 0xa90   : > { %v3212_v9 = vsel %vm3205_vm4, %v3203_v21, %v3154_v33 }
 0xa91   : > { %v3066_v4 = vpop.permute.xlu1 %3065 }
 0xa92   : > { %v3075_v23 = vmul.f32 %v3066_v4, %v3027_v56 }
 0xa96   : > { %v3106_v58 = vpop.permute.xlu1 %3105 }
 0xa97   : > { %v3115_v44 = vmul.f32 %v3106_v58, %v3027_v56 }
 0xa99   : > { %v3204_v11 = vsel %vm3196_vm3, %v3075_v23, %v3115_v44 }
 0xa9b   : > { %v3126_v36 = vpop.permute.xlu1 %3125 }
 0xa9c   : > { %v3150_v34 = vmul.f32 %v3126_v36, %v3022_v63 }
 0xa9e   : > { %v3208_v16 = vsel %vm3205_vm4, %v3199_v20, %v3150_v34 }
 0xa9f   : > { %v3130_v7 = vpop.permute.xlu1 %3129  ;;  %v3217_v42 = vsel %vm3214_vm5, %v3208_v16, %v3190_v51 }
 0xaa0   : > { %4005 = vmatprep.mubr.f32.mxu0 %v3217_v42  ;;  %v3151_v3 = vmul.f32 %v3130_v7, %v3023_v25 }
 0xaa2   : > { %v3209_v8 = vsel %vm3205_vm4, %v3200_v49, %v3151_v3 }
 0xaa3   : > { %v3146_v57 = vpop.permute.xlu1 %3145 }
 0xaa4   : > { %v3155_v53 = vmul.f32 %v3146_v57, %v3027_v56 }
 0xaa6   : > { %v3213_v60 = vsel %vm3205_vm4, %v3204_v11, %v3155_v53 }
 0xaa7   : > { %v3222_v26 = vsel %vm3214_vm5, %v3213_v60, %v3195_v62 }
 0xaa8   : > { %v3182_v40 = vpop.permute.xlu1 %3181 }
 0xaa9   : > { %v3194_v43 = vmul.f32 %v3182_v40, %v3026_v31 }
 0xaab   : > { %v3221_v54 = vsel %vm3214_vm5, %v3212_v9, %v3194_v43 }
 0xaac   : > { %v3170_v38 = vpop.permute.xlu1 %3169  ;;  %4011 = vmatprep.mubr.f32.mxu1 %v3221_v54 }
 0xaad   : > { %v3191_v10 = vmul.f32 %v3170_v38, %v3023_v25  ;;  %4012 = vmatmul.mubr.f32.gmra.mxu1 %v3222_v26 }
 0xaaf   : > { %v3218_v6 = vsel %vm3214_vm5, %v3209_v8, %v3191_v10 }
 0xab0   : > { %4006 = vmatmul.mubr.f32.gmra.mxu0 %v3218_v6 }
 0xb46   : > { %v4004_v12 = vpop.f32.mrf.mxu0 }
 0xb47   : > { %3345 = vst.msk [vmem:[%s4436_s12 + $0x8] sm:$0xff] %vm3196_vm3, %v4004_v12 }
 0xb48   : > { %v3305_v46 = vpop.f32.mrf.mxu0 }
 0xb49   : > { %3344 = vst.msk [vmem:[%s4436_s12] sm:$0xff] %vm3196_vm3, %v3305_v46  ;;  %v4010_v5 = vpop.f32.mrf.mxu1 }
 0xb4a   : > { %3349 = vst.msk [vmem:[%s4436_s12 + $0x28] sm:$0xff] %vm3196_vm3, %v4010_v5 }
 0xb4b   : > { %v3325_v24 = vpop.f32.mrf.mxu1 }
 0xb4c   : > { %3348 = vst.msk [vmem:[%s4436_s12 + $0x20] sm:$0xff] %vm3196_vm3, %v3325_v24 }
 0xb6d   : > { %v4013_v15 = vpop.f32.mrf.mxu1 }
 0xb6e   : > { %3351 = vst.msk [vmem:[%s4436_s12 + $0x38] sm:$0xff] %vm3196_vm3, %v4013_v15 }
 0xb6f   : > { %v3335_v17 = vpop.f32.mrf.mxu1 }
 0xb70   : > { %3350 = vst.msk [vmem:[%s4436_s12 + $0x30] sm:$0xff] %vm3196_vm3, %v3335_v17  ;;  %v4007_v50 = vpop.f32.mrf.mxu0 }
 0xb71   : > { %3347 = vst.msk [vmem:[%s4436_s12 + $0x18] sm:$0xff] %vm3196_vm3, %v4007_v50 }
 0xb72   : > { %v3315_v28 = vpop.f32.mrf.mxu0 }
 0xb73   : > { %3346 = vst.msk [vmem:[%s4436_s12 + $0x10] sm:$0xff] %vm3196_vm3, %v3315_v28 }
 0xb74 PF: > { %s15_s22 = sadd.s32 1, %s4339_s22   ;;  %s6516_s18 = smov %s4331_s20 }
 0xb75   : > { %p12_p10 = scmp.ge.s32.totalorder %s15_s22, 6   ;;  %s6517_s19 = smov %s4335_s21 }
 0xb76   : > { %s6518_s20 = smov %s6521_s23  ;;  %s6519_s21 = smov %s6525_s24 }
 0xb77   :  { %14 = sbr.rel (!%p12_p10) target bundleno = 3 (0x3), region = 85 }

</bundles_post_ra>
